<compile_context>
chip_gen: v6e
topology: v6e:2x2x1
jax: 0.10.0
libtpu: 0.0.40
codegen_flags: <defaults>
</compile_context>

<pallas_src>
import functools

import numpy as np
import jax
import jax.numpy as jnp
from jax import lax
from jax.experimental import pallas as pl
from jax.experimental.pallas import tpu as pltpu


def _sum_all(x):
    # full reduce to (1, 1): lane reduce then sublane reduce
    return jnp.sum(jnp.sum(x, axis=1, keepdims=True), axis=0, keepdims=True)


def _fused_meta_baseline_kernel(temper_ref, x_ref, convw_ref, gamma_ref, beta_ref,
                                gcw_ref, gcb_ref, o_ref, *, n_way, n_shot, n_query, hw):
    N = n_way * (n_shot + n_query)
    SH = n_way * n_shot
    Q = n_way * n_query
    topk = 10
    eps_graph = float(np.finfo(float).eps)

    # ---- 1x1 conv (MXU, bf16 in / f32 acc) + BatchNorm (single-pass batch stats) + LeakyReLU(0.1)
    y = jnp.dot(x_ref[...], convw_ref[...], preferred_element_type=jnp.float32)   # (R, C)
    mu = jnp.mean(y, axis=0, keepdims=True)
    var = jnp.maximum(jnp.mean(y * y, axis=0, keepdims=True) - mu * mu, 0.0)
    y = (y - mu) * lax.rsqrt(var + 1e-5) * gamma_ref[...] + beta_ref[...]
    y = jnp.where(y >= 0.0, y, 0.1 * y)

    # ---- spatial mean: (N*hw, C) -> (N, hw, C) -> mean over hw ----
    C = y.shape[-1]
    feat = jnp.mean(y.reshape(N, hw, C), axis=1)                                   # (N, C)

    # ---- pairwise squared distance (Gram form), diagonal forced to exact zero ----
    g = lax.dot_general(feat, feat, (((1,), (1,)), ((), ())),
                        preferred_element_type=jnp.float32)                        # feat @ feat.T
    ri = lax.broadcasted_iota(jnp.int32, (N, N), 0)
    ci = lax.broadcasted_iota(jnp.int32, (N, N), 1)
    eye = ri == ci
    eyef = eye.astype(jnp.float32)
    sq_col = jnp.sum(g * eyef, axis=1, keepdims=True)                              # diag as (N, 1)
    sq_row = jnp.sum(g * eyef, axis=0, keepdims=True)                              # diag as (1, N)
    dist = jnp.maximum(sq_col + sq_row - 2.0 * g, 0.0)
    dist = jnp.where(eye, 0.0, dist)

    # ---- graphbuild tail (all in VMEM) ----
    nz = dist != 0.0
    cnt = _sum_all(nz.astype(jnp.float32))
    mean = _sum_all(dist) / cnt
    var_d = _sum_all(jnp.where(nz, (dist - mean) ** 2, 0.0)) / (cnt - 1.0)         # torch unbiased std
    w = jnp.exp(-0.5 * dist * lax.rsqrt(var_d))

    # top-10 per row via rank-by-comparison-count (and its transpose via columns;
    # w is symmetric so this equals sel.T exactly) -- no lax.top_k / transpose needed.
    cnt_row = jnp.zeros_like(w)
    cnt_col = jnp.zeros_like(w)
    for k in range(N):
        cnt_row = cnt_row + (w[:, k:k + 1] > w).astype(jnp.float32)
        cnt_col = cnt_col + (w[k:k + 1, :] > w).astype(jnp.float32)
    sel = (cnt_row < float(topk)).astype(jnp.float32)
    sel_t = (cnt_col < float(topk)).astype(jnp.float32)
    sym = ((sel + sel_t) > 0.0).astype(jnp.float32)
    w = w * sym
    d_row = lax.rsqrt(jnp.sum(w, axis=1, keepdims=True) + eps_graph)
    d_col = lax.rsqrt(jnp.sum(w, axis=0, keepdims=True) + eps_graph)
    adj = d_row * w * d_col                                                        # (N, N)

    # ---- GCN: adj @ (feat @ W) + b ----
    support = jnp.dot(feat.astype(jnp.bfloat16), gcw_ref[...],
                      preferred_element_type=jnp.float32)                          # (N, D)
    gout = jnp.dot(adj, support, preferred_element_type=jnp.float32) + gcb_ref[...]

    # ---- prototypes (mean over shots) and query rows via selection matmuls ----
    pr = lax.broadcasted_iota(jnp.int32, (n_way, N), 0)
    pc = lax.broadcasted_iota(jnp.int32, (n_way, N), 1)
    shot_mask = jnp.logical_and(pc >= pr * n_shot, pc < (pr + 1) * n_shot)
    proto = jnp.dot(jnp.where(shot_mask, 1.0 / n_shot, 0.0), gout,
                    preferred_element_type=jnp.float32)                            # (n_way, D)
    qr = lax.broadcasted_iota(jnp.int32, (Q, N), 0)
    qc = lax.broadcasted_iota(jnp.int32, (Q, N), 1)
    xq = jnp.dot(jnp.where(qc == qr + SH, 1.0, 0.0), gout,
                 preferred_element_type=jnp.float32)                               # (Q, D)

    # ---- cosine logits * temper ----
    qn = xq * lax.rsqrt(jnp.maximum(jnp.sum(xq * xq, axis=-1, keepdims=True), 1e-24))
    pn = proto * lax.rsqrt(jnp.maximum(jnp.sum(proto * proto, axis=-1, keepdims=True), 1e-24))
    logits = lax.dot_general(qn, pn, (((1,), (1,)), ((), ())),
                             preferred_element_type=jnp.float32)                   # (Q, n_way)
    o_ref[...] = logits * temper_ref[0, 0]


def meta_baseline_fused(x2d, conv_w_t, bn_gamma, bn_beta, gc_w, gc_b, temper,
                        *, n_way, n_shot, n_query, hw):
    Q = n_way * n_query
    kernel = functools.partial(_fused_meta_baseline_kernel,
                               n_way=n_way, n_shot=n_shot, n_query=n_query, hw=hw)
    return pl.pallas_call(
        kernel,
        out_shape=jax.ShapeDtypeStruct((Q, n_way), jnp.float32),
        in_specs=[
            pl.BlockSpec(memory_space=pltpu.MemorySpace.SMEM),   # temper (1,1)
            pl.BlockSpec(memory_space=pltpu.MemorySpace.VMEM),   # x2d (R, C) bf16
            pl.BlockSpec(memory_space=pltpu.MemorySpace.VMEM),   # conv_w_t (C, C) bf16
            pl.BlockSpec(memory_space=pltpu.MemorySpace.VMEM),   # bn_gamma (1, C)
            pl.BlockSpec(memory_space=pltpu.MemorySpace.VMEM),   # bn_beta (1, C)
            pl.BlockSpec(memory_space=pltpu.MemorySpace.VMEM),   # gc_w (512, 512) bf16
            pl.BlockSpec(memory_space=pltpu.MemorySpace.VMEM),   # gc_b (1, 512)
        ],
        out_specs=pl.BlockSpec(memory_space=pltpu.MemorySpace.VMEM),
    )(temper, x2d, conv_w_t, bn_gamma, bn_beta, gc_w, gc_b)


def meta_baseline_forward(params, x_shot, y_shot, x_query, y_query):
    n_way, n_shot = x_shot.shape[0], x_shot.shape[1]
    n_query = x_query.shape[1]
    C, H, W = x_shot.shape[2], x_shot.shape[3], x_shot.shape[4]
    xs = x_shot.reshape(n_way * n_shot, C, H, W)
    xq = x_query.reshape(n_way * n_query, C, H, W)
    x_all = jnp.concatenate([xs, xq], axis=0)                       # (N, C, H, W)
    N = x_all.shape[0]
    hw = H * W

    # NCHW -> (N*H*W, C): channels on the 128-lane axis; bf16 at the call boundary.
    x2d = jnp.transpose(x_all, (0, 2, 3, 1)).reshape(N * hw, C).astype(jnp.bfloat16)

    logits = meta_baseline_fused(
        x2d,
        params["conv_w_t"].astype(jnp.bfloat16),
        params["bn_gamma"], params["bn_beta"],
        params["gc_w"].astype(jnp.bfloat16), params["gc_b"],
        params["temper"],
        n_way=n_way, n_shot=n_shot, n_query=n_query, hw=hw,
    ).reshape(-1, n_way)

    # F.cross_entropy (mean reduction) + compute_acc on the tiny (Q, n_way) logits.
    lse = jax.scipy.special.logsumexp(logits, axis=-1)
    ll = jnp.take_along_axis(logits, y_query[:, None], axis=-1)[:, 0]
    loss = jnp.mean(lse - ll)
    acc = jnp.mean((jnp.argmax(logits, axis=-1) == y_query).astype(jnp.float32))
    return loss, acc


if __name__ == "__main__":
    key = jax.random.PRNGKey(0)
    n_way, n_shot, n_query = 2, 2, 4
    feat_dim, H, W = 512, 4, 4        # encoder out_dim = 512 (resnet12), small spatial map
    k_xs, k_xq, k_conv, k_gw, k_gb = jax.random.split(key, 5)

    x_shot = jax.random.normal(k_xs, (n_way, n_shot, feat_dim, H, W), jnp.float32)
    x_query = jax.random.normal(k_xq, (n_way, n_query, feat_dim, H, W), jnp.float32)
    y_shot = jnp.repeat(jnp.arange(n_way, dtype=jnp.int32), n_shot)    # unused in forward
    y_query = jnp.repeat(jnp.arange(n_way, dtype=jnp.int32), n_query)

    # Deterministic parameter init (shapes from __init__).
    conv_bound = 1.0 / np.sqrt(feat_dim)          # Conv2d(512, 512, 1, bias=False)
    conv_w = jax.random.uniform(k_conv, (feat_dim, feat_dim), jnp.float32,
                                -conv_bound, conv_bound)               # (out, in)
    stdv = 1.0 / np.sqrt(512.0)                   # GraphConvolution(512, 512)
    params = {
        "conv_w_t": conv_w.T,                                              # (in, out)
        "bn_gamma": jnp.ones((1, feat_dim), jnp.float32),
        "bn_beta": jnp.zeros((1, feat_dim), jnp.float32),
        "gc_w": jax.random.uniform(k_gw, (512, 512), jnp.float32, -stdv, stdv),
        "gc_b": jax.random.uniform(k_gb, (1, 512), jnp.float32, -stdv, stdv),
        "temper": jnp.full((1, 1), 10.0, jnp.float32),
    }

    fwd = jax.jit(meta_baseline_forward)
    loss, acc = fwd(params, x_shot, y_shot, x_query, y_query)
    jax.block_until_ready((loss, acc))
    assert jnp.isfinite(loss) and jnp.isfinite(acc)
    print("KERNEL_OK")
</pallas_src>

<mosaic_0001>
module attributes {stable_mosaic.version = 11 : i64} {
  func.func @_fused_meta_baseline_kernel(%arg0: memref<1x1xf32, #tpu.memory_space<smem>>, %arg1: memref<192x512xbf16, #tpu.memory_space<vmem>>, %arg2: memref<512x512xbf16, #tpu.memory_space<vmem>>, %arg3: memref<1x512xf32, #tpu.memory_space<vmem>>, %arg4: memref<1x512xf32, #tpu.memory_space<vmem>>, %arg5: memref<512x512xbf16, #tpu.memory_space<vmem>>, %arg6: memref<1x512xf32, #tpu.memory_space<vmem>>, %arg7: memref<8x2xf32, #tpu.memory_space<vmem>>) attributes {dimension_semantics = [], scalar_prefetch = 0 : i64, scratch_operands = 0 : i64, tpu.core_type = #tpu.core_type<tc>} {
    %c0 = arith.constant 0 : index
    %c0_0 = arith.constant 0 : index
    %0 = vector.load %arg1[%c0, %c0_0] : memref<192x512xbf16, #tpu.memory_space<vmem>>, vector<192x512xbf16>
    %c0_1 = arith.constant 0 : index
    %c0_2 = arith.constant 0 : index
    %1 = vector.load %arg2[%c0_1, %c0_2] : memref<512x512xbf16, #tpu.memory_space<vmem>>, vector<512x512xbf16>
    %cst = arith.constant dense<0.000000e+00> : vector<192x512xf32>
    %2 = tpu.matmul %0, %1, %cst {dimension_numbers = #tpu.dot_dimension_numbers<[1], [0], [0], [1], [0, 0, 1, 1], [], []>} : vector<192x512xbf16>, vector<512x512xbf16>, vector<192x512xf32> -> vector<192x512xf32>
    %cst_3 = arith.constant dense<0.000000e+00> : vector<512xf32>
    %3 = vector.multi_reduction <add>, %2, %cst_3 [0] : vector<192x512xf32> to vector<512xf32>
    %4 = vector.shape_cast %3 : vector<512xf32> to vector<1x512xf32>
    %cst_4 = arith.constant 1.920000e+02 : f32
    %5 = vector.broadcast %cst_4 : f32 to vector<1x512xf32>
    %6 = arith.divf %4, %5 : vector<1x512xf32>
    %7 = arith.mulf %2, %2 : vector<192x512xf32>
    %cst_5 = arith.constant dense<0.000000e+00> : vector<512xf32>
    %8 = vector.multi_reduction <add>, %7, %cst_5 [0] : vector<192x512xf32> to vector<512xf32>
    %9 = vector.shape_cast %8 : vector<512xf32> to vector<1x512xf32>
    %cst_6 = arith.constant 1.920000e+02 : f32
    %10 = vector.broadcast %cst_6 : f32 to vector<1x512xf32>
    %11 = arith.divf %9, %10 : vector<1x512xf32>
    %12 = arith.mulf %6, %6 : vector<1x512xf32>
    %13 = arith.subf %11, %12 : vector<1x512xf32>
    %cst_7 = arith.constant 0.000000e+00 : f32
    %14 = vector.broadcast %cst_7 : f32 to vector<1x512xf32>
    %15 = arith.maximumf %13, %14 : vector<1x512xf32>
    %16 = vector.broadcast %6 : vector<1x512xf32> to vector<192x512xf32>
    %17 = arith.subf %2, %16 : vector<192x512xf32>
    %cst_8 = arith.constant 9.99999974E-6 : f32
    %18 = vector.broadcast %cst_8 : f32 to vector<1x512xf32>
    %19 = arith.addf %15, %18 : vector<1x512xf32>
    %20 = math.rsqrt %19 : vector<1x512xf32>
    %21 = vector.broadcast %20 : vector<1x512xf32> to vector<192x512xf32>
    %22 = arith.mulf %17, %21 : vector<192x512xf32>
    %c0_9 = arith.constant 0 : index
    %c0_10 = arith.constant 0 : index
    %23 = vector.load %arg3[%c0_9, %c0_10] : memref<1x512xf32, #tpu.memory_space<vmem>>, vector<1x512xf32>
    %24 = vector.broadcast %23 : vector<1x512xf32> to vector<192x512xf32>
    %25 = arith.mulf %22, %24 : vector<192x512xf32>
    %c0_11 = arith.constant 0 : index
    %c0_12 = arith.constant 0 : index
    %26 = vector.load %arg4[%c0_11, %c0_12] : memref<1x512xf32, #tpu.memory_space<vmem>>, vector<1x512xf32>
    %27 = vector.broadcast %26 : vector<1x512xf32> to vector<192x512xf32>
    %28 = arith.addf %25, %27 : vector<192x512xf32>
    %cst_13 = arith.constant 0.000000e+00 : f32
    %29 = vector.broadcast %cst_13 : f32 to vector<192x512xf32>
    %30 = arith.cmpf oge, %28, %29 : vector<192x512xf32>
    %cst_14 = arith.constant 1.000000e-01 : f32
    %31 = vector.broadcast %cst_14 : f32 to vector<192x512xf32>
    %32 = arith.mulf %31, %28 : vector<192x512xf32>
    %33 = arith.select %30, %28, %32 : vector<192x512xi1>, vector<192x512xf32>
    %34 = vector.shape_cast %33 : vector<192x512xf32> to vector<12x16x512xf32>
    %cst_15 = arith.constant dense<0.000000e+00> : vector<12x512xf32>
    %35 = vector.multi_reduction <add>, %34, %cst_15 [1] : vector<12x16x512xf32> to vector<12x512xf32>
    %cst_16 = arith.constant 1.600000e+01 : f32
    %36 = vector.broadcast %cst_16 : f32 to vector<12x512xf32>
    %37 = arith.divf %35, %36 : vector<12x512xf32>
    %cst_17 = arith.constant dense<0.000000e+00> : vector<12x12xf32>
    %38 = tpu.matmul %37, %37, %cst_17 {dimension_numbers = #tpu.dot_dimension_numbers<[1], [1], [0], [0], [0, 0, 1, 0], [], []>} : vector<12x512xf32>, vector<12x512xf32>, vector<12x12xf32> -> vector<12x12xf32>
    %39 = tpu.iota {dimensions = array<i32: 0>} : vector<12x12xi32>
    %40 = tpu.iota {dimensions = array<i32: 1>} : vector<12x12xi32>
    %41 = arith.cmpi eq, %39, %40 : vector<12x12xi32>
    %42 = arith.extui %41 : vector<12x12xi1> to vector<12x12xi32>
    %43 = arith.sitofp %42 : vector<12x12xi32> to vector<12x12xf32>
    %44 = arith.mulf %38, %43 : vector<12x12xf32>
    %cst_18 = arith.constant dense<0.000000e+00> : vector<12xf32>
    %45 = vector.multi_reduction <add>, %44, %cst_18 [1] : vector<12x12xf32> to vector<12xf32>
    %46 = vector.shape_cast %45 : vector<12xf32> to vector<12x1xf32>
    %47 = arith.mulf %38, %43 : vector<12x12xf32>
    %cst_19 = arith.constant dense<0.000000e+00> : vector<12xf32>
    %48 = vector.multi_reduction <add>, %47, %cst_19 [0] : vector<12x12xf32> to vector<12xf32>
    %49 = vector.shape_cast %48 : vector<12xf32> to vector<1x12xf32>
    %50 = vector.broadcast %46 : vector<12x1xf32> to vector<12x12xf32>
    %51 = vector.broadcast %49 : vector<1x12xf32> to vector<12x12xf32>
    %52 = arith.addf %50, %51 : vector<12x12xf32>
    %cst_20 = arith.constant 2.000000e+00 : f32
    %53 = vector.broadcast %cst_20 : f32 to vector<12x12xf32>
    %54 = arith.mulf %53, %38 : vector<12x12xf32>
    %55 = arith.subf %52, %54 : vector<12x12xf32>
    %cst_21 = arith.constant 0.000000e+00 : f32
    %56 = vector.broadcast %cst_21 : f32 to vector<12x12xf32>
    %57 = arith.maximumf %55, %56 : vector<12x12xf32>
    %cst_22 = arith.constant 0.000000e+00 : f32
    %58 = vector.broadcast %cst_22 : f32 to vector<12x12xf32>
    %59 = arith.select %41, %58, %57 : vector<12x12xi1>, vector<12x12xf32>
    %cst_23 = arith.constant 0.000000e+00 : f32
    %60 = vector.broadcast %cst_23 : f32 to vector<12x12xf32>
    %61 = arith.cmpf one, %59, %60 : vector<12x12xf32>
    %62 = arith.extui %61 : vector<12x12xi1> to vector<12x12xi32>
    %63 = arith.sitofp %62 : vector<12x12xi32> to vector<12x12xf32>
    %cst_24 = arith.constant dense<0.000000e+00> : vector<12xf32>
    %64 = vector.multi_reduction <add>, %63, %cst_24 [1] : vector<12x12xf32> to vector<12xf32>
    %65 = vector.shape_cast %64 : vector<12xf32> to vector<12x1xf32>
    %cst_25 = arith.constant dense<0.000000e+00> : vector<1xf32>
    %66 = vector.multi_reduction <add>, %65, %cst_25 [0] : vector<12x1xf32> to vector<1xf32>
    %67 = vector.shape_cast %66 : vector<1xf32> to vector<1x1xf32>
    %cst_26 = arith.constant dense<0.000000e+00> : vector<12xf32>
    %68 = vector.multi_reduction <add>, %59, %cst_26 [1] : vector<12x12xf32> to vector<12xf32>
    %69 = vector.shape_cast %68 : vector<12xf32> to vector<12x1xf32>
    %cst_27 = arith.constant dense<0.000000e+00> : vector<1xf32>
    %70 = vector.multi_reduction <add>, %69, %cst_27 [0] : vector<12x1xf32> to vector<1xf32>
    %71 = vector.shape_cast %70 : vector<1xf32> to vector<1x1xf32>
    %72 = arith.divf %71, %67 : vector<1x1xf32>
    %73 = vector.broadcast %72 : vector<1x1xf32> to vector<12x12xf32>
    %74 = arith.subf %59, %73 : vector<12x12xf32>
    %75 = arith.mulf %74, %74 : vector<12x12xf32>
    %cst_28 = arith.constant 0.000000e+00 : f32
    %76 = vector.broadcast %cst_28 : f32 to vector<12x12xf32>
    %77 = arith.select %61, %75, %76 : vector<12x12xi1>, vector<12x12xf32>
    %cst_29 = arith.constant dense<0.000000e+00> : vector<12xf32>
    %78 = vector.multi_reduction <add>, %77, %cst_29 [1] : vector<12x12xf32> to vector<12xf32>
    %79 = vector.shape_cast %78 : vector<12xf32> to vector<12x1xf32>
    %cst_30 = arith.constant dense<0.000000e+00> : vector<1xf32>
    %80 = vector.multi_reduction <add>, %79, %cst_30 [0] : vector<12x1xf32> to vector<1xf32>
    %81 = vector.shape_cast %80 : vector<1xf32> to vector<1x1xf32>
    %cst_31 = arith.constant 1.000000e+00 : f32
    %82 = vector.broadcast %cst_31 : f32 to vector<1x1xf32>
    %83 = arith.subf %67, %82 : vector<1x1xf32>
    %84 = arith.divf %81, %83 : vector<1x1xf32>
    %cst_32 = arith.constant -5.000000e-01 : f32
    %85 = vector.broadcast %cst_32 : f32 to vector<12x12xf32>
    %86 = arith.mulf %85, %59 : vector<12x12xf32>
    %87 = math.rsqrt %84 : vector<1x1xf32>
    %88 = vector.broadcast %87 : vector<1x1xf32> to vector<12x12xf32>
    %89 = arith.mulf %86, %88 : vector<12x12xf32>
    %90 = math.exp %89 : vector<12x12xf32>
    %cst_33 = arith.constant 0.000000e+00 : f32
    %91 = vector.broadcast %cst_33 : f32 to vector<12x12xf32>
    %cst_34 = arith.constant 0.000000e+00 : f32
    %92 = vector.broadcast %cst_34 : f32 to vector<12x12xf32>
    %93 = vector.extract_strided_slice %90 {offsets = [0, 0], sizes = [12, 1], strides = [1, 1]} : vector<12x12xf32> to vector<12x1xf32>
    %94 = vector.broadcast %93 : vector<12x1xf32> to vector<12x12xf32>
    %95 = arith.cmpf ogt, %94, %90 : vector<12x12xf32>
    %96 = arith.extui %95 : vector<12x12xi1> to vector<12x12xi32>
    %97 = arith.sitofp %96 : vector<12x12xi32> to vector<12x12xf32>
    %98 = arith.addf %91, %97 : vector<12x12xf32>
    %99 = vector.extract_strided_slice %90 {offsets = [0, 0], sizes = [1, 12], strides = [1, 1]} : vector<12x12xf32> to vector<1x12xf32>
    %100 = vector.broadcast %99 : vector<1x12xf32> to vector<12x12xf32>
    %101 = arith.cmpf ogt, %100, %90 : vector<12x12xf32>
    %102 = arith.extui %101 : vector<12x12xi1> to vector<12x12xi32>
    %103 = arith.sitofp %102 : vector<12x12xi32> to vector<12x12xf32>
    %104 = arith.addf %92, %103 : vector<12x12xf32>
    %105 = vector.extract_strided_slice %90 {offsets = [0, 1], sizes = [12, 1], strides = [1, 1]} : vector<12x12xf32> to vector<12x1xf32>
    %106 = vector.broadcast %105 : vector<12x1xf32> to vector<12x12xf32>
    %107 = arith.cmpf ogt, %106, %90 : vector<12x12xf32>
    %108 = arith.extui %107 : vector<12x12xi1> to vector<12x12xi32>
    %109 = arith.sitofp %108 : vector<12x12xi32> to vector<12x12xf32>
    %110 = arith.addf %98, %109 : vector<12x12xf32>
    %111 = vector.extract_strided_slice %90 {offsets = [1, 0], sizes = [1, 12], strides = [1, 1]} : vector<12x12xf32> to vector<1x12xf32>
    %112 = vector.broadcast %111 : vector<1x12xf32> to vector<12x12xf32>
    %113 = arith.cmpf ogt, %112, %90 : vector<12x12xf32>
    %114 = arith.extui %113 : vector<12x12xi1> to vector<12x12xi32>
    %115 = arith.sitofp %114 : vector<12x12xi32> to vector<12x12xf32>
    %116 = arith.addf %104, %115 : vector<12x12xf32>
    %117 = vector.extract_strided_slice %90 {offsets = [0, 2], sizes = [12, 1], strides = [1, 1]} : vector<12x12xf32> to vector<12x1xf32>
    %118 = vector.broadcast %117 : vector<12x1xf32> to vector<12x12xf32>
    %119 = arith.cmpf ogt, %118, %90 : vector<12x12xf32>
    %120 = arith.extui %119 : vector<12x12xi1> to vector<12x12xi32>
    %121 = arith.sitofp %120 : vector<12x12xi32> to vector<12x12xf32>
    %122 = arith.addf %110, %121 : vector<12x12xf32>
    %123 = vector.extract_strided_slice %90 {offsets = [2, 0], sizes = [1, 12], strides = [1, 1]} : vector<12x12xf32> to vector<1x12xf32>
    %124 = vector.broadcast %123 : vector<1x12xf32> to vector<12x12xf32>
    %125 = arith.cmpf ogt, %124, %90 : vector<12x12xf32>
    %126 = arith.extui %125 : vector<12x12xi1> to vector<12x12xi32>
    %127 = arith.sitofp %126 : vector<12x12xi32> to vector<12x12xf32>
    %128 = arith.addf %116, %127 : vector<12x12xf32>
    %129 = vector.extract_strided_slice %90 {offsets = [0, 3], sizes = [12, 1], strides = [1, 1]} : vector<12x12xf32> to vector<12x1xf32>
    %130 = vector.broadcast %129 : vector<12x1xf32> to vector<12x12xf32>
    %131 = arith.cmpf ogt, %130, %90 : vector<12x12xf32>
    %132 = arith.extui %131 : vector<12x12xi1> to vector<12x12xi32>
    %133 = arith.sitofp %132 : vector<12x12xi32> to vector<12x12xf32>
    %134 = arith.addf %122, %133 : vector<12x12xf32>
    %135 = vector.extract_strided_slice %90 {offsets = [3, 0], sizes = [1, 12], strides = [1, 1]} : vector<12x12xf32> to vector<1x12xf32>
    %136 = vector.broadcast %135 : vector<1x12xf32> to vector<12x12xf32>
    %137 = arith.cmpf ogt, %136, %90 : vector<12x12xf32>
    %138 = arith.extui %137 : vector<12x12xi1> to vector<12x12xi32>
    %139 = arith.sitofp %138 : vector<12x12xi32> to vector<12x12xf32>
    %140 = arith.addf %128, %139 : vector<12x12xf32>
    %141 = vector.extract_strided_slice %90 {offsets = [0, 4], sizes = [12, 1], strides = [1, 1]} : vector<12x12xf32> to vector<12x1xf32>
    %142 = vector.broadcast %141 : vector<12x1xf32> to vector<12x12xf32>
    %143 = arith.cmpf ogt, %142, %90 : vector<12x12xf32>
    %144 = arith.extui %143 : vector<12x12xi1> to vector<12x12xi32>
    %145 = arith.sitofp %144 : vector<12x12xi32> to vector<12x12xf32>
    %146 = arith.addf %134, %145 : vector<12x12xf32>
    %147 = vector.extract_strided_slice %90 {offsets = [4, 0], sizes = [1, 12], strides = [1, 1]} : vector<12x12xf32> to vector<1x12xf32>
    %148 = vector.broadcast %147 : vector<1x12xf32> to vector<12x12xf32>
    %149 = arith.cmpf ogt, %148, %90 : vector<12x12xf32>
    %150 = arith.extui %149 : vector<12x12xi1> to vector<12x12xi32>
    %151 = arith.sitofp %150 : vector<12x12xi32> to vector<12x12xf32>
    %152 = arith.addf %140, %151 : vector<12x12xf32>
    %153 = vector.extract_strided_slice %90 {offsets = [0, 5], sizes = [12, 1], strides = [1, 1]} : vector<12x12xf32> to vector<12x1xf32>
    %154 = vector.broadcast %153 : vector<12x1xf32> to vector<12x12xf32>
    %155 = arith.cmpf ogt, %154, %90 : vector<12x12xf32>
    %156 = arith.extui %155 : vector<12x12xi1> to vector<12x12xi32>
    %157 = arith.sitofp %156 : vector<12x12xi32> to vector<12x12xf32>
    %158 = arith.addf %146, %157 : vector<12x12xf32>
    %159 = vector.extract_strided_slice %90 {offsets = [5, 0], sizes = [1, 12], strides = [1, 1]} : vector<12x12xf32> to vector<1x12xf32>
    %160 = vector.broadcast %159 : vector<1x12xf32> to vector<12x12xf32>
    %161 = arith.cmpf ogt, %160, %90 : vector<12x12xf32>
    %162 = arith.extui %161 : vector<12x12xi1> to vector<12x12xi32>
    %163 = arith.sitofp %162 : vector<12x12xi32> to vector<12x12xf32>
    %164 = arith.addf %152, %163 : vector<12x12xf32>
    %165 = vector.extract_strided_slice %90 {offsets = [0, 6], sizes = [12, 1], strides = [1, 1]} : vector<12x12xf32> to vector<12x1xf32>
    %166 = vector.broadcast %165 : vector<12x1xf32> to vector<12x12xf32>
    %167 = arith.cmpf ogt, %166, %90 : vector<12x12xf32>
    %168 = arith.extui %167 : vector<12x12xi1> to vector<12x12xi32>
    %169 = arith.sitofp %168 : vector<12x12xi32> to vector<12x12xf32>
    %170 = arith.addf %158, %169 : vector<12x12xf32>
    %171 = vector.extract_strided_slice %90 {offsets = [6, 0], sizes = [1, 12], strides = [1, 1]} : vector<12x12xf32> to vector<1x12xf32>
    %172 = vector.broadcast %171 : vector<1x12xf32> to vector<12x12xf32>
    %173 = arith.cmpf ogt, %172, %90 : vector<12x12xf32>
    %174 = arith.extui %173 : vector<12x12xi1> to vector<12x12xi32>
    %175 = arith.sitofp %174 : vector<12x12xi32> to vector<12x12xf32>
    %176 = arith.addf %164, %175 : vector<12x12xf32>
    %177 = vector.extract_strided_slice %90 {offsets = [0, 7], sizes = [12, 1], strides = [1, 1]} : vector<12x12xf32> to vector<12x1xf32>
    %178 = vector.broadcast %177 : vector<12x1xf32> to vector<12x12xf32>
    %179 = arith.cmpf ogt, %178, %90 : vector<12x12xf32>
    %180 = arith.extui %179 : vector<12x12xi1> to vector<12x12xi32>
    %181 = arith.sitofp %180 : vector<12x12xi32> to vector<12x12xf32>
    %182 = arith.addf %170, %181 : vector<12x12xf32>
    %183 = vector.extract_strided_slice %90 {offsets = [7, 0], sizes = [1, 12], strides = [1, 1]} : vector<12x12xf32> to vector<1x12xf32>
    %184 = vector.broadcast %183 : vector<1x12xf32> to vector<12x12xf32>
    %185 = arith.cmpf ogt, %184, %90 : vector<12x12xf32>
    %186 = arith.extui %185 : vector<12x12xi1> to vector<12x12xi32>
    %187 = arith.sitofp %186 : vector<12x12xi32> to vector<12x12xf32>
    %188 = arith.addf %176, %187 : vector<12x12xf32>
    %189 = vector.extract_strided_slice %90 {offsets = [0, 8], sizes = [12, 1], strides = [1, 1]} : vector<12x12xf32> to vector<12x1xf32>
    %190 = vector.broadcast %189 : vector<12x1xf32> to vector<12x12xf32>
    %191 = arith.cmpf ogt, %190, %90 : vector<12x12xf32>
    %192 = arith.extui %191 : vector<12x12xi1> to vector<12x12xi32>
    %193 = arith.sitofp %192 : vector<12x12xi32> to vector<12x12xf32>
    %194 = arith.addf %182, %193 : vector<12x12xf32>
    %195 = vector.extract_strided_slice %90 {offsets = [8, 0], sizes = [1, 12], strides = [1, 1]} : vector<12x12xf32> to vector<1x12xf32>
    %196 = vector.broadcast %195 : vector<1x12xf32> to vector<12x12xf32>
    %197 = arith.cmpf ogt, %196, %90 : vector<12x12xf32>
    %198 = arith.extui %197 : vector<12x12xi1> to vector<12x12xi32>
    %199 = arith.sitofp %198 : vector<12x12xi32> to vector<12x12xf32>
    %200 = arith.addf %188, %199 : vector<12x12xf32>
    %201 = vector.extract_strided_slice %90 {offsets = [0, 9], sizes = [12, 1], strides = [1, 1]} : vector<12x12xf32> to vector<12x1xf32>
    %202 = vector.broadcast %201 : vector<12x1xf32> to vector<12x12xf32>
    %203 = arith.cmpf ogt, %202, %90 : vector<12x12xf32>
    %204 = arith.extui %203 : vector<12x12xi1> to vector<12x12xi32>
    %205 = arith.sitofp %204 : vector<12x12xi32> to vector<12x12xf32>
    %206 = arith.addf %194, %205 : vector<12x12xf32>
    %207 = vector.extract_strided_slice %90 {offsets = [9, 0], sizes = [1, 12], strides = [1, 1]} : vector<12x12xf32> to vector<1x12xf32>
    %208 = vector.broadcast %207 : vector<1x12xf32> to vector<12x12xf32>
    %209 = arith.cmpf ogt, %208, %90 : vector<12x12xf32>
    %210 = arith.extui %209 : vector<12x12xi1> to vector<12x12xi32>
    %211 = arith.sitofp %210 : vector<12x12xi32> to vector<12x12xf32>
    %212 = arith.addf %200, %211 : vector<12x12xf32>
    %213 = vector.extract_strided_slice %90 {offsets = [0, 10], sizes = [12, 1], strides = [1, 1]} : vector<12x12xf32> to vector<12x1xf32>
    %214 = vector.broadcast %213 : vector<12x1xf32> to vector<12x12xf32>
    %215 = arith.cmpf ogt, %214, %90 : vector<12x12xf32>
    %216 = arith.extui %215 : vector<12x12xi1> to vector<12x12xi32>
    %217 = arith.sitofp %216 : vector<12x12xi32> to vector<12x12xf32>
    %218 = arith.addf %206, %217 : vector<12x12xf32>
    %219 = vector.extract_strided_slice %90 {offsets = [10, 0], sizes = [1, 12], strides = [1, 1]} : vector<12x12xf32> to vector<1x12xf32>
    %220 = vector.broadcast %219 : vector<1x12xf32> to vector<12x12xf32>
    %221 = arith.cmpf ogt, %220, %90 : vector<12x12xf32>
    %222 = arith.extui %221 : vector<12x12xi1> to vector<12x12xi32>
    %223 = arith.sitofp %222 : vector<12x12xi32> to vector<12x12xf32>
    %224 = arith.addf %212, %223 : vector<12x12xf32>
    %225 = vector.extract_strided_slice %90 {offsets = [0, 11], sizes = [12, 1], strides = [1, 1]} : vector<12x12xf32> to vector<12x1xf32>
    %226 = vector.broadcast %225 : vector<12x1xf32> to vector<12x12xf32>
    %227 = arith.cmpf ogt, %226, %90 : vector<12x12xf32>
    %228 = arith.extui %227 : vector<12x12xi1> to vector<12x12xi32>
    %229 = arith.sitofp %228 : vector<12x12xi32> to vector<12x12xf32>
    %230 = arith.addf %218, %229 : vector<12x12xf32>
    %231 = vector.extract_strided_slice %90 {offsets = [11, 0], sizes = [1, 12], strides = [1, 1]} : vector<12x12xf32> to vector<1x12xf32>
    %232 = vector.broadcast %231 : vector<1x12xf32> to vector<12x12xf32>
    %233 = arith.cmpf ogt, %232, %90 : vector<12x12xf32>
    %234 = arith.extui %233 : vector<12x12xi1> to vector<12x12xi32>
    %235 = arith.sitofp %234 : vector<12x12xi32> to vector<12x12xf32>
    %236 = arith.addf %224, %235 : vector<12x12xf32>
    %cst_35 = arith.constant 1.000000e+01 : f32
    %237 = vector.broadcast %cst_35 : f32 to vector<12x12xf32>
    %238 = arith.cmpf olt, %230, %237 : vector<12x12xf32>
    %239 = arith.extui %238 : vector<12x12xi1> to vector<12x12xi32>
    %240 = arith.sitofp %239 : vector<12x12xi32> to vector<12x12xf32>
    %cst_36 = arith.constant 1.000000e+01 : f32
    %241 = vector.broadcast %cst_36 : f32 to vector<12x12xf32>
    %242 = arith.cmpf olt, %236, %241 : vector<12x12xf32>
    %243 = arith.extui %242 : vector<12x12xi1> to vector<12x12xi32>
    %244 = arith.sitofp %243 : vector<12x12xi32> to vector<12x12xf32>
    %245 = arith.addf %240, %244 : vector<12x12xf32>
    %cst_37 = arith.constant 0.000000e+00 : f32
    %246 = vector.broadcast %cst_37 : f32 to vector<12x12xf32>
    %247 = arith.cmpf ogt, %245, %246 : vector<12x12xf32>
    %248 = arith.extui %247 : vector<12x12xi1> to vector<12x12xi32>
    %249 = arith.sitofp %248 : vector<12x12xi32> to vector<12x12xf32>
    %250 = arith.mulf %90, %249 : vector<12x12xf32>
    %cst_38 = arith.constant dense<0.000000e+00> : vector<12xf32>
    %251 = vector.multi_reduction <add>, %250, %cst_38 [1] : vector<12x12xf32> to vector<12xf32>
    %252 = vector.shape_cast %251 : vector<12xf32> to vector<12x1xf32>
    %cst_39 = arith.constant 2.22044605E-16 : f32
    %253 = vector.broadcast %cst_39 : f32 to vector<12x1xf32>
    %254 = arith.addf %252, %253 : vector<12x1xf32>
    %255 = math.rsqrt %254 : vector<12x1xf32>
    %cst_40 = arith.constant dense<0.000000e+00> : vector<12xf32>
    %256 = vector.multi_reduction <add>, %250, %cst_40 [0] : vector<12x12xf32> to vector<12xf32>
    %257 = vector.shape_cast %256 : vector<12xf32> to vector<1x12xf32>
    %cst_41 = arith.constant 2.22044605E-16 : f32
    %258 = vector.broadcast %cst_41 : f32 to vector<1x12xf32>
    %259 = arith.addf %257, %258 : vector<1x12xf32>
    %260 = math.rsqrt %259 : vector<1x12xf32>
    %261 = vector.broadcast %255 : vector<12x1xf32> to vector<12x12xf32>
    %262 = arith.mulf %261, %250 : vector<12x12xf32>
    %263 = vector.broadcast %260 : vector<1x12xf32> to vector<12x12xf32>
    %264 = arith.mulf %262, %263 : vector<12x12xf32>
    %265 = arith.truncf %37 : vector<12x512xf32> to vector<12x512xbf16>
    %c0_42 = arith.constant 0 : index
    %c0_43 = arith.constant 0 : index
    %266 = vector.load %arg5[%c0_42, %c0_43] : memref<512x512xbf16, #tpu.memory_space<vmem>>, vector<512x512xbf16>
    %cst_44 = arith.constant dense<0.000000e+00> : vector<12x512xf32>
    %267 = tpu.matmul %265, %266, %cst_44 {dimension_numbers = #tpu.dot_dimension_numbers<[1], [0], [0], [1], [0, 0, 1, 1], [], []>} : vector<12x512xbf16>, vector<512x512xbf16>, vector<12x512xf32> -> vector<12x512xf32>
    %cst_45 = arith.constant dense<0.000000e+00> : vector<12x512xf32>
    %268 = tpu.matmul %264, %267, %cst_45 {dimension_numbers = #tpu.dot_dimension_numbers<[1], [0], [0], [1], [0, 0, 1, 1], [], []>} : vector<12x12xf32>, vector<12x512xf32>, vector<12x512xf32> -> vector<12x512xf32>
    %c0_46 = arith.constant 0 : index
    %c0_47 = arith.constant 0 : index
    %269 = vector.load %arg6[%c0_46, %c0_47] : memref<1x512xf32, #tpu.memory_space<vmem>>, vector<1x512xf32>
    %270 = vector.broadcast %269 : vector<1x512xf32> to vector<12x512xf32>
    %271 = arith.addf %268, %270 : vector<12x512xf32>
    %272 = tpu.iota {dimensions = array<i32: 0>} : vector<2x12xi32>
    %273 = tpu.iota {dimensions = array<i32: 1>} : vector<2x12xi32>
    %c2_i32 = arith.constant 2 : i32
    %274 = vector.broadcast %c2_i32 : i32 to vector<2x12xi32>
    %275 = arith.muli %272, %274 : vector<2x12xi32>
    %276 = arith.cmpi sge, %273, %275 : vector<2x12xi32>
    %c1_i32 = arith.constant 1 : i32
    %277 = vector.broadcast %c1_i32 : i32 to vector<2x12xi32>
    %278 = arith.addi %272, %277 : vector<2x12xi32>
    %c2_i32_48 = arith.constant 2 : i32
    %279 = vector.broadcast %c2_i32_48 : i32 to vector<2x12xi32>
    %280 = arith.muli %278, %279 : vector<2x12xi32>
    %281 = arith.cmpi slt, %273, %280 : vector<2x12xi32>
    %282 = arith.andi %276, %281 : vector<2x12xi1>
    %cst_49 = arith.constant 5.000000e-01 : f32
    %cst_50 = arith.constant 0.000000e+00 : f32
    %283 = vector.broadcast %cst_49 : f32 to vector<2x12xf32>
    %284 = vector.broadcast %cst_50 : f32 to vector<2x12xf32>
    %285 = arith.select %282, %283, %284 : vector<2x12xi1>, vector<2x12xf32>
    %cst_51 = arith.constant dense<0.000000e+00> : vector<2x512xf32>
    %286 = tpu.matmul %285, %271, %cst_51 {dimension_numbers = #tpu.dot_dimension_numbers<[1], [0], [0], [1], [0, 0, 1, 1], [], []>} : vector<2x12xf32>, vector<12x512xf32>, vector<2x512xf32> -> vector<2x512xf32>
    %287 = tpu.iota {dimensions = array<i32: 0>} : vector<8x12xi32>
    %288 = tpu.iota {dimensions = array<i32: 1>} : vector<8x12xi32>
    %c4_i32 = arith.constant 4 : i32
    %289 = vector.broadcast %c4_i32 : i32 to vector<8x12xi32>
    %290 = arith.addi %287, %289 : vector<8x12xi32>
    %291 = arith.cmpi eq, %288, %290 : vector<8x12xi32>
    %cst_52 = arith.constant 1.000000e+00 : f32
    %cst_53 = arith.constant 0.000000e+00 : f32
    %292 = vector.broadcast %cst_52 : f32 to vector<8x12xf32>
    %293 = vector.broadcast %cst_53 : f32 to vector<8x12xf32>
    %294 = arith.select %291, %292, %293 : vector<8x12xi1>, vector<8x12xf32>
    %cst_54 = arith.constant dense<0.000000e+00> : vector<8x512xf32>
    %295 = tpu.matmul %294, %271, %cst_54 {dimension_numbers = #tpu.dot_dimension_numbers<[1], [0], [0], [1], [0, 0, 1, 1], [], []>} : vector<8x12xf32>, vector<12x512xf32>, vector<8x512xf32> -> vector<8x512xf32>
    %296 = arith.mulf %295, %295 : vector<8x512xf32>
    %cst_55 = arith.constant dense<0.000000e+00> : vector<8xf32>
    %297 = vector.multi_reduction <add>, %296, %cst_55 [1] : vector<8x512xf32> to vector<8xf32>
    %298 = vector.shape_cast %297 : vector<8xf32> to vector<8x1xf32>
    %cst_56 = arith.constant 1.000000e-24 : f32
    %299 = vector.broadcast %cst_56 : f32 to vector<8x1xf32>
    %300 = arith.maximumf %298, %299 : vector<8x1xf32>
    %301 = math.rsqrt %300 : vector<8x1xf32>
    %302 = vector.broadcast %301 : vector<8x1xf32> to vector<8x512xf32>
    %303 = arith.mulf %295, %302 : vector<8x512xf32>
    %304 = arith.mulf %286, %286 : vector<2x512xf32>
    %cst_57 = arith.constant dense<0.000000e+00> : vector<2xf32>
    %305 = vector.multi_reduction <add>, %304, %cst_57 [1] : vector<2x512xf32> to vector<2xf32>
    %306 = vector.shape_cast %305 : vector<2xf32> to vector<2x1xf32>
    %cst_58 = arith.constant 1.000000e-24 : f32
    %307 = vector.broadcast %cst_58 : f32 to vector<2x1xf32>
    %308 = arith.maximumf %306, %307 : vector<2x1xf32>
    %309 = math.rsqrt %308 : vector<2x1xf32>
    %310 = vector.broadcast %309 : vector<2x1xf32> to vector<2x512xf32>
    %311 = arith.mulf %286, %310 : vector<2x512xf32>
    %cst_59 = arith.constant dense<0.000000e+00> : vector<8x2xf32>
    %312 = tpu.matmul %303, %311, %cst_59 {dimension_numbers = #tpu.dot_dimension_numbers<[1], [1], [0], [0], [0, 0, 1, 0], [], []>} : vector<8x512xf32>, vector<2x512xf32>, vector<8x2xf32> -> vector<8x2xf32>
    %c0_60 = arith.constant 0 : index
    %c0_61 = arith.constant 0 : index
    %313 = memref.load %arg0[%c0_60, %c0_61] : memref<1x1xf32, #tpu.memory_space<smem>>
    %314 = vector.broadcast %313 : f32 to vector<8x2xf32>
    %315 = arith.mulf %312, %314 : vector<8x2xf32>
    %c0_62 = arith.constant 0 : index
    %c0_63 = arith.constant 0 : index
    %316 = vector.load %arg7[%c0_62, %c0_63] : memref<8x2xf32, #tpu.memory_space<vmem>>, vector<8x2xf32>
    tpu.vector_store %arg7[%c0_62, %c0_63], %315 {strides = array<i32>} : memref<8x2xf32, #tpu.memory_space<vmem>>, vector<8x2xf32>,
    return
  }
}

</mosaic_0001>

<bundles_post_ra>
// kernel: meta_baseline_forward.1
= control target key start
LH: loop header
LB: loop body
LE: loop exit
PB: predicated region body
PF: predicated region fallthrough
CT: control target
= control target key end

     0   :  { %vm10103_vm8 = vcmask 1041409   ;;  %vm10102_vm9 = vcmask 1042434   ;;  %vm10101_vm10 = vcmask 1043459   ;;  %s10003_s2 = inlined_call_operand.vmem [shape: bf16[512,512], index: 2, kind: input, shape index: {}]   ;;  %s10004_s1 = inlined_call_operand.vmem [shape: bf16[192,512], index: 1, kind: input, shape index: {}]   ;;  %s10005_s3 = inlined_call_operand.vmem [shape: f32[1,512], index: 3, kind: input, shape index: {}]   ;;  %s10006_s4 = inlined_call_operand.vmem [shape: f32[1,512], index: 4, kind: input, shape index: {}]   ;;  %s10007_s5 = inlined_call_operand.vmem [shape: bf16[512,512], index: 5, kind: input, shape index: {}]   ;;  %s10008_s6 = inlined_call_operand.vmem [shape: f32[1,512], index: 6, kind: input, shape index: {}]   ;;  %s10009_s0 = inlined_call_operand.<no memory space> [shape: f32[1,1], index: 0, kind: input, shape index: {}]   ;;  %s10010_s7 = inlined_call_operand.vmem [shape: f32[8,2], index: 7, kind: output, shape index: {}]  }
   0x1   :  { %v6136_v0 = vld [vmem:[%s10003_s2 + $0xe4] ss:$16 sps:$4 sm:$0xff]   ;;  %v6140_v2 = vld [vmem:[%s10003_s2 + $0xe0] ss:$16 sps:$4 sm:$0xff]   ;;  %v6833_v51 = vld [vmem:[%s10004_s1 + $0xc] ss:$16 sps:$4 sm:$0xff]  }
   0x2   :  { %v6138_v1 = vld [vmem:[%s10003_s2 + $0x2e4] ss:$16 sps:$4 sm:$0xff]   ;;  %1083 = vmatprep.subr.bf16.mxu0 %v6136_v0  ;;  %v6141_v3 = vld [vmem:[%s10003_s2 + $0x2e0] ss:$16 sps:$4 sm:$0xff]   ;;  %1268 = vmatprep.mubr.bf16.mxu1 %v6833_v51 }
   0x3   :  { %1236 = vmatprep.subr.bf16.mxu1 %v6138_v1  ;;  %v6142_v4 = vld [vmem:[%s10003_s2 + $0xc4] ss:$16 sps:$4 sm:$0xff]   ;;  %1084 = vmatpush1.bf16.msra.mxu0 %v6140_v2  ;;  %v6146_v6 = vld [vmem:[%s10003_s2 + $0xc0] ss:$16 sps:$4 sm:$0xff]   ;;  %v6264_v2 = vld [vmem:[%s10003_s2 + $0xec] ss:$16 sps:$4 sm:$0xff]  }
   0x4   :  { %1237 = vmatpush1.bf16.msra.mxu1 %v6141_v3  ;;  %v6144_v5 = vld [vmem:[%s10003_s2 + $0x2c4] ss:$16 sps:$4 sm:$0xff]   ;;  %1085 = vmatprep.subr.bf16.mxu0 %v6142_v4  ;;  %v6147_v7 = vld [vmem:[%s10003_s2 + $0x2c0] ss:$16 sps:$4 sm:$0xff]   ;;  %v6267_v3 = vld [vmem:[%s10003_s2 + $0x2ec] ss:$16 sps:$4 sm:$0xff]  }
   0x5   :  { %1238 = vmatprep.subr.bf16.mxu1 %v6144_v5  ;;  %v6148_v8 = vld [vmem:[%s10003_s2 + $0xa4] ss:$16 sps:$4 sm:$0xff]   ;;  %v6152_v10 = vld [vmem:[%s10003_s2 + $0xa0] ss:$16 sps:$4 sm:$0xff]   ;;  %v6893_v5 = vld [vmem:[%s10004_s1 + $0x8] ss:$16 sps:$4 sm:$0xff]  }
   0x6   :  { %v6150_v9 = vld [vmem:[%s10003_s2 + $0x2a4] ss:$16 sps:$4 sm:$0xff]   ;;  %v6153_v11 = vld [vmem:[%s10003_s2 + $0x2a0] ss:$16 sps:$4 sm:$0xff]  }
   0x7   :  { %1086 = vmatpush1.bf16.msra.mxu0 %v6146_v6  ;;  %v6154_v12 = vld [vmem:[%s10003_s2 + $0x84] ss:$16 sps:$4 sm:$0xff]   ;;  %v6158_v14 = vld [vmem:[%s10003_s2 + $0x80] ss:$16 sps:$4 sm:$0xff]  }
   0x8   :  { %1239 = vmatpush1.bf16.msra.mxu1 %v6147_v7  ;;  %1087 = vmatprep.subr.bf16.mxu0 %v6148_v8  ;;  %v6156_v13 = vld [vmem:[%s10003_s2 + $0x284] ss:$16 sps:$4 sm:$0xff]   ;;  %v6159_v15 = vld [vmem:[%s10003_s2 + $0x280] ss:$16 sps:$4 sm:$0xff]   ;;  %v6903_v7 = vld [vmem:[%s10004_s1 + $0x2c] ss:$16 sps:$4 sm:$0xff]  }
   0x9   :  { %1240 = vmatprep.subr.bf16.mxu1 %v6150_v9  ;;  %v6160_v16 = vld [vmem:[%s10003_s2 + $0x64] ss:$16 sps:$4 sm:$0xff]   ;;  %v6164_v18 = vld [vmem:[%s10003_s2 + $0x60] ss:$16 sps:$4 sm:$0xff]   ;;  %v6262_v8 = vld [vmem:[%s10003_s2 + $0xe8] ss:$16 sps:$4 sm:$0xff]  }
   0xa   :  { %v6162_v17 = vld [vmem:[%s10003_s2 + $0x264] ss:$16 sps:$4 sm:$0xff]   ;;  %v6165_v19 = vld [vmem:[%s10003_s2 + $0x260] ss:$16 sps:$4 sm:$0xff]   ;;  %v6265_v9 = vld [vmem:[%s10003_s2 + $0x2e8] ss:$16 sps:$4 sm:$0xff]  }
   0xb   :  { %1088 = vmatpush1.bf16.msra.mxu0 %v6152_v10  ;;  %v6166_v20 = vld [vmem:[%s10003_s2 + $0x44] ss:$16 sps:$4 sm:$0xff]   ;;  %v6170_v22 = vld [vmem:[%s10003_s2 + $0x40] ss:$16 sps:$4 sm:$0xff]   ;;  %v6270_v10 = vld [vmem:[%s10003_s2 + $0xcc] ss:$16 sps:$4 sm:$0xff]  }
   0xc   :  { %1241 = vmatpush1.bf16.msra.mxu1 %v6153_v11  ;;  %1089 = vmatprep.subr.bf16.mxu0 %v6154_v12  ;;  %v6168_v21 = vld [vmem:[%s10003_s2 + $0x244] ss:$16 sps:$4 sm:$0xff]   ;;  %v6171_v23 = vld [vmem:[%s10003_s2 + $0x240] ss:$16 sps:$4 sm:$0xff]   ;;  %v6273_v11 = vld [vmem:[%s10003_s2 + $0x2cc] ss:$16 sps:$4 sm:$0xff]  }
   0xd   :  { %1242 = vmatprep.subr.bf16.mxu1 %v6156_v13  ;;  %v6172_v24 = vld [vmem:[%s10003_s2 + $0x24] ss:$16 sps:$4 sm:$0xff]   ;;  %v6176_v26 = vld [vmem:[%s10003_s2 + $0x20] ss:$16 sps:$4 sm:$0xff]   ;;  %v6268_v12 = vld [vmem:[%s10003_s2 + $0xc8] ss:$16 sps:$4 sm:$0xff]  }
   0xe   :  { %v6174_v25 = vld [vmem:[%s10003_s2 + $0x224] ss:$16 sps:$4 sm:$0xff]   ;;  %v6177_v27 = vld [vmem:[%s10003_s2 + $0x220] ss:$16 sps:$4 sm:$0xff]   ;;  %v6271_v13 = vld [vmem:[%s10003_s2 + $0x2c8] ss:$16 sps:$4 sm:$0xff]  }
   0xf   :  { %1090 = vmatpush1.bf16.msra.mxu0 %v6158_v14  ;;  %v6178_v28 = vld [vmem:[%s10003_s2 + $0x4] ss:$16 sps:$4 sm:$0xff]   ;;  %v6182_v30 = vld [vmem:[%s10003_s2] ss:$16 sps:$4 sm:$0xff]  }
  0x10   :  { %1243 = vmatpush1.bf16.msra.mxu1 %v6159_v15  ;;  %1091 = vmatprep.subr.bf16.mxu0 %v6160_v16  ;;  %v6180_v29 = vld [vmem:[%s10003_s2 + $0x204] ss:$16 sps:$4 sm:$0xff]   ;;  %v6183_v31 = vld [vmem:[%s10003_s2 + $0x200] ss:$16 sps:$4 sm:$0xff]   ;;  %v6282_v15 = vld [vmem:[%s10003_s2 + $0xac] ss:$16 sps:$4 sm:$0xff]  }
  0x11   :  { %1244 = vmatprep.subr.bf16.mxu1 %v6162_v17  ;;  %v6184_v32 = vld [vmem:[%s10003_s2 + $0x1e4] ss:$16 sps:$4 sm:$0xff]   ;;  %v6188_v34 = vld [vmem:[%s10003_s2 + $0x1e0] ss:$16 sps:$4 sm:$0xff]   ;;  %v6285_v16 = vld [vmem:[%s10003_s2 + $0x2ac] ss:$16 sps:$4 sm:$0xff]  }
  0x12   :  { %v6186_v33 = vld [vmem:[%s10003_s2 + $0x3e4] ss:$16 sps:$4 sm:$0xff]   ;;  %v6189_v35 = vld [vmem:[%s10003_s2 + $0x3e0] ss:$16 sps:$4 sm:$0xff]   ;;  %v6941_v17 = vld [vmem:[%s10004_s1 + $0x28] ss:$16 sps:$4 sm:$0xff]  }
  0x13   :  { %1092 = vmatpush1.bf16.msra.mxu0 %v6164_v18  ;;  %v6190_v36 = vld [vmem:[%s10003_s2 + $0x1c4] ss:$16 sps:$4 sm:$0xff]   ;;  %v6194_v38 = vld [vmem:[%s10003_s2 + $0x1c0] ss:$16 sps:$4 sm:$0xff]  }
  0x14   :  { %1245 = vmatpush1.bf16.msra.mxu1 %v6165_v19  ;;  %1093 = vmatprep.subr.bf16.mxu0 %v6166_v20  ;;  %v6192_v37 = vld [vmem:[%s10003_s2 + $0x3c4] ss:$16 sps:$4 sm:$0xff]   ;;  %v6195_v39 = vld [vmem:[%s10003_s2 + $0x3c0] ss:$16 sps:$4 sm:$0xff]   ;;  %v6951_v19 = vld [vmem:[%s10004_s1 + $0x4c] ss:$16 sps:$4 sm:$0xff]  }
  0x15   :  { %1246 = vmatprep.subr.bf16.mxu1 %v6168_v21  ;;  %v6196_v40 = vld [vmem:[%s10003_s2 + $0x1a4] ss:$16 sps:$4 sm:$0xff]   ;;  %v6200_v42 = vld [vmem:[%s10003_s2 + $0x1a0] ss:$16 sps:$4 sm:$0xff]   ;;  %v6280_v20 = vld [vmem:[%s10003_s2 + $0xa8] ss:$16 sps:$4 sm:$0xff]  }
  0x16   :  { %v6198_v41 = vld [vmem:[%s10003_s2 + $0x3a4] ss:$16 sps:$4 sm:$0xff]   ;;  %v6201_v43 = vld [vmem:[%s10003_s2 + $0x3a0] ss:$16 sps:$4 sm:$0xff]   ;;  %v6283_v21 = vld [vmem:[%s10003_s2 + $0x2a8] ss:$16 sps:$4 sm:$0xff]  }
  0x17   :  { %1094 = vmatpush1.bf16.msra.mxu0 %v6170_v22  ;;  %v6202_v44 = vld [vmem:[%s10003_s2 + $0x184] ss:$16 sps:$4 sm:$0xff]   ;;  %v6206_v46 = vld [vmem:[%s10003_s2 + $0x180] ss:$16 sps:$4 sm:$0xff]   ;;  %v6288_v22 = vld [vmem:[%s10003_s2 + $0x8c] ss:$16 sps:$4 sm:$0xff]  }
  0x18   :  { %1247 = vmatpush1.bf16.msra.mxu1 %v6171_v23  ;;  %1095 = vmatprep.subr.bf16.mxu0 %v6172_v24  ;;  %v6204_v45 = vld [vmem:[%s10003_s2 + $0x384] ss:$16 sps:$4 sm:$0xff]   ;;  %v6207_v47 = vld [vmem:[%s10003_s2 + $0x380] ss:$16 sps:$4 sm:$0xff]   ;;  %v6291_v23 = vld [vmem:[%s10003_s2 + $0x28c] ss:$16 sps:$4 sm:$0xff]  }
  0x19   :  { %1248 = vmatprep.subr.bf16.mxu1 %v6174_v25  ;;  %v6208_v48 = vld [vmem:[%s10003_s2 + $0x164] ss:$16 sps:$4 sm:$0xff]   ;;  %v6212_v52 = vld [vmem:[%s10003_s2 + $0x160] ss:$16 sps:$4 sm:$0xff]   ;;  %v6286_v24 = vld [vmem:[%s10003_s2 + $0x88] ss:$16 sps:$4 sm:$0xff]  }
  0x1a   :  { %v6825_v49 = vld [vmem:[%s10004_s1 + $0x4] ss:$16 sps:$4 sm:$0xff]   ;;  %v6213_v53 = vld [vmem:[%s10003_s2 + $0x360] ss:$16 sps:$4 sm:$0xff]   ;;  %v6289_v25 = vld [vmem:[%s10003_s2 + $0x288] ss:$16 sps:$4 sm:$0xff]  }
  0x1b   :  { %1096 = vmatpush1.bf16.msra.mxu0 %v6176_v26  ;;  %v6210_v50 = vld [vmem:[%s10003_s2 + $0x364] ss:$16 sps:$4 sm:$0xff]   ;;  %1115 = vmatprep.mubr.bf16.mxu0 %v6825_v49  ;;  %v6218_v56 = vld [vmem:[%s10003_s2 + $0x140] ss:$16 sps:$4 sm:$0xff]  }
  0x1c   :  { %1249 = vmatpush1.bf16.msra.mxu1 %v6177_v27  ;;  %1097 = vmatprep.subr.bf16.mxu0 %v6178_v28  ;;  %v6214_v54 = vld [vmem:[%s10003_s2 + $0x144] ss:$16 sps:$4 sm:$0xff]   ;;  %v6219_v57 = vld [vmem:[%s10003_s2 + $0x340] ss:$16 sps:$4 sm:$0xff]   ;;  %v6300_v27 = vld [vmem:[%s10003_s2 + $0x6c] ss:$16 sps:$4 sm:$0xff]  }
  0x1d   :  { %1250 = vmatprep.subr.bf16.mxu1 %v6180_v29  ;;  %v6216_v55 = vld [vmem:[%s10003_s2 + $0x344] ss:$16 sps:$4 sm:$0xff]   ;;  %v6224_v60 = vld [vmem:[%s10003_s2 + $0x120] ss:$16 sps:$4 sm:$0xff]   ;;  %v6303_v28 = vld [vmem:[%s10003_s2 + $0x26c] ss:$16 sps:$4 sm:$0xff]  }
  0x1e   :  { %v6220_v58 = vld [vmem:[%s10003_s2 + $0x124] ss:$16 sps:$4 sm:$0xff]   ;;  %v6225_v61 = vld [vmem:[%s10003_s2 + $0x320] ss:$16 sps:$4 sm:$0xff]   ;;  %v6989_v29 = vld [vmem:[%s10004_s1 + $0x48] ss:$16 sps:$4 sm:$0xff]  }
  0x1f   :  { %1098 = vmatpush1.bf16.msra.mxu0 %v6182_v30  ;;  %v6222_v59 = vld [vmem:[%s10003_s2 + $0x324] ss:$16 sps:$4 sm:$0xff]   ;;  %v6230_v0 = vld [vmem:[%s10003_s2 + $0x100] ss:$16 sps:$4 sm:$0xff]  }
  0x20   :  { %1251 = vmatpush1.bf16.msra.mxu1 %v6183_v31  ;;  %1099 = vmatprep.subr.bf16.mxu0 %v6184_v32  ;;  %v6226_v62 = vld [vmem:[%s10003_s2 + $0x104] ss:$16 sps:$4 sm:$0xff]   ;;  %v6231_v1 = vld [vmem:[%s10003_s2 + $0x300] ss:$16 sps:$4 sm:$0xff]   ;;  %v6999_v31 = vld [vmem:[%s10004_s1 + $0x6c] ss:$16 sps:$4 sm:$0xff]  }
  0x21   :  { %1252 = vmatprep.subr.bf16.mxu1 %v6186_v33  ;;  %v6228_v63 = vld [vmem:[%s10003_s2 + $0x304] ss:$16 sps:$4 sm:$0xff]   ;;  %v6888_v4 = vld [vmem:[%s10004_s1] ss:$16 sps:$4 sm:$0xff]   ;;  %v6298_v32 = vld [vmem:[%s10003_s2 + $0x68] ss:$16 sps:$4 sm:$0xff]  }
  0x22   :  { %v6898_v6 = vld [vmem:[%s10004_s1 + $0x24] ss:$16 sps:$4 sm:$0xff]   ;;  %v6930_v14 = vld [vmem:[%s10004_s1 + $0x20] ss:$16 sps:$4 sm:$0xff]   ;;  %v6301_v33 = vld [vmem:[%s10003_s2 + $0x268] ss:$16 sps:$4 sm:$0xff]  }
  0x23   :  { %1100 = vmatpush2.bf16.msra.mxu0 %v6188_v34  ;;  %v6946_v18 = vld [vmem:[%s10004_s1 + $0x44] ss:$16 sps:$4 sm:$0xff]   ;;  %v6978_v26 = vld [vmem:[%s10004_s1 + $0x40] ss:$16 sps:$4 sm:$0xff]   ;;  %v6306_v34 = vld [vmem:[%s10003_s2 + $0x4c] ss:$16 sps:$4 sm:$0xff]  }
  0x24   :  { %1253 = vmatpush2.bf16.msra.mxu1 %v6189_v35  ;;  %1101 = vmatprep.subr.bf16.mxu0 %v6190_v36  ;;  %v6994_v30 = vld [vmem:[%s10004_s1 + $0x64] ss:$16 sps:$4 sm:$0xff]   ;;  %v6309_v35 = vld [vmem:[%s10003_s2 + $0x24c] ss:$16 sps:$4 sm:$0xff]   ;;  %v6304_v36 = vld [vmem:[%s10003_s2 + $0x48] ss:$16 sps:$4 sm:$0xff]  }
  0x25   :  { %1254 = vmatprep.subr.bf16.mxu1 %v6192_v37  ;;  %v6307_v37 = vld [vmem:[%s10003_s2 + $0x248] ss:$16 sps:$4 sm:$0xff]  }
  0x27   :  { %1102 = vmatpush2.bf16.msra.mxu0 %v6194_v38  ;;  %v7026_v38 = vld [vmem:[%s10004_s1 + $0x60] ss:$16 sps:$4 sm:$0xff]  }
  0x28   :  { %1255 = vmatpush2.bf16.msra.mxu1 %v6195_v39  ;;  %1103 = vmatprep.subr.bf16.mxu0 %v6196_v40  ;;  %v6318_v39 = vld [vmem:[%s10003_s2 + $0x2c] ss:$16 sps:$4 sm:$0xff]  }
  0x29   :  { %1256 = vmatprep.subr.bf16.mxu1 %v6198_v41  ;;  %v6321_v40 = vld [vmem:[%s10003_s2 + $0x22c] ss:$16 sps:$4 sm:$0xff]   ;;  %v7037_v41 = vld [vmem:[%s10004_s1 + $0x68] ss:$16 sps:$4 sm:$0xff]  }
  0x2b   :  { %1104 = vmatpush2.bf16.msra.mxu0 %v6200_v42  ;;  %v7042_v42 = vld [vmem:[%s10004_s1 + $0x84] ss:$16 sps:$4 sm:$0xff]  }
  0x2c   :  { %1257 = vmatpush2.bf16.msra.mxu1 %v6201_v43  ;;  %1105 = vmatprep.subr.bf16.mxu0 %v6202_v44  ;;  %v7047_v43 = vld [vmem:[%s10004_s1 + $0x8c] ss:$16 sps:$4 sm:$0xff]   ;;  %v6316_v44 = vld [vmem:[%s10003_s2 + $0x28] ss:$16 sps:$4 sm:$0xff]  }
  0x2d   :  { %1258 = vmatprep.subr.bf16.mxu1 %v6204_v45  ;;  %v6319_v45 = vld [vmem:[%s10003_s2 + $0x228] ss:$16 sps:$4 sm:$0xff]  }
  0x2f   :  { %1106 = vmatpush2.bf16.msra.mxu0 %v6206_v46  ;;  %v6324_v46 = vld [vmem:[%s10003_s2 + $0xc] ss:$16 sps:$4 sm:$0xff]  }
  0x30   :  { %1259 = vmatpush2.bf16.msra.mxu1 %v6207_v47  ;;  %1107 = vmatprep.subr.bf16.mxu0 %v6208_v48  ;;  %v6327_v47 = vld [vmem:[%s10003_s2 + $0x20c] ss:$16 sps:$4 sm:$0xff]   ;;  %v6322_v48 = vld [vmem:[%s10003_s2 + $0x8] ss:$16 sps:$4 sm:$0xff]  }
  0x31   :  { %1260 = vmatprep.subr.bf16.mxu1 %v6210_v50  ;;  %v6325_v50 = vld [vmem:[%s10003_s2 + $0x208] ss:$16 sps:$4 sm:$0xff]  }
  0x33   :  { %1108 = vmatpush2.bf16.msra.mxu0 %v6212_v52  ;;  %v7074_v52 = vld [vmem:[%s10004_s1 + $0x80] ss:$16 sps:$4 sm:$0xff]  }
  0x34   :  { %1261 = vmatpush2.bf16.msra.mxu1 %v6213_v53  ;;  %1109 = vmatprep.subr.bf16.mxu0 %v6214_v54  ;;  %v6336_v53 = vld [vmem:[%s10003_s2 + $0x1ec] ss:$16 sps:$4 sm:$0xff]  }
  0x35   :  { %1262 = vmatprep.subr.bf16.mxu1 %v6216_v55  ;;  %v6339_v54 = vld [vmem:[%s10003_s2 + $0x3ec] ss:$16 sps:$4 sm:$0xff]   ;;  %v7085_v55 = vld [vmem:[%s10004_s1 + $0x88] ss:$16 sps:$4 sm:$0xff]  }
  0x37   :  { %1110 = vmatpush2.bf16.msra.mxu0 %v6218_v56  ;;  %v7090_v56 = vld [vmem:[%s10004_s1 + $0xa4] ss:$16 sps:$4 sm:$0xff]  }
  0x38   :  { %1263 = vmatpush2.bf16.msra.mxu1 %v6219_v57  ;;  %1111 = vmatprep.subr.bf16.mxu0 %v6220_v58  ;;  %v7095_v57 = vld [vmem:[%s10004_s1 + $0xac] ss:$16 sps:$4 sm:$0xff]   ;;  %v6334_v58 = vld [vmem:[%s10003_s2 + $0x1e8] ss:$16 sps:$4 sm:$0xff]  }
  0x39   :  { %1264 = vmatprep.subr.bf16.mxu1 %v6222_v59  ;;  %v6337_v59 = vld [vmem:[%s10003_s2 + $0x3e8] ss:$16 sps:$4 sm:$0xff]  }
  0x3b   :  { %1112 = vmatpush2.bf16.msra.mxu0 %v6224_v60  ;;  %v6342_v60 = vld [vmem:[%s10003_s2 + $0x1cc] ss:$16 sps:$4 sm:$0xff]  }
  0x3c   :  { %1265 = vmatpush2.bf16.msra.mxu1 %v6225_v61  ;;  %1113 = vmatprep.subr.bf16.mxu0 %v6226_v62  ;;  %v6345_v61 = vld [vmem:[%s10003_s2 + $0x3cc] ss:$16 sps:$4 sm:$0xff]   ;;  %v6340_v62 = vld [vmem:[%s10003_s2 + $0x1c8] ss:$16 sps:$4 sm:$0xff]  }
  0x3d   :  { %1266 = vmatprep.subr.bf16.mxu1 %v6228_v63  ;;  %v6343_v63 = vld [vmem:[%s10003_s2 + $0x3c8] ss:$16 sps:$4 sm:$0xff]  }
  0x3f   :  { %1114 = vmatpush2.bf16.msra.mxu0 %v6230_v0  ;;  %v7122_v0 = vld [vmem:[%s10004_s1 + $0xa0] ss:$16 sps:$4 sm:$0xff]  }
  0x40   :  { %1267 = vmatpush2.bf16.msra.mxu1 %v6231_v1  ;;  %1389 = vmatprep.subr.bf16.mxu0 %v6264_v2  ;;  %v6354_v1 = vld [vmem:[%s10003_s2 + $0x1ac] ss:$16 sps:$4 sm:$0xff]  }
  0x41   :  { %1542 = vmatprep.subr.bf16.mxu1 %v6267_v3  ;;  %v6357_v2 = vld [vmem:[%s10003_s2 + $0x3ac] ss:$16 sps:$4 sm:$0xff]   ;;  %v7133_v3 = vld [vmem:[%s10004_s1 + $0xa8] ss:$16 sps:$4 sm:$0xff]  }
  0x42   :  { %1116 = vmatmul.mubr.bf16.vlgmr.msra.gmra.mxu0 %v6888_v4 }
  0x43   :  { %1269 = vmatmul.mubr.bf16.vlgmr.msra.gmra.mxu1 %v6893_v5  ;;  %1125 = vmatprep.mubr.bf16.mxu0 %v6898_v6 }
  0x44   :  { %1278 = vmatprep.mubr.bf16.mxu1 %v6903_v7  ;;  %1390 = vmatpush1.bf16.msra.mxu0 %v6262_v8  ;;  %v7138_v8 = vld [vmem:[%s10004_s1 + $0xc4] ss:$16 sps:$4 sm:$0xff]  }
  0x45   :  { %1543 = vmatpush1.bf16.msra.mxu1 %v6265_v9  ;;  %1391 = vmatprep.subr.bf16.mxu0 %v6270_v10  ;;  %v7143_v9 = vld [vmem:[%s10004_s1 + $0xcc] ss:$16 sps:$4 sm:$0xff]   ;;  %v6352_v10 = vld [vmem:[%s10003_s2 + $0x1a8] ss:$16 sps:$4 sm:$0xff]  }
  0x46   :  { %1544 = vmatprep.subr.bf16.mxu1 %v6273_v11  ;;  %v6355_v11 = vld [vmem:[%s10003_s2 + $0x3a8] ss:$16 sps:$4 sm:$0xff]  }
  0x48   :  { %1392 = vmatpush1.bf16.msra.mxu0 %v6268_v12  ;;  %v6360_v12 = vld [vmem:[%s10003_s2 + $0x18c] ss:$16 sps:$4 sm:$0xff]  }
  0x49   :  { %1545 = vmatpush1.bf16.msra.mxu1 %v6271_v13  ;;  %1393 = vmatprep.subr.bf16.mxu0 %v6282_v15  ;;  %v6363_v13 = vld [vmem:[%s10003_s2 + $0x38c] ss:$16 sps:$4 sm:$0xff]   ;;  %v6358_v15 = vld [vmem:[%s10003_s2 + $0x188] ss:$16 sps:$4 sm:$0xff]  }
  0x4a   :  { %1546 = vmatprep.subr.bf16.mxu1 %v6285_v16  ;;  %1126 = vmatmul.mubr.bf16.gmra.mxu0 %v6930_v14  ;;  %v6361_v16 = vld [vmem:[%s10003_s2 + $0x388] ss:$16 sps:$4 sm:$0xff]  }
  0x4b   :  { %1279 = vmatmul.mubr.bf16.gmra.mxu1 %v6941_v17  ;;  %1135 = vmatprep.mubr.bf16.mxu0 %v6946_v18 }
  0x4c   :  { %1288 = vmatprep.mubr.bf16.mxu1 %v6951_v19  ;;  %1394 = vmatpush1.bf16.msra.mxu0 %v6280_v20  ;;  %v7170_v20 = vld [vmem:[%s10004_s1 + $0xc0] ss:$16 sps:$4 sm:$0xff]  }
  0x4d   :  { %1547 = vmatpush1.bf16.msra.mxu1 %v6283_v21  ;;  %1395 = vmatprep.subr.bf16.mxu0 %v6288_v22  ;;  %v6372_v21 = vld [vmem:[%s10003_s2 + $0x16c] ss:$16 sps:$4 sm:$0xff]  }
  0x4e   :  { %1548 = vmatprep.subr.bf16.mxu1 %v6291_v23  ;;  %v6375_v22 = vld [vmem:[%s10003_s2 + $0x36c] ss:$16 sps:$4 sm:$0xff]   ;;  %v7181_v23 = vld [vmem:[%s10004_s1 + $0xc8] ss:$16 sps:$4 sm:$0xff]  }
  0x50   :  { %1396 = vmatpush1.bf16.msra.mxu0 %v6286_v24  ;;  %v7186_v24 = vld [vmem:[%s10004_s1 + $0xe4] ss:$16 sps:$4 sm:$0xff]  }
  0x51   :  { %1549 = vmatpush1.bf16.msra.mxu1 %v6289_v25  ;;  %1397 = vmatprep.subr.bf16.mxu0 %v6300_v27  ;;  %v7191_v25 = vld [vmem:[%s10004_s1 + $0xec] ss:$16 sps:$4 sm:$0xff]   ;;  %v6370_v27 = vld [vmem:[%s10003_s2 + $0x168] ss:$16 sps:$4 sm:$0xff]  }
  0x52   :  { %1550 = vmatprep.subr.bf16.mxu1 %v6303_v28  ;;  %1136 = vmatmul.mubr.bf16.gmra.mxu0 %v6978_v26  ;;  %v6373_v28 = vld [vmem:[%s10003_s2 + $0x368] ss:$16 sps:$4 sm:$0xff]  }
  0x53   :  { %1289 = vmatmul.mubr.bf16.gmra.mxu1 %v6989_v29  ;;  %1145 = vmatprep.mubr.bf16.mxu0 %v6994_v30 }
  0x54   :  { %1298 = vmatprep.mubr.bf16.mxu1 %v6999_v31  ;;  %1398 = vmatpush1.bf16.msra.mxu0 %v6298_v32  ;;  %v6378_v32 = vld [vmem:[%s10003_s2 + $0x14c] ss:$16 sps:$4 sm:$0xff]  }
  0x55   :  { %1551 = vmatpush1.bf16.msra.mxu1 %v6301_v33  ;;  %1399 = vmatprep.subr.bf16.mxu0 %v6306_v34  ;;  %v6381_v33 = vld [vmem:[%s10003_s2 + $0x34c] ss:$16 sps:$4 sm:$0xff]   ;;  %v6376_v34 = vld [vmem:[%s10003_s2 + $0x148] ss:$16 sps:$4 sm:$0xff]  }
  0x56   :  { %1552 = vmatprep.subr.bf16.mxu1 %v6309_v35  ;;  %v6379_v35 = vld [vmem:[%s10003_s2 + $0x348] ss:$16 sps:$4 sm:$0xff]  }
  0x58   :  { %1400 = vmatpush1.bf16.msra.mxu0 %v6304_v36  ;;  %v6390_v36 = vld [vmem:[%s10003_s2 + $0x12c] ss:$16 sps:$4 sm:$0xff]  }
  0x59   :  { %1553 = vmatpush1.bf16.msra.mxu1 %v6307_v37  ;;  %1401 = vmatprep.subr.bf16.mxu0 %v6318_v39  ;;  %v6393_v37 = vld [vmem:[%s10003_s2 + $0x32c] ss:$16 sps:$4 sm:$0xff]   ;;  %v7224_v39 = vld [vmem:[%s10004_s1 + $0xe0] ss:$16 sps:$4 sm:$0xff]  }
  0x5a   :  { %1554 = vmatprep.subr.bf16.mxu1 %v6321_v40  ;;  %1146 = vmatmul.mubr.bf16.gmra.mxu0 %v7026_v38  ;;  %v7229_v40 = vld [vmem:[%s10004_s1 + $0xe8] ss:$16 sps:$4 sm:$0xff]  }
  0x5b   :  { %1299 = vmatmul.mubr.bf16.gmra.mxu1 %v7037_v41  ;;  %1155 = vmatprep.mubr.bf16.mxu0 %v7042_v42 }
  0x5c   :  { %1308 = vmatprep.mubr.bf16.mxu1 %v7047_v43  ;;  %1402 = vmatpush1.bf16.msra.mxu0 %v6316_v44  ;;  %v7234_v44 = vld [vmem:[%s10004_s1 + $0x104] ss:$16 sps:$4 sm:$0xff]  }
  0x5d   :  { %1555 = vmatpush1.bf16.msra.mxu1 %v6319_v45  ;;  %1403 = vmatprep.subr.bf16.mxu0 %v6324_v46  ;;  %v7239_v45 = vld [vmem:[%s10004_s1 + $0x10c] ss:$16 sps:$4 sm:$0xff]   ;;  %v6388_v46 = vld [vmem:[%s10003_s2 + $0x128] ss:$16 sps:$4 sm:$0xff]  }
  0x5e   :  { %1556 = vmatprep.subr.bf16.mxu1 %v6327_v47  ;;  %v6391_v47 = vld [vmem:[%s10003_s2 + $0x328] ss:$16 sps:$4 sm:$0xff]  }
  0x60   :  { %1404 = vmatpush1.bf16.msra.mxu0 %v6322_v48  ;;  %v6396_v48 = vld [vmem:[%s10003_s2 + $0x10c] ss:$16 sps:$4 sm:$0xff]  }
  0x61   :  { %1557 = vmatpush1.bf16.msra.mxu1 %v6325_v50  ;;  %1405 = vmatprep.subr.bf16.mxu0 %v6336_v53  ;;  %v6399_v50 = vld [vmem:[%s10003_s2 + $0x30c] ss:$16 sps:$4 sm:$0xff]   ;;  %v6394_v53 = vld [vmem:[%s10003_s2 + $0x108] ss:$16 sps:$4 sm:$0xff]  }
  0x62   :  { %1558 = vmatprep.subr.bf16.mxu1 %v6339_v54  ;;  %1156 = vmatmul.mubr.bf16.gmra.mxu0 %v7074_v52  ;;  %v6397_v54 = vld [vmem:[%s10003_s2 + $0x308] ss:$16 sps:$4 sm:$0xff]  }
  0x63   :  { %1309 = vmatmul.mubr.bf16.gmra.mxu1 %v7085_v55  ;;  %1165 = vmatprep.mubr.bf16.mxu0 %v7090_v56 }
  0x64   :  { %1318 = vmatprep.mubr.bf16.mxu1 %v7095_v57  ;;  %1406 = vmatpush2.bf16.msra.mxu0 %v6334_v58  ;;  %v7266_v58 = vld [vmem:[%s10004_s1 + $0x100] ss:$16 sps:$4 sm:$0xff]  }
  0x65   :  { %1559 = vmatpush2.bf16.msra.mxu1 %v6337_v59  ;;  %1407 = vmatprep.subr.bf16.mxu0 %v6342_v60  ;;  %v7271_v59 = vld [vmem:[%s10004_s1 + $0x108] ss:$16 sps:$4 sm:$0xff]   ;;  %v7276_v60 = vld [vmem:[%s10004_s1 + $0x124] ss:$16 sps:$4 sm:$0xff]  }
  0x66   :  { %1560 = vmatprep.subr.bf16.mxu1 %v6345_v61  ;;  %v7281_v61 = vld [vmem:[%s10004_s1 + $0x12c] ss:$16 sps:$4 sm:$0xff]  }
  0x68   :  { %1408 = vmatpush2.bf16.msra.mxu0 %v6340_v62  ;;  %v6350_v62 = vld [vmem:[%s10004_s1 + $0x120] ss:$16 sps:$4 sm:$0xff]  }
  0x69   :  { %1561 = vmatpush2.bf16.msra.mxu1 %v6343_v63  ;;  %1409 = vmatprep.subr.bf16.mxu0 %v6354_v1  ;;  %v6351_v63 = vld [vmem:[%s10004_s1 + $0x128] ss:$16 sps:$4 sm:$0xff]   ;;  %v6364_v1 = vld [vmem:[%s10004_s1 + $0x144] ss:$16 sps:$4 sm:$0xff]  }
  0x6a   :  { %1562 = vmatprep.subr.bf16.mxu1 %v6357_v2  ;;  %1166 = vmatmul.mubr.bf16.gmra.mxu0 %v7122_v0  ;;  %v6366_v2 = vld [vmem:[%s10004_s1 + $0x14c] ss:$16 sps:$4 sm:$0xff]  }
  0x6b   :  { %1319 = vmatmul.mubr.bf16.gmra.mxu1 %v7133_v3  ;;  %1175 = vmatprep.mubr.bf16.mxu0 %v7138_v8 }
  0x6c   :  { %1328 = vmatprep.mubr.bf16.mxu1 %v7143_v9  ;;  %1410 = vmatpush2.bf16.msra.mxu0 %v6352_v10  ;;  %v6368_v10 = vld [vmem:[%s10004_s1 + $0x140] ss:$16 sps:$4 sm:$0xff]  }
  0x6d   :  { %1563 = vmatpush2.bf16.msra.mxu1 %v6355_v11  ;;  %1411 = vmatprep.subr.bf16.mxu0 %v6360_v12  ;;  %v6369_v11 = vld [vmem:[%s10004_s1 + $0x148] ss:$16 sps:$4 sm:$0xff]   ;;  %v6382_v12 = vld [vmem:[%s10004_s1 + $0x164] ss:$16 sps:$4 sm:$0xff]  }
  0x6e   :  { %1564 = vmatprep.subr.bf16.mxu1 %v6363_v13  ;;  %v6384_v13 = vld [vmem:[%s10004_s1 + $0x16c] ss:$16 sps:$4 sm:$0xff]  }
  0x70   :  { %1412 = vmatpush2.bf16.msra.mxu0 %v6358_v15  ;;  %v6386_v15 = vld [vmem:[%s10004_s1 + $0x160] ss:$16 sps:$4 sm:$0xff]  }
  0x71   :  { %1565 = vmatpush2.bf16.msra.mxu1 %v6361_v16  ;;  %1413 = vmatprep.subr.bf16.mxu0 %v6372_v21  ;;  %v6387_v16 = vld [vmem:[%s10004_s1 + $0x168] ss:$16 sps:$4 sm:$0xff]  }
  0x72   :  { %1566 = vmatprep.subr.bf16.mxu1 %v6375_v22  ;;  %1176 = vmatmul.mubr.bf16.gmra.mxu0 %v7170_v20 }
  0x73   :  { %1329 = vmatmul.mubr.bf16.gmra.mxu1 %v7181_v23  ;;  %1185 = vmatprep.mubr.bf16.mxu0 %v7186_v24 }
  0x74   :  { %1338 = vmatprep.mubr.bf16.mxu1 %v7191_v25  ;;  %1414 = vmatpush2.bf16.msra.mxu0 %v6370_v27 }
  0x75   :  { %1567 = vmatpush2.bf16.msra.mxu1 %v6373_v28  ;;  %1415 = vmatprep.subr.bf16.mxu0 %v6378_v32 }
  0x76   :  { %1568 = vmatprep.subr.bf16.mxu1 %v6381_v33 }
  0x78   :  { %1416 = vmatpush2.bf16.msra.mxu0 %v6376_v34 }
  0x79   :  { %1569 = vmatpush2.bf16.msra.mxu1 %v6379_v35  ;;  %1417 = vmatprep.subr.bf16.mxu0 %v6390_v36 }
  0x7a   :  { %1570 = vmatprep.subr.bf16.mxu1 %v6393_v37  ;;  %1186 = vmatmul.mubr.bf16.gmra.mxu0 %v7224_v39 }
  0x7b   :  { %1339 = vmatmul.mubr.bf16.gmra.mxu1 %v7229_v40  ;;  %1195 = vmatprep.mubr.bf16.mxu0 %v7234_v44 }
  0x7c   :  { %1348 = vmatprep.mubr.bf16.mxu1 %v7239_v45  ;;  %1418 = vmatpush2.bf16.msra.mxu0 %v6388_v46 }
  0x7d   :  { %1571 = vmatpush2.bf16.msra.mxu1 %v6391_v47  ;;  %1419 = vmatprep.subr.bf16.mxu0 %v6396_v48 }
  0x7e   :  { %1572 = vmatprep.subr.bf16.mxu1 %v6399_v50 }
  0x80   :  { %1420 = vmatpush2.bf16.msra.mxu0 %v6394_v53 }
  0x81   :  { %1573 = vmatpush2.bf16.msra.mxu1 %v6397_v54 }
  0x82   :  { %1196 = vmatmul.mubr.bf16.gmra.mxu0 %v7266_v58 }
  0x83   :  { %1349 = vmatmul.mubr.bf16.gmra.mxu1 %v7271_v59  ;;  %1205 = vmatprep.mubr.bf16.mxu0 %v7276_v60 }
  0x84   :  { %1358 = vmatprep.mubr.bf16.mxu1 %v7281_v61 }
  0x8a   :  { %1206 = vmatmul.mubr.bf16.gmra.mxu0 %v6350_v62 }
  0x8b   :  { %1359 = vmatmul.mubr.bf16.gmra.mxu1 %v6351_v63  ;;  %1215 = vmatprep.mubr.bf16.mxu0 %v6364_v1 }
  0x8c   :  { %1368 = vmatprep.mubr.bf16.mxu1 %v6366_v2 }
  0x92   :  { %1216 = vmatmul.mubr.bf16.gmra.mxu0 %v6368_v10 }
  0x93   :  { %1369 = vmatmul.mubr.bf16.gmra.mxu1 %v6369_v11  ;;  %1225 = vmatprep.mubr.bf16.mxu0 %v6382_v12 }
  0x94   :  { %1378 = vmatprep.mubr.bf16.mxu1 %v6384_v13 }
  0x9a   :  { %1226 = vmatmul.mubr.bf16.gmra.mxu0 %v6386_v15 }
  0x9b   :  { %1379 = vmatmul.mubr.bf16.gmra.mxu1 %v6387_v16  ;;  %1421 = vmatprep.mubr.bf16.mxu0 %v6825_v49 }
  0x9c   :  { %1574 = vmatprep.mubr.bf16.mxu1 %v6833_v51 }
  0xa2   :  { %1422 = vmatmul.mubr.bf16.vlgmr.msra.gmra.mxu0 %v6888_v4 }
  0xa3   :  { %1575 = vmatmul.mubr.bf16.vlgmr.msra.gmra.mxu1 %v6893_v5  ;;  %1431 = vmatprep.mubr.bf16.mxu0 %v6898_v6 }
  0xa4   :  { %1584 = vmatprep.mubr.bf16.mxu1 %v6903_v7 }
  0xaa   :  { %1432 = vmatmul.mubr.bf16.gmra.mxu0 %v6930_v14 }
  0xab   :  { %1585 = vmatmul.mubr.bf16.gmra.mxu1 %v6941_v17  ;;  %1441 = vmatprep.mubr.bf16.mxu0 %v6946_v18 }
  0xac   :  { %1594 = vmatprep.mubr.bf16.mxu1 %v6951_v19 }
  0xb2   :  { %1442 = vmatmul.mubr.bf16.gmra.mxu0 %v6978_v26 }
  0xb3   :  { %1595 = vmatmul.mubr.bf16.gmra.mxu1 %v6989_v29  ;;  %1451 = vmatprep.mubr.bf16.mxu0 %v6994_v30 }
  0xb4   :  { %1604 = vmatprep.mubr.bf16.mxu1 %v6999_v31 }
  0xba   :  { %1452 = vmatmul.mubr.bf16.gmra.mxu0 %v7026_v38 }
  0xbb   :  { %1605 = vmatmul.mubr.bf16.gmra.mxu1 %v7037_v41  ;;  %1461 = vmatprep.mubr.bf16.mxu0 %v7042_v42 }
  0xbc   :  { %1614 = vmatprep.mubr.bf16.mxu1 %v7047_v43 }
  0xc2   :  { %1462 = vmatmul.mubr.bf16.gmra.mxu0 %v7074_v52 }
  0xc3   :  { %1615 = vmatmul.mubr.bf16.gmra.mxu1 %v7085_v55  ;;  %1471 = vmatprep.mubr.bf16.mxu0 %v7090_v56 }
  0xc4   :  { %1624 = vmatprep.mubr.bf16.mxu1 %v7095_v57 }
  0xca   :  { %1472 = vmatmul.mubr.bf16.gmra.mxu0 %v7122_v0 }
  0xcb   :  { %1625 = vmatmul.mubr.bf16.gmra.mxu1 %v7133_v3  ;;  %1481 = vmatprep.mubr.bf16.mxu0 %v7138_v8 }
  0xcc   :  { %1634 = vmatprep.mubr.bf16.mxu1 %v7143_v9 }
  0xd2   :  { %1482 = vmatmul.mubr.bf16.gmra.mxu0 %v7170_v20 }
  0xd3   :  { %1635 = vmatmul.mubr.bf16.gmra.mxu1 %v7181_v23  ;;  %1491 = vmatprep.mubr.bf16.mxu0 %v7186_v24 }
  0xd4   :  { %1644 = vmatprep.mubr.bf16.mxu1 %v7191_v25 }
  0xda   :  { %1492 = vmatmul.mubr.bf16.gmra.mxu0 %v7224_v39 }
  0xdb   :  { %1645 = vmatmul.mubr.bf16.gmra.mxu1 %v7229_v40  ;;  %1501 = vmatprep.mubr.bf16.mxu0 %v7234_v44 }
  0xdc   :  { %1654 = vmatprep.mubr.bf16.mxu1 %v7239_v45 }
  0xe2   :  { %1502 = vmatmul.mubr.bf16.gmra.mxu0 %v7266_v58 }
  0xe3   :  { %1655 = vmatmul.mubr.bf16.gmra.mxu1 %v7271_v59  ;;  %1511 = vmatprep.mubr.bf16.mxu0 %v7276_v60 }
  0xe4   :  { %1664 = vmatprep.mubr.bf16.mxu1 %v7281_v61 }
  0xea   :  { %1512 = vmatmul.mubr.bf16.gmra.mxu0 %v6350_v62 }
  0xeb   :  { %1665 = vmatmul.mubr.bf16.gmra.mxu1 %v6351_v63  ;;  %1521 = vmatprep.mubr.bf16.mxu0 %v6364_v1 }
  0xec   :  { %1674 = vmatprep.mubr.bf16.mxu1 %v6366_v2 }
  0xf2   :  { %1522 = vmatmul.mubr.bf16.gmra.mxu0 %v6368_v10 }
  0xf3   :  { %1675 = vmatmul.mubr.bf16.gmra.mxu1 %v6369_v11  ;;  %1531 = vmatprep.mubr.bf16.mxu0 %v6382_v12 }
  0xf4   :  { %1684 = vmatprep.mubr.bf16.mxu1 %v6384_v13 }
  0xfa   :  { %1532 = vmatmul.mubr.bf16.gmra.mxu0 %v6386_v15 }
  0xfb   :  { %1685 = vmatmul.mubr.bf16.gmra.mxu1 %v6387_v16 }
 0x102   :  { %v1117_v49 = vpop.f32.mrf.mxu0 }
 0x103   :  { %v1270_v51 = vpop.f32.mrf.mxu1 }
 0x104   :  { %v7355_v4 = vadd.f32 %v1270_v51, %v1117_v49  ;;  %v1119_v5 = vpop.f32.mrf.mxu0 }
 0x105   :  { %v1272_v6 = vpop.f32.mrf.mxu1 }
 0x106   :  { %10139 = vst [vmem:[#allocation3_spill] sm:$0xff] %v7355_v4  ;;  %v1121_v7 = vpop.f32.mrf.mxu0  ;;  %v7395_v60 = vadd.f32 %v1272_v6, %v1119_v5  ;;  %v1816_v13 = vmul.f32 %v7355_v4, %v7355_v4 }
 0x107   :  { %v1274_v14 = vpop.f32.mrf.mxu1 }
 0x108   :  { %v7357_v17 = vadd.f32 %v1274_v14, %v1121_v7  ;;  %v1123_v18 = vpop.f32.mrf.mxu0  ;;  %v1817_v16 = vmul.f32 %v7395_v60, %v7395_v60 }
 0x109   :  { %v1276_v19 = vpop.f32.mrf.mxu1 }
 0x10a   :  { %10140 = vst [vmem:[#allocation4_spill] sm:$0xff] %v7357_v17  ;;  %v1127_v26 = vpop.f32.mrf.mxu0  ;;  %v7389_v54 = vadd.f32 %v1276_v19, %v1123_v18  ;;  %v1820_v1 = vmul.f32 %v7357_v17, %v7357_v17  ;;  %v1695_v49 = vadd.f32 %v7357_v17, %v7355_v4 }
 0x10b   :  { %v1280_v29 = vpop.f32.mrf.mxu1 }
 0x10c   :  { %v7359_v30 = vadd.f32 %v1280_v29, %v1127_v26  ;;  %v1129_v31 = vpop.f32.mrf.mxu0  ;;  %v1821_v2 = vmul.f32 %v7389_v54, %v7389_v54  ;;  %v1912_v14 = vadd.f32 %v1820_v1, %v1816_v13  ;;  %v1724_v18 = vadd.f32 %v7389_v54, %v7395_v60 }
 0x10d   :  { %v1282_v38 = vpop.f32.mrf.mxu1 }
 0x10e   :  { %10141 = vst [vmem:[#allocation5_spill] sm:$0xff] %v7359_v30  ;;  %v1131_v41 = vpop.f32.mrf.mxu0  ;;  %v7397_v61 = vadd.f32 %v1282_v38, %v1129_v31  ;;  %v1824_v15 = vmul.f32 %v7359_v30, %v7359_v30  ;;  %v1941_v29 = vadd.f32 %v1821_v2, %v1817_v16  ;;  %v1696_v31 = vadd.f32 %v1695_v49, %v7359_v30 }
 0x10f   :  { %v1284_v42 = vpop.f32.mrf.mxu1 }
 0x110   :  { %v7361_v43 = vadd.f32 %v1284_v42, %v1131_v41  ;;  %v1133_v52 = vpop.f32.mrf.mxu0  ;;  %v1825_v51 = vmul.f32 %v7397_v61, %v7397_v61 }
 0x111   :  { %v1286_v55 = vpop.f32.mrf.mxu1 }
 0x112   :  { %10142 = vst [vmem:[#allocation6_spill] sm:$0xff] %v7361_v43  ;;  %v1137_v56 = vpop.f32.mrf.mxu0  ;;  %v7407_v10 = vadd.f32 %v1286_v55, %v1133_v52  ;;  %v1828_v19 = vmul.f32 %v7361_v43, %v7361_v43  ;;  %v1913_v55 = vadd.f32 %v1912_v14, %v1824_v15 }
 0x113   :  { %v1290_v57 = vpop.f32.mrf.mxu1 }
 0x114   :  { %v7363_v0 = vadd.f32 %v1290_v57, %v1137_v56  ;;  %v1139_v3 = vpop.f32.mrf.mxu0  ;;  %v1829_v38 = vmul.f32 %v7407_v10, %v7407_v10  ;;  %v1725_v56 = vadd.f32 %v1724_v18, %v7397_v61  ;;  %v1914_v2 = vadd.f32 %v1913_v55, %v1828_v19 }
 0x115   :  { %v1292_v8 = vpop.f32.mrf.mxu1 }
 0x116   :  { %10143 = vst [vmem:[#allocation7_spill] sm:$0xff] %v7363_v0  ;;  %v1141_v9 = vpop.f32.mrf.mxu0  ;;  %v7423_v5 = vadd.f32 %v1292_v8, %v1139_v3  ;;  %v1832_v57 = vmul.f32 %v7363_v0, %v7363_v0  ;;  %v1942_v8 = vadd.f32 %v1941_v29, %v1825_v51  ;;  %v1726_v13 = vadd.f32 %v1725_v56, %v7407_v10 }
 0x117   :  { %v1294_v20 = vpop.f32.mrf.mxu1 }
 0x118   :  { %v1143_v21 = vpop.f32.mrf.mxu0  ;;  %v7433_v26 = vadd.f32 %v1294_v20, %v1141_v9  ;;  %v1697_v9 = vadd.f32 %v1696_v31, %v7361_v43  ;;  %v1833_v20 = vmul.f32 %v7423_v5, %v7423_v5  ;;  %v1915_v14 = vadd.f32 %v1914_v2, %v1832_v57 }
 0x119   :  { %v1296_v22 = vpop.f32.mrf.mxu1  ;;  %v1727_v18 = vadd.f32 %v1726_v13, %v7423_v5 }
 0x11a   :  { %v1147_v23 = vpop.f32.mrf.mxu0  ;;  %10144 = vst [vmem:[#allocation8_spill] sm:$0xff] %v7433_v26  ;;  %v7438_v41 = vadd.f32 %v1296_v22, %v1143_v21  ;;  %v1836_v15 = vmul.f32 %v7433_v26, %v7433_v26  ;;  %v1698_v16 = vadd.f32 %v1697_v9, %v7363_v0 }
 0x11b   :  { %v1300_v24 = vpop.f32.mrf.mxu1 }
 0x11c   :  { %v1149_v25 = vpop.f32.mrf.mxu0  ;;  %v7447_v3 = vadd.f32 %v1300_v24, %v1147_v23  ;;  %v1943_v24 = vadd.f32 %v1942_v8, %v1829_v38  ;;  %v1837_v49 = vmul.f32 %v7438_v41, %v7438_v41  ;;  %v1699_v29 = vadd.f32 %v1698_v16, %v7433_v26 }
 0x11d   :  { %v1302_v27 = vpop.f32.mrf.mxu1  ;;  %v1916_v55 = vadd.f32 %v1915_v14, %v1836_v15  ;;  %v1728_v56 = vadd.f32 %v1727_v18, %v7438_v41 }
 0x11e   :  { %v1151_v28 = vpop.f32.mrf.mxu0  ;;  %10145 = vst [vmem:[#allocation9_spill] sm:$0xff] %v7447_v3  ;;  %v7452_v21 = vadd.f32 %v1302_v27, %v1149_v25  ;;  %v1840_v19 = vmul.f32 %v7447_v3, %v7447_v3  ;;  %v1700_v8 = vadd.f32 %v1699_v29, %v7447_v3 }
 0x11f   :  { %v1304_v32 = vpop.f32.mrf.mxu1 }
 0x120   :  { %v1153_v33 = vpop.f32.mrf.mxu0  ;;  %v7461_v23 = vadd.f32 %v1304_v32, %v1151_v28  ;;  %v1944_v32 = vadd.f32 %v1943_v24, %v1833_v20  ;;  %v1917_v2 = vadd.f32 %v1916_v55, %v1840_v19  ;;  %v1729_v13 = vadd.f32 %v1728_v56, %v7452_v21 }
 0x121   :  { %v1306_v34 = vpop.f32.mrf.mxu1 }
 0x122   :  { %v7365_v35 = vpop.f32.mrf.mxu0  ;;  %10146 = vst [vmem:[#allocation10_spill] sm:$0xff] %v7461_v23  ;;  %v7466_v25 = vadd.f32 %v1306_v34, %v1153_v33  ;;  %v1841_v33 = vmul.f32 %v7452_v21, %v7452_v21  ;;  %v1945_v57 = vadd.f32 %v1944_v32, %v1837_v49  ;;  %v1701_v24 = vadd.f32 %v1700_v8, %v7461_v23 }
 0x123   :  { %v7367_v36 = vpop.f32.mrf.mxu1 }
 0x124   :  { %v7369_v37 = vpop.f32.mrf.mxu0  ;;  %10147 = vst [vmem:[#allocation11_spill] sm:$0xff] %v7466_v25  ;;  %v7477_v28 = vadd.f32 %v7367_v36, %v7365_v35  ;;  %v1844_v35 = vmul.f32 %v7461_v23, %v7461_v23  ;;  %v1730_v18 = vadd.f32 %v1729_v13, %v7466_v25 }
 0x125   :  { %v7371_v39 = vpop.f32.mrf.mxu1 }
 0x126   :  { %v7373_v40 = vpop.f32.mrf.mxu0  ;;  %10148 = vst [vmem:[#allocation12_spill] sm:$0xff] %v7477_v28  ;;  %v7484_v34 = vadd.f32 %v7371_v39, %v7369_v37  ;;  %v1845_v37 = vmul.f32 %v7466_v25, %v7466_v25  ;;  %v1848_v15 = vmul.f32 %v7477_v28, %v7477_v28  ;;  %v1918_v14 = vadd.f32 %v1917_v2, %v1844_v35 }
 0x127   :  { %v7375_v44 = vpop.f32.mrf.mxu1  ;;  %v1702_v32 = vadd.f32 %v1701_v24, %v7477_v28 }
 0x128   :  { %v7377_v45 = vpop.f32.mrf.mxu0  ;;  %10149 = vst [vmem:[#allocation13_spill] sm:$0xff] %v7484_v34  ;;  %v7493_v36 = vadd.f32 %v7375_v44, %v7373_v40  ;;  %v1946_v44 = vadd.f32 %v1945_v57, %v1841_v33  ;;  %v1849_v16 = vmul.f32 %v7484_v34, %v7484_v34  ;;  %v1919_v55 = vadd.f32 %v1918_v14, %v1848_v15 }
 0x129   :  { %v7379_v46 = vpop.f32.mrf.mxu1  ;;  %v1731_v56 = vadd.f32 %v1730_v18, %v7484_v34 }
 0x12a   :  { %v7381_v47 = vpop.f32.mrf.mxu0  ;;  %10150 = vst [vmem:[#allocation14_spill] sm:$0xff] %v7493_v36  ;;  %v7500_v39 = vadd.f32 %v7379_v46, %v7377_v45  ;;  %v1852_v19 = vmul.f32 %v7493_v36, %v7493_v36  ;;  %v1703_v57 = vadd.f32 %v1702_v32, %v7493_v36 }
 0x12b   :  { %v7383_v48 = vpop.f32.mrf.mxu1 }
 0x12c   :  { %v7385_v50 = vpop.f32.mrf.mxu0  ;;  %10151 = vst [vmem:[#allocation15_spill] sm:$0xff] %v7500_v39  ;;  %v7507_v40 = vadd.f32 %v7383_v48, %v7381_v47  ;;  %v1947_v48 = vadd.f32 %v1946_v44, %v1845_v37  ;;  %v1853_v29 = vmul.f32 %v7500_v39, %v7500_v39  ;;  %v1920_v2 = vadd.f32 %v1919_v55, %v1852_v19 }
 0x12d   :  { %v7387_v53 = vpop.f32.mrf.mxu1  ;;  %v1732_v13 = vadd.f32 %v1731_v56, %v7500_v39 }
 0x12e   :  { %v7391_v58 = vpop.f32.mrf.mxu0  ;;  %10152 = vst [vmem:[#allocation16_spill] sm:$0xff] %v7507_v40  ;;  %v7514_v45 = vadd.f32 %v7387_v53, %v7385_v50  ;;  %v1856_v35 = vmul.f32 %v7507_v40, %v7507_v40  ;;  %v1704_v44 = vadd.f32 %v1703_v57, %v7507_v40 }
 0x12f   :  { %v7393_v59 = vpop.f32.mrf.mxu1 }
 0x130   :  { %v7399_v62 = vpop.f32.mrf.mxu0  ;;  %10153 = vst [vmem:[#allocation17_spill] sm:$0xff] %v7514_v45  ;;  %v7521_v47 = vadd.f32 %v7393_v59, %v7391_v58  ;;  %v1948_v59 = vadd.f32 %v1947_v48, %v1849_v16  ;;  %v1857_v8 = vmul.f32 %v7514_v45, %v7514_v45  ;;  %v1921_v14 = vadd.f32 %v1920_v2, %v1856_v35 }
 0x131   :  { %v7401_v63 = vpop.f32.mrf.mxu1 }
 0x132   :  { %v7409_v11 = vpop.f32.mrf.mxu0  ;;  %10154 = vst [vmem:[#allocation18_spill] sm:$0xff] %v7521_v47  ;;  %v7528_v50 = vadd.f32 %v7401_v63, %v7399_v62  ;;  %v1860_v15 = vmul.f32 %v7521_v47, %v7521_v47  ;;  %v1705_v48 = vadd.f32 %v1704_v44, %v7521_v47 }
 0x133   :  { %v7411_v12 = vpop.f32.mrf.mxu1 }
 0x134   :  { %v7425_v6 = vpop.f32.mrf.mxu0  ;;  %10155 = vst [vmem:[#allocation19_spill] sm:$0xff] %v7528_v50  ;;  %v7535_v58 = vadd.f32 %v7411_v12, %v7409_v11  ;;  %v1949_v12 = vadd.f32 %v1948_v59, %v1853_v29  ;;  %v1861_v24 = vmul.f32 %v7528_v50, %v7528_v50  ;;  %v1922_v29 = vadd.f32 %v1921_v14, %v1860_v15 }
 0x135   :  { %v7427_v7 = vpop.f32.mrf.mxu1 }
 0x136   :  { %v7440_v42 = vpop.f32.mrf.mxu0  ;;  %10156 = vst [vmem:[#allocation20_spill] sm:$0xff] %v7535_v58  ;;  %v7542_v62 = vadd.f32 %v7427_v7, %v7425_v6  ;;  %v1864_v18 = vmul.f32 %v7535_v58, %v7535_v58  ;;  %v1950_v19 = vadd.f32 %v1949_v12, %v1857_v8  ;;  %v1706_v59 = vadd.f32 %v1705_v48, %v7535_v58 }
 0x137   :  { %v7442_v52 = vpop.f32.mrf.mxu1 }
 0x138   :  { %v7454_v22 = vpop.f32.mrf.mxu0  ;;  %10157 = vst [vmem:[#allocation21_spill] sm:$0xff] %v7542_v62  ;;  %v7549_v11 = vadd.f32 %v7442_v52, %v7440_v42  ;;  %v1733_v52 = vadd.f32 %v1732_v13, %v7514_v45  ;;  %v1865_v32 = vmul.f32 %v7542_v62, %v7542_v62  ;;  %v1923_v13 = vadd.f32 %v1922_v29, %v1864_v18 }
 0x139   :  { %v7456_v1 = vpop.f32.mrf.mxu1 }
 0x13a   :  { %v7468_v27 = vpop.f32.mrf.mxu0  ;;  %10158 = vst [vmem:[#allocation22_spill] sm:$0xff] %v7549_v11  ;;  %v7556_v6 = vadd.f32 %v7456_v1, %v7454_v22  ;;  %v1868_v55 = vmul.f32 %v7549_v11, %v7549_v11 }
 0x13b   :  { %v7470_v51 = vpop.f32.mrf.mxu1 }
 0x13c   :  { %v7486_v31 = vpop.f32.mrf.mxu0  ;;  %10159 = vst [vmem:[#allocation23_spill] sm:$0xff] %v7556_v6  ;;  %v7562_v42 = vadd.f32 %v7470_v51, %v7468_v27  ;;  %v1734_v27 = vadd.f32 %v1733_v52, %v7528_v50  ;;  %v1951_v51 = vadd.f32 %v1950_v19, %v1861_v24  ;;  %v1869_v57 = vmul.f32 %v7556_v6, %v7556_v6 }
 0x13d   :  { %v1342_v38 = vpop.f32.mrf.mxu1  ;;  %v1924_v14 = vadd.f32 %v1923_v13, %v1868_v55 }
 0x13e   :  { %v1191_v9 = vpop.f32.mrf.mxu0  ;;  %10160 = vst [vmem:[#allocation24_spill] sm:$0xff] %v7562_v42  ;;  %v7571_v56 = vadd.f32 %v1342_v38, %v7486_v31  ;;  %v1872_v15 = vmul.f32 %v7562_v42, %v7562_v42  ;;  %v1735_v38 = vadd.f32 %v1734_v27, %v7542_v62 }
 0x13f   :  { %v1344_v20 = vpop.f32.mrf.mxu1 }
 0x140   :  { %v1193_v46 = vpop.f32.mrf.mxu0  ;;  %10161 = vst [vmem:[#allocation25_spill] sm:$0xff] %v7571_v56  ;;  %v7573_v35 = vadd.f32 %v1344_v20, %v1191_v9  ;;  %v1952_v9 = vadd.f32 %v1951_v51, %v1865_v32  ;;  %v1707_v20 = vadd.f32 %v1706_v59, %v7549_v11  ;;  %v1873_v52 = vmul.f32 %v7571_v56, %v7571_v56 }
 0x141   :  { %v1346_v49 = vpop.f32.mrf.mxu1  ;;  %v1925_v29 = vadd.f32 %v1924_v14, %v1872_v15 }
 0x142   :  { %v1197_v53 = vpop.f32.mrf.mxu0  ;;  %10162 = vst [vmem:[#allocation26_spill] sm:$0xff] %v7573_v35  ;;  %v7581_v12 = vadd.f32 %v1346_v49, %v1193_v46  ;;  %v1876_v18 = vmul.f32 %v7573_v35, %v7573_v35  ;;  %v1736_v46 = vadd.f32 %v1735_v38, %v7556_v6  ;;  %v1953_v49 = vadd.f32 %v1952_v9, %v1869_v57 }
 0x143   :  { %v1350_v33 = vpop.f32.mrf.mxu1  ;;  %v1708_v32 = vadd.f32 %v1707_v20, %v7562_v42 }
 0x144   :  { %v1199_v63 = vpop.f32.mrf.mxu0  ;;  %10163 = vst [vmem:[#allocation27_spill] sm:$0xff] %v7581_v12  ;;  %v7583_v31 = vadd.f32 %v1350_v33, %v1197_v53  ;;  %v1877_v55 = vmul.f32 %v7581_v12, %v7581_v12  ;;  %v1737_v51 = vadd.f32 %v1736_v46, %v7571_v56  ;;  %v1926_v13 = vadd.f32 %v1925_v29, %v1876_v18 }
 0x145   :  { %v1352_v37 = vpop.f32.mrf.mxu1  ;;  %v1709_v57 = vadd.f32 %v1708_v32, %v7573_v35 }
 0x146   :  { %v1201_v7 = vpop.f32.mrf.mxu0  ;;  %v7591_v19 = vadd.f32 %v1352_v37, %v1199_v63  ;;  %v1880_v27 = vmul.f32 %v7583_v31, %v7583_v31 }
 0x147   :  { %v1354_v16 = vpop.f32.mrf.mxu1  ;;  %v1710_v14 = vadd.f32 %v1709_v57, %v7583_v31 }
 0x148   :  { %v1203_v22 = vpop.f32.mrf.mxu0  ;;  %v7594_v53 = vadd.f32 %v1354_v16, %v1201_v7  ;;  %v1954_v16 = vadd.f32 %v1953_v49, %v1873_v52  ;;  %v1881_v15 = vmul.f32 %v7591_v19, %v7591_v19  ;;  %v1927_v52 = vadd.f32 %v1926_v13, %v1880_v27 }
 0x149   :  { %v1356_v1 = vpop.f32.mrf.mxu1 }
 0x14a   :  { %v1207_v8 = vpop.f32.mrf.mxu0  ;;  %v7602_v63 = vadd.f32 %v1356_v1, %v1203_v22  ;;  %v1884_v38 = vmul.f32 %v7594_v53, %v7594_v53  ;;  %v1711_v29 = vadd.f32 %v1710_v14, %v7594_v53 }
 0x14b   :  { %v1360_v2 = vpop.f32.mrf.mxu1 }
 0x14c   :  { %v1209_v44 = vpop.f32.mrf.mxu0  ;;  %v7604_v37 = vadd.f32 %v1360_v2, %v1207_v8  ;;  %v1738_v8 = vadd.f32 %v1737_v51, %v7581_v12  ;;  %v1955_v2 = vadd.f32 %v1954_v16, %v1877_v55  ;;  %v1885_v18 = vmul.f32 %v7602_v63, %v7602_v63 }
 0x14d   :  { %v1362_v24 = vpop.f32.mrf.mxu1  ;;  %v1928_v55 = vadd.f32 %v1927_v52, %v1884_v38 }
 0x14e   :  { %v1211_v33 = vpop.f32.mrf.mxu0  ;;  %v7611_v9 = vadd.f32 %v1362_v24, %v1209_v44  ;;  %v1888_v46 = vmul.f32 %v7604_v37, %v7604_v37  ;;  %v1956_v32 = vadd.f32 %v1955_v2, %v1881_v15  ;;  %v1712_v13 = vadd.f32 %v1711_v29, %v7604_v37 }
 0x14f   :  { %v1364_v48 = vpop.f32.mrf.mxu1 }
 0x150   :  { %v1213_v59 = vpop.f32.mrf.mxu0  ;;  %v7613_v20 = vadd.f32 %v1364_v48, %v1211_v33  ;;  %v1739_v48 = vadd.f32 %v1738_v8, %v7591_v19  ;;  %v1889_v27 = vmul.f32 %v7611_v9, %v7611_v9  ;;  %v1957_v15 = vadd.f32 %v1956_v32, %v1885_v18 }
 0x151   :  { %v1366_v7 = vpop.f32.mrf.mxu1 }
 0x152   :  { %v1217_v22 = vpop.f32.mrf.mxu0  ;;  %v7621_v49 = vadd.f32 %v1366_v7, %v1213_v59  ;;  %v1892_v51 = vmul.f32 %v7613_v20, %v7613_v20  ;;  %v1740_v57 = vadd.f32 %v1739_v48, %v7602_v63  ;;  %v1958_v48 = vadd.f32 %v1957_v15, %v1889_v27 }
 0x153   :  { %v1370_v1 = vpop.f32.mrf.mxu1 }
 0x154   :  { %v7623_v44 = vadd.f32 %v1370_v1, %v1217_v22  ;;  %v1219_v24 = vpop.f32.mrf.mxu0  ;;  %v1929_v1 = vadd.f32 %v1928_v55, %v1888_v46  ;;  %v1893_v38 = vmul.f32 %v7621_v49, %v7621_v49  ;;  %v1741_v52 = vadd.f32 %v1740_v57, %v7611_v9 }
 0x155   :  { %v1372_v33 = vpop.f32.mrf.mxu1 }
 0x156   :  { %v7631_v16 = vadd.f32 %v1372_v33, %v1219_v24  ;;  %v1221_v59 = vpop.f32.mrf.mxu0  ;;  %v1896_v8 = vmul.f32 %v7623_v44, %v7623_v44  ;;  %v1713_v24 = vadd.f32 %v1712_v13, %v7613_v20  ;;  %v1930_v29 = vadd.f32 %v1929_v1, %v1892_v51 }
 0x157   :  { %v1374_v7 = vpop.f32.mrf.mxu1  ;;  %v1959_v57 = vadd.f32 %v1958_v48, %v1893_v38 }
 0x158   :  { %v7635_v22 = vadd.f32 %v1374_v7, %v1221_v59  ;;  %v1223_v2 = vpop.f32.mrf.mxu0  ;;  %v1897_v18 = vmul.f32 %v7631_v16, %v7631_v16  ;;  %v1742_v59 = vadd.f32 %v1741_v52, %v7621_v49  ;;  %v1714_v7 = vadd.f32 %v1713_v24, %v7623_v44 }
 0x159   :  { %v1376_v14 = vpop.f32.mrf.mxu1  ;;  %v1931_v13 = vadd.f32 %v1930_v29, %v1896_v8 }
 0x15a   :  { %v7643_v33 = vadd.f32 %v1376_v14, %v1223_v2  ;;  %v1900_v46 = vmul.f32 %v7635_v22, %v7635_v22  ;;  %v1227_v32 = vpop.f32.mrf.mxu0  ;;  %v1743_v1 = vadd.f32 %v1742_v59, %v7631_v16  ;;  %v1715_v2 = vadd.f32 %v1714_v7, %v7635_v22 }
 0x15b   :  { %v1380_v55 = vpop.f32.mrf.mxu1  ;;  %v1960_v52 = vadd.f32 %v1959_v57, %v1897_v18 }
 0x15c   :  { %v7651_v35 = vadd.f32 %v1380_v55, %v1227_v32  ;;  %v1901_v27 = vmul.f32 %v7643_v33, %v7643_v33  ;;  %v1229_v51 = vpop.f32.mrf.mxu0  ;;  %v1932_v24 = vadd.f32 %v1931_v13, %v1900_v46  ;;  %v1744_v38 = vadd.f32 %v1743_v1, %v7643_v33 }
 0x15d   :  { %v1382_v15 = vpop.f32.mrf.mxu1 }
 0x15e   :  { %v1904_v14 = vmul.f32 %v7651_v35, %v7651_v35  ;;  %v7659_v42 = vadd.f32 %v1382_v15, %v1229_v51  ;;  %v1231_v32 = vpop.f32.mrf.mxu0  ;;  %v1716_v8 = vadd.f32 %v1715_v2, %v7651_v35  ;;  %v1961_v59 = vadd.f32 %v1960_v52, %v1901_v27 }
 0x15f   :  { %v1384_v55 = vpop.f32.mrf.mxu1 }
 0x160   :  { %v1905_v48 = vmul.f32 %v7659_v42, %v7659_v42  ;;  %v7665_v29 = vadd.f32 %v1384_v55, %v1231_v32  ;;  %v1933_v7 = vadd.f32 %v1932_v24, %v1904_v14  ;;  %v1233_v11 = vpop.f32.mrf.mxu0  ;;  %v1745_v51 = vadd.f32 %v1744_v38, %v7659_v42 }
 0x161   :  { %v1386_v58 = vpop.f32.mrf.mxu1  ;;  %v10025_v14 = vlaneseq }
 0x162   :  { %v1717_v18 = vadd.f32 %v1716_v8, %v7665_v29  ;;  %v1908_v46 = vmul.f32 %v7665_v29, %v7665_v29  ;;  %v7671_v57 = vadd.f32 %v1386_v58, %v1233_v11  ;;  %v1962_v13 = vadd.f32 %v1961_v59, %v1905_v48  ;;  %v1423_v15 = vpop.f32.mrf.mxu0 }
 0x163   :  { %v1576_v1 = vpop.f32.mrf.mxu1 }
 0x164   :  { %v1718_v2 = vrot.slane %v1717_v18, 4  ;;  %v1934_v47 = vadd.f32 %v1933_v7, %v1908_v46  ;;  %v1746_v32 = vadd.f32 %v1745_v51, %v7671_v57  ;;  %v1909_v27 = vmul.f32 %v7671_v57, %v7671_v57  ;;  %v1425_v24 = vpop.f32.mrf.mxu0 }
 0x165   :  { %v7676_v52 = vadd.f32 %v1576_v1, %v1423_v15  ;;  %v1578_v55 = vpop.f32.mrf.mxu1  ;;  %v7679_v51 = vshrl.u32 %v10025_v14, 7 }
 0x166   :  { %v1719_v38 = vadd.f32 %v1718_v2, %v1717_v18  ;;  %v1935_v8 = vrot.slane %v1934_v47, 4  ;;  %v1747_v40 = vrot.slane %v1746_v32, 4  ;;  %v1963_v58 = vadd.f32 %v1962_v13, %v1909_v27  ;;  %v1427_v11 = vpop.f32.mrf.mxu0 }
 0x167   :  { %10164 = vst [vmem:[#allocation28_spill] sm:$0xff] %v7676_v52  ;;  %v1580_v48 = vpop.f32.mrf.mxu1  ;;  %10165 = vst [vmem:[#allocation29_spill] sm:$0xff] %v7679_v51  ;;  %v7700_v17 = vadd.f32 %v1578_v55, %v1425_v24 }
 0x168   :  { %v1720_v59 = vrot.slane %v1719_v38, 2  ;;  %v1936_v36 = vadd.f32 %v1935_v8, %v1934_v47  ;;  %v1748_v28 = vadd.f32 %v1747_v40, %v1746_v32  ;;  %v1964_v7 = vrot.slane %v1963_v58, 4  ;;  %v1429_v23 = vpop.f32.mrf.mxu0 }
 0x169   :  { %v7681_v46 = vadd.f32 %v1580_v48, %v1427_v11  ;;  %v1582_v15 = vpop.f32.mrf.mxu1  ;;  %v7684_v40 = vsub.s32 0, %v7679_v51  ;;  %10169 = vst [vmem:[#allocation33_spill] sm:$0xff] %v7700_v17 }
 0x16a   :  { %v1721_v1 = vadd.f32 %v1720_v59, %v1719_v38  ;;  %v1937_v3 = vrot.slane %v1936_v36, 2  ;;  %v1749_v26 = vrot.slane %v1748_v28, 2  ;;  %v1965_v18 = vadd.f32 %v1964_v7, %v1963_v58  ;;  %v1433_v2 = vpop.f32.mrf.mxu0  ;;  %v2244_v38 = vld [vmem:[%s10005_s3] sm:$0xf] }
 0x16b   :  { %10166 = vst [vmem:[#allocation30_spill] sm:$0xff] %v7681_v46  ;;  %v1586_v0 = vpop.f32.mrf.mxu1  ;;  %10167 = vst [vmem:[#allocation31_spill] sm:$0xff] %v7684_v40  ;;  %v7690_v58 = vsub.s32 1, %v7679_v51  ;;  %v7698_v14 = vrot.slane %v2244_v38, %v7684_v40 }
 0x16c   :  { %v1722_v13 = vrot.slane %v1721_v1, 1  ;;  %v1938_v27 = vadd.f32 %v1937_v3, %v1936_v36  ;;  %v1750_v43 = vadd.f32 %v1749_v26, %v1748_v28  ;;  %v1966_v30 = vrot.slane %v1965_v18, 2  ;;  %v1435_v47 = vpop.f32.mrf.mxu0  ;;  %v2362_v36 = vld [vmem:[%s10006_s4] sm:$0xf] }
 0x16d   :  { %v1588_v32 = vpop.f32.mrf.mxu1  ;;  %10168 = vst [vmem:[#allocation32_spill] sm:$0xff] %v7690_v58  ;;  %v7714_v12 = vrot.slane %v2244_v38, %v7690_v58 }
 0x16e   :  { %v1723_v8 = vadd.f32 %v1722_v13, %v1721_v1  ;;  %v1939_v11 = vrot.slane %v1938_v27, 1  ;;  %v1751_v48 = vrot.slane %v1750_v43, 1  ;;  %v1967_v59 = vadd.f32 %v1966_v30, %v1965_v18  ;;  %v1437_v7 = vpop.f32.mrf.mxu0 }
 0x16f   :  { %v1590_v3 = vpop.f32.mrf.mxu1  ;;  %v7702_v30 = vadd.f32 %v1582_v15, %v1429_v23  ;;  %10173 = vst [vmem:[#allocation37_spill] sm:$0xff] %v7714_v12  ;;  %v1822_v23 = vmul.f32 %v7681_v46, %v7681_v46 }
 0x170   :  { %v7692_v26 = vmul.f32 0.0052083335, %v1723_v8  ;;  %v1940_v28 = vadd.f32 %v1939_v11, %v1938_v27  ;;  %v1752_v1 = vadd.f32 %v1751_v48, %v1750_v43  ;;  %v1968_v13 = vrot.slane %v1967_v59, 1  ;;  %v1439_v18 = vpop.f32.mrf.mxu0 }
 0x171   :  { %10170 = vst [vmem:[#allocation34_spill] sm:$0xff] %v7702_v30  ;;  %v1592_v51 = vpop.f32.mrf.mxu1  ;;  %v7708_v11 = vadd.f32 %v1586_v0, %v1433_v2  ;;  %v7711_v43 = vrot.slane %v2362_v36, %v7684_v40  ;;  %v7723_v0 = vadd.f32 %v1588_v32, %v1435_v47  ;;  %v1823_v38 = vmul.f32 %v7702_v30, %v7702_v30 }
 0x172   :  { %v2028_v4 = vmul.f32 0.0052083335, %v1940_v28  ;;  %v2032_v8 = vmul.f32 %v7692_v26, %v7692_v26  ;;  %v7706_v27 = vmul.f32 0.0052083335, %v1752_v1  ;;  %v1969_v48 = vadd.f32 %v1968_v13, %v1967_v59  ;;  %v1443_v24 = vpop.f32.mrf.mxu0 }
 0x173   :  { %10171 = vst [vmem:[#allocation35_spill] sm:$0xff] %v7708_v11  ;;  %10172 = vst [vmem:[#allocation36_spill] sm:$0xff] %v7711_v43  ;;  %v1596_v55 = vpop.f32.mrf.mxu1  ;;  %v7721_v1 = vrot.slane %v2362_v36, %v7690_v58  ;;  %v1818_v59 = vmul.f32 %v7676_v52, %v7676_v52  ;;  %v7729_v13 = vadd.f32 %v1590_v3, %v1437_v7 }
 0x174   :  { %v2036_v15 = vsub.f32 %v2028_v4, %v2032_v8  ;;  %v2033_v28 = vmul.f32 %v7706_v27, %v7706_v27  ;;  %10175 = vst [vmem:[#allocation39_spill] sm:$0xff] %v7723_v0  ;;  %v2029_v2 = vmul.f32 0.0052083335, %v1969_v48  ;;  %v1445_v40 = vpop.f32.mrf.mxu0  ;;  %v1819_v8 = vmul.f32 %v7700_v17, %v7700_v17 }
 0x175   :  { %10174 = vst [vmem:[#allocation38_spill] sm:$0xff] %v7721_v1  ;;  %10176 = vst [vmem:[#allocation40_spill] sm:$0xff] %v7729_v13  ;;  %v1598_v56 = vpop.f32.mrf.mxu1  ;;  %v1826_v36 = vmul.f32 %v7708_v11, %v7708_v11  ;;  %v7735_v47 = vadd.f32 %v1592_v51, %v1439_v18  ;;  %v1753_v48 = vadd.f32 %v7681_v46, %v7676_v52 }
 0x176   :  { %v2040_v4 = vmax.f32 %v2036_v15, 0.0  ;;  %v2037_v32 = vsub.f32 %v2029_v2, %v2033_v28  ;;  %v1970_v58 = vadd.f32 %v1822_v23, %v1818_v59  ;;  %v1782_v7 = vadd.f32 %v7702_v30, %v7700_v17  ;;  %v1447_v3 = vpop.f32.mrf.mxu0 }
 0x177   :  { %10177 = vst [vmem:[#allocation41_spill] sm:$0xff] %v7735_v47  ;;  %v1600_v1 = vpop.f32.mrf.mxu1  ;;  %v1827_v15 = vmul.f32 %v7723_v0, %v7723_v0  ;;  %v7743_v6 = vadd.f32 %v1596_v55, %v1443_v24  ;;  %v7745_v12 = vadd.f32 %v1598_v56, %v1445_v40  ;;  %v1999_v18 = vadd.f32 %v1823_v38, %v1819_v8 }
 0x178   :  { %v2140_v43 = vadd.f32 1e-05, %v2040_v4  ;;  %v2041_v51 = vmax.f32 %v2037_v32, 0.0  ;;  %v1754_v28 = vadd.f32 %v1753_v48, %v7708_v11  ;;  %v1830_v23 = vmul.f32 %v7729_v13, %v7729_v13  ;;  %v1449_v2 = vpop.f32.mrf.mxu0 }
 0x179   :  { %10178 = vst [vmem:[#allocation42_spill] sm:$0xff] %v7743_v6  ;;  %10179 = vst [vmem:[#allocation43_spill] sm:$0xff] %v7745_v12  ;;  %v1602_v59 = vpop.f32.mrf.mxu1  ;;  %v1971_v46 = vadd.f32 %v1970_v58, %v1826_v36  ;;  %v1831_v4 = vmul.f32 %v7735_v47, %v7735_v47  ;;  %v7752_v52 = vadd.f32 %v1600_v1, %v1447_v3 }
 0x17a   :  { %6592 = vrsqrt.f32 %v2140_v43  ;;  %v2141_v40 = vadd.f32 1e-05, %v2041_v51  ;;  %v1783_v24 = vadd.f32 %v1782_v7, %v7723_v0  ;;  %v7757_v55 = vadd.f32 %v1602_v59, %v1449_v2  ;;  %v1453_v38 = vpop.f32.mrf.mxu0 }
 0x17b   :  { %10180 = vst [vmem:[#allocation44_spill] sm:$0xff] %v7752_v52  ;;  %v1606_v8 = vpop.f32.mrf.mxu1  ;;  %v2000_v32 = vadd.f32 %v1999_v18, %v1827_v15  ;;  %v1755_v48 = vadd.f32 %v1754_v28, %v7729_v13  ;;  %v1834_v58 = vmul.f32 %v7743_v6, %v7743_v6  ;;  %v1835_v43 = vmul.f32 %v7745_v12, %v7745_v12  ;;  %v10194_v13 = vld [vmem:[#allocation36_spill] sm:$0xff] }
 0x17c   :  { %10181 = vst [vmem:[#allocation45_spill] sm:$0xff] %v7757_v55  ;;  %6594 = vrsqrt.f32 %v2141_v40  ;;  %v1972_v36 = vadd.f32 %v1971_v46, %v1830_v23  ;;  %v7766_v3 = vadd.f32 %v1606_v8, %v1453_v38  ;;  %v1455_v7 = vpop.f32.mrf.mxu0  ;;  %v1784_v2 = vadd.f32 %v1783_v24, %v7735_v47 }
 0x17d   :  { %v1608_v51 = vpop.f32.mrf.mxu1  ;;  %v2001_v15 = vadd.f32 %v2000_v32, %v1831_v4  ;;  %v1838_v18 = vmul.f32 %v7752_v52, %v7752_v52  ;;  %v1756_v59 = vadd.f32 %v1755_v48, %v7743_v6  ;;  %v1839_v1 = vmul.f32 %v7757_v55, %v7757_v55 }
 0x17e   :  { %10182 = vst [vmem:[#allocation46_spill] sm:$0xff] %v7766_v3  ;;  %v7776_v40 = vadd.f32 %v1608_v51, %v1455_v7  ;;  %v1457_v46 = vpop.f32.mrf.mxu0  ;;  %v1973_v24 = vadd.f32 %v1972_v36, %v1834_v58  ;;  %v1785_v4 = vadd.f32 %v1784_v2, %v7745_v12  ;;  %v1842_v48 = vmul.f32 %v7766_v3, %v7766_v3  ;;  %v10192_v12 = vld [vmem:[#allocation37_spill] sm:$0xff] }
 0x17f   :  { %v1610_v23 = vpop.f32.mrf.mxu1  ;;  %v2002_v8 = vadd.f32 %v2001_v15, %v1835_v43  ;;  %v1757_v28 = vadd.f32 %v1756_v59, %v7752_v52  ;;  %v2112_v43 = vsub.f32 %v7594_v53, %v7692_v26 }
 0x180   :  { %10183 = vst [vmem:[#allocation47_spill] sm:$0xff] %v7776_v40  ;;  %v7786_v56 = vadd.f32 %v1610_v23, %v1457_v46  ;;  %v1459_v7 = vpop.f32.mrf.mxu0  ;;  %v1974_v38 = vadd.f32 %v1973_v24, %v1838_v18  ;;  %v1786_v58 = vadd.f32 %v1785_v4, %v7757_v55  ;;  %v1843_v15 = vmul.f32 %v7776_v40, %v7776_v40 }
 0x181   :  { %v1612_v51 = vpop.f32.mrf.mxu1  ;;  %v2003_v2 = vadd.f32 %v2002_v8, %v1839_v1  ;;  %v2108_v18 = vsub.f32 %v7583_v31, %v7692_v26  ;;  %v1758_v24 = vadd.f32 %v1757_v28, %v7766_v3  ;;  %v2116_v1 = vsub.f32 %v7604_v37, %v7692_v26 }
 0x182   :  { %10184 = vst [vmem:[#allocation48_spill] sm:$0xff] %v7786_v56  ;;  %v1463_v59 = vpop.f32.mrf.mxu0  ;;  %v7802_v4 = vadd.f32 %v1612_v51, %v1459_v7  ;;  %v1975_v8 = vadd.f32 %v1974_v38, %v1842_v48  ;;  %v1846_v36 = vmul.f32 %v7786_v56, %v7786_v56  ;;  %v2120_v23 = vsub.f32 %v7613_v20, %v7692_v26 }
 0x183   :  { %v1616_v46 = vpop.f32.mrf.mxu1  ;;  %v1787_v28 = vadd.f32 %v1786_v58, %v7776_v40  ;;  %v2004_v48 = vadd.f32 %v2003_v2, %v1843_v15  ;;  %v1759_v37 = vadd.f32 %v1758_v24, %v7786_v56  ;;  %v10189_v31 = vsub.f32 %v7671_v57, %v7706_v27 }
 0x184   :  { %10185 = vst [vmem:[#allocation49_spill] sm:$0xff] %v7802_v4  ;;  %v1465_v6 = vpop.f32.mrf.mxu0  ;;  %v7815_v7 = vadd.f32 %v1616_v46, %v1463_v59  ;;  %v10188_v59 = vsub.f32 %v7665_v29, %v7692_v26  ;;  %v1847_v2 = vmul.f32 %v7802_v4, %v7802_v4 }
 0x185   :  { %v1618_v32 = vpop.f32.mrf.mxu1  ;;  %v1788_v24 = vadd.f32 %v1787_v28, %v7802_v4 }
 0x186   :  { %10186 = vst [vmem:[#allocation50_spill] sm:$0xff] %v7815_v7  ;;  %v7823_v51 = vadd.f32 %v1618_v32, %v1465_v6  ;;  %v1467_v3 = vpop.f32.mrf.mxu0  ;;  %v1976_v32 = vadd.f32 %v1975_v8, %v1846_v36  ;;  %v1850_v56 = vmul.f32 %v7815_v7, %v7815_v7  ;;  %v2005_v11 = vadd.f32 %v2004_v48, %v1847_v2 }
 0x187   :  { %v7821_v38 = vpop.eup %6592  ;;  %v1620_v20 = vpop.f32.mrf.mxu1  ;;  %v1760_v57 = vadd.f32 %v1759_v37, %v7815_v7 }
 0x188   :  { %10187 = vst [vmem:[#allocation51_spill] sm:$0xff] %v7823_v51  ;;  %v2240_v46 = vmul.f32 %v7821_v38, %v10188_v59  ;;  %v1469_v15 = vpop.f32.mrf.mxu0  ;;  %v1851_v29 = vmul.f32 %v7823_v51, %v7823_v51  ;;  %v7864_v8 = vadd.f32 %v1620_v20, %v1467_v3  ;;  %v1977_v48 = vadd.f32 %v1976_v32, %v1850_v56 }
 0x189   :  { %v1622_v53 = vpop.f32.mrf.mxu1  ;;  %v7844_v59 = vpop.eup %6594  ;;  %v1789_v3 = vadd.f32 %v1788_v24, %v7823_v51  ;;  %v7880_v7 = vmul.f32 %v7821_v38, %v2108_v18  ;;  %v7883_v55 = vmul.f32 %v7821_v38, %v2112_v43  ;;  %v7886_v28 = vmul.f32 %v7821_v38, %v2116_v1  ;;  %v10198_v51 = vld [vmem:[#allocation38_spill] sm:$0xff] }
 0x18a   :  { %v2241_v58 = vmul.f32 %v7844_v59, %v10189_v31  ;;  %v1473_v6 = vpop.f32.mrf.mxu0  ;;  %v2358_v36 = vmul.f32 %v7698_v14, %v2240_v46  ;;  %10190 = vst [vmem:[#allocation52_spill] sm:$0xff] %v7864_v8  ;;  %v7866_v4 = vadd.f32 %v1622_v53, %v1469_v15  ;;  %v2006_v37 = vadd.f32 %v2005_v11, %v1851_v29 }
 0x18b   :  { %v1626_v52 = vpop.f32.mrf.mxu1  ;;  %v1854_v56 = vmul.f32 %v7864_v8, %v7864_v8  ;;  %v7896_v32 = vmul.f32 %v7821_v38, %v2120_v23  ;;  %v1761_v18 = vadd.f32 %v1760_v57, %v7864_v8  ;;  %v10199_v23 = vsub.f32 %v7602_v63, %v7706_v27 }
 0x18c   :  { %10191 = vst [vmem:[#allocation53_spill] sm:$0xff] %v7866_v4  ;;  %v1475_v31 = vpop.f32.mrf.mxu0  ;;  %v2359_v46 = vmul.f32 %v10192_v12, %v2241_v58  ;;  %v7889_v58 = vadd.f32 %v10194_v13, %v2358_v36  ;;  %v1855_v11 = vmul.f32 %v7866_v4, %v7866_v4  ;;  %v7899_v29 = vadd.f32 %v1626_v52, %v1473_v6 }
 0x18d   :  { %v1628_v40 = vpop.f32.mrf.mxu1  ;;  %v10197_v36 = vsub.f32 %v7591_v19, %v7706_v27  ;;  %v1790_v0 = vadd.f32 %v1789_v3, %v7866_v4  ;;  %v2217_v52 = vmul.f32 %v7844_v59, %v10199_v23  ;;  %v10204_v63 = vsub.f32 %v7631_v16, %v7706_v27 }
 0x18e   :  { %v1477_v2 = vpop.f32.mrf.mxu0  ;;  %10195 = vst [vmem:[#allocation36_spill] sm:$0xff] %v7899_v29  ;;  %v7901_v43 = vadd.f32 %v1628_v40, %v1475_v31  ;;  %v7908_v47 = vadd.f32 %v10198_v51, %v2359_v46  ;;  %v10200_v40 = vsub.f32 %v7611_v9, %v7706_v27  ;;  %v10203_v46 = vsub.f32 %v7621_v49, %v7706_v27 }
 0x18f   :  { %v1630_v15 = vpop.f32.mrf.mxu1  ;;  %v2213_v20 = vmul.f32 %v7844_v59, %v10197_v36  ;;  %v2229_v23 = vmul.f32 %v7844_v59, %v10204_v63  ;;  %v7932_v9 = vmul.f32 0.1, %v7889_v58  ;;  %v1858_v49 = vmul.f32 %v7899_v29, %v7899_v29 }
 0x190   :  { %10196 = vst [vmem:[#allocation54_spill] sm:$0xff] %v7901_v43  ;;  %v1479_v1 = vpop.f32.mrf.mxu0  ;;  %v2221_v6 = vmul.f32 %v7844_v59, %v10200_v40  ;;  %v7919_v57 = vadd.f32 %v1630_v15, %v1477_v2  ;;  %v2225_v3 = vmul.f32 %v7844_v59, %v10203_v46  ;;  %v1978_v40 = vadd.f32 %v1977_v48, %v1854_v56 }
 0x191   :  { %v1632_v24 = vpop.f32.mrf.mxu1  ;;  %v2007_v2 = vadd.f32 %v2006_v37, %v1855_v11  ;;  %v10205_v15 = vsub.f32 %v7643_v33, %v7706_v27  ;;  %v10206_v63 = vsub.f32 %v7659_v42, %v7706_v27  ;;  %v2331_v48 = vmul.f32 %v10192_v12, %v2213_v20 }
 0x192   :  { %10201 = vst [vmem:[#allocation55_spill] sm:$0xff] %v7919_v57  ;;  %v7921_v19 = vadd.f32 %v1632_v24, %v1479_v1  ;;  %v1483_v31 = vpop.f32.mrf.mxu0  ;;  %v1859_v24 = vmul.f32 %v7901_v43, %v7901_v43  ;;  %v7948_v37 = vmul.f32 0.1, %v7908_v47  ;;  %v1762_v33 = vadd.f32 %v1761_v18, %v7899_v29 }
 0x193   :  { %v1636_v36 = vpop.f32.mrf.mxu1  ;;  %v2233_v1 = vmul.f32 %v7844_v59, %v10205_v15  ;;  %v2237_v8 = vmul.f32 %v7844_v59, %v10206_v63  ;;  %v2335_v56 = vmul.f32 %v10192_v12, %v2217_v52  ;;  %v2339_v11 = vmul.f32 %v10192_v12, %v2221_v6 }
 0x194   :  { %10202 = vst [vmem:[#allocation56_spill] sm:$0xff] %v7921_v19  ;;  %v1485_v46 = vpop.f32.mrf.mxu0  ;;  %v1862_v15 = vmul.f32 %v7919_v57, %v7919_v57  ;;  %v1863_v4 = vmul.f32 %v7921_v19, %v7921_v19  ;;  %v2343_v63 = vmul.f32 %v10192_v12, %v2225_v3  ;;  %v2347_v20 = vmul.f32 %v10192_v12, %v2229_v23 }
 0x195   :  { %v1638_v16 = vpop.f32.mrf.mxu1  ;;  %v1791_v17 = vadd.f32 %v1790_v0, %v7901_v43  ;;  %v7960_v53 = vadd.f32 %v1636_v36, %v1483_v31  ;;  %v2351_v52 = vmul.f32 %v10192_v12, %v2233_v1  ;;  %v1979_v6 = vadd.f32 %v1978_v40, %v1858_v49 }
 0x196   :  { %v1487_v42 = vpop.f32.mrf.mxu0  ;;  %v7962_v18 = vadd.f32 %v1638_v16, %v1485_v46  ;;  %v2008_v29 = vadd.f32 %v2007_v2, %v1859_v24  ;;  %v2355_v45 = vmul.f32 %v10192_v12, %v2237_v8  ;;  %v2449_v39 = vadd.f32 %v10198_v51, %v2331_v48 }
 0x197   :  { %v1640_v30 = vpop.f32.mrf.mxu1  ;;  %10207 = vst [vmem:[#allocation57_spill] sm:$0xff] %v7960_v53  ;;  %vm2573_vm0 = vcmp.ge.f32.partialorder %v7908_v47, 0.0  ;;  %v1763_v3 = vadd.f32 %v1762_v33, %v7919_v57  ;;  %v1792_v0 = vadd.f32 %v1791_v17, %v7921_v19  ;;  %v2453_v31 = vadd.f32 %v10198_v51, %v2335_v56 }
 0x198   :  { %10208 = vst [vmem:[#allocation58_spill] sm:$0xff] %v7962_v18  ;;  %v1489_v62 = vpop.f32.mrf.mxu0  ;;  %v2457_v36 = vadd.f32 %v10198_v51, %v2339_v11  ;;  %v1980_v23 = vadd.f32 %v1979_v6, %v1862_v15  ;;  %v2009_v1 = vadd.f32 %v2008_v29, %v1863_v4  ;;  %v2461_v49 = vadd.f32 %v10198_v51, %v2343_v63 }
 0x199   :  { %v1642_v50 = vpop.f32.mrf.mxu1  ;;  %v2465_v8 = vadd.f32 %v10198_v51, %v2347_v20  ;;  %v1764_v24 = vadd.f32 %v1763_v3, %v7960_v53  ;;  %v1866_v46 = vmul.f32 %v7960_v53, %v7960_v53  ;;  %v1793_v16 = vadd.f32 %v1792_v0, %v7962_v18 }
 0x19a   :  { %v1493_v40 = vpop.f32.mrf.mxu0  ;;  %v2469_v17 = vadd.f32 %v10198_v51, %v2351_v52  ;;  %v1867_v48 = vmul.f32 %v7962_v18, %v7962_v18  ;;  %v7981_v33 = vadd.f32 %v1640_v30, %v1487_v42  ;;  %v2473_v56 = vadd.f32 %v10198_v51, %v2355_v45 }
 0x19b   :  { %v1646_v2 = vpop.f32.mrf.mxu1  ;;  %vm2545_vm1 = vcmp.ge.f32.partialorder %v2449_v39, 0.0  ;;  %vm2549_vm2 = vcmp.ge.f32.partialorder %v2453_v31, 0.0  ;;  %vm2553_vm3 = vcmp.ge.f32.partialorder %v2457_v36, 0.0  ;;  %v2641_v11 = vmul.f32 0.1, %v2449_v39 }
 0x19c   :  { %10209 = vst [vmem:[#allocation59_spill] sm:$0xff] %v7981_v33  ;;  %v1495_v4 = vpop.f32.mrf.mxu0  ;;  %v2645_v15 = vmul.f32 0.1, %v2453_v31  ;;  %v7984_v63 = vadd.f32 %v1642_v50, %v1489_v62  ;;  %v2649_v20 = vmul.f32 0.1, %v2457_v36  ;;  %v7986_v52 = vadd.f32 %v1646_v2, %v1493_v40 }
 0x19d   :  { %v1648_v29 = vpop.f32.mrf.mxu1  ;;  %v2653_v6 = vmul.f32 0.1, %v2461_v49  ;;  %v2657_v3 = vmul.f32 0.1, %v2465_v8  ;;  %vm2557_vm4 = vcmp.ge.f32.partialorder %v2461_v49, 0.0  ;;  %vm2561_vm5 = vcmp.ge.f32.partialorder %v2465_v8, 0.0 }
 0x19e   :  { %10210 = vst [vmem:[#allocation60_spill] sm:$0xff] %v7984_v63  ;;  %10211 = vst [vmem:[#allocation61_spill] sm:$0xff] %v7986_v52  ;;  %vm2565_vm6 = vcmp.ge.f32.partialorder %v2469_v17, 0.0  ;;  %v1870_v30 = vmul.f32 %v7981_v33, %v7981_v33  ;;  %v1497_v42 = vpop.f32.mrf.mxu0  ;;  %vm2569_vm7 = vcmp.ge.f32.partialorder %v2473_v56, 0.0  ;;  %v2661_v0 = vmul.f32 0.1, %v2469_v17 }
 0x19f   :  { %v1650_v45 = vpop.f32.mrf.mxu1  ;;  %v2665_v53 = vmul.f32 0.1, %v2473_v56  ;;  %v7990_v57 = vadd.f32 %v1648_v29, %v1495_v4  ;;  %v2737_v50 = vsel %vm2545_vm1, %v2449_v39, %v2641_v11  ;;  %v2741_v62 = vsel %vm2549_vm2, %v2453_v31, %v2645_v15 }
 0x1a0   :  { %v2745_v40 = vsel %vm2553_vm3, %v2457_v36, %v2649_v20  ;;  %v1981_v2 = vadd.f32 %v1980_v23, %v1866_v46  ;;  %v2749_v18 = vsel %vm2557_vm4, %v2461_v49, %v2653_v6  ;;  %v2753_v19 = vsel %vm2561_vm5, %v2465_v8, %v2657_v3  ;;  %v1499_v4 = vpop.f32.mrf.mxu0 }
 0x1a1   :  { %10212 = vst [vmem:[#allocation62_spill] sm:$0xff] %v7990_v57  ;;  %v2757_v43 = vsel %vm2565_vm6, %v2469_v17, %v2661_v0  ;;  %v2010_v51 = vadd.f32 %v2009_v1, %v1867_v48  ;;  %v1871_v12 = vmul.f32 %v7984_v63, %v7984_v63  ;;  %v1874_v34 = vmul.f32 %v7986_v52, %v7986_v52  ;;  %v1652_v29 = vpop.f32.mrf.mxu1 }
 0x1a2   :  { %v2761_v25 = vsel %vm2569_vm7, %v2473_v56, %v2665_v53  ;;  %v2765_v39 = vsel %vm2573_vm0, %v7908_v47, %v7948_v37  ;;  %v2999_v31 = vadd.f32 %v2741_v62, %v2737_v50  ;;  %v3027_v36 = vadd.f32 %v2749_v18, %v2745_v40  ;;  %v1503_v18 = vpop.f32.mrf.mxu0 }
 0x1a3   :  { %v3055_v23 = vadd.f32 %v2757_v43, %v2753_v19  ;;  %v1765_v49 = vadd.f32 %v1764_v24, %v7981_v33  ;;  %v1982_v1 = vadd.f32 %v1981_v2, %v1870_v30  ;;  %v1875_v8 = vmul.f32 %v7990_v57, %v7990_v57  ;;  %v1656_v43 = vpop.f32.mrf.mxu1 }
 0x1a4   :  { %v8006_v46 = vadd.f32 %v1650_v45, %v1497_v42  ;;  %v3000_v17 = vrot.slane %v2999_v31, 4  ;;  %v3028_v53 = vrot.slane %v3027_v36, 4  ;;  %v3083_v56 = vadd.f32 %v2765_v39, %v2761_v25 }
 0x1a5   :  { %v3056_v48 = vrot.slane %v3055_v23, 4  ;;  %v1794_v11 = vadd.f32 %v1793_v16, %v7984_v63  ;;  %v2011_v15 = vadd.f32 %v2010_v51, %v1871_v12  ;;  %v1766_v47 = vadd.f32 %v1765_v49, %v7986_v52  ;;  %v1658_v39 = vpop.f32.mrf.mxu1 }
 0x1a6   :  { %10213 = vst [vmem:[#allocation63_spill] sm:$0xff] %v8006_v46  ;;  %v1983_v37 = vadd.f32 %v1982_v1, %v1874_v34  ;;  %v3001_v19 = vadd.f32 %v3000_v17, %v2999_v31  ;;  %v3029_v24 = vadd.f32 %v3028_v53, %v3027_v36  ;;  %v3084_v6 = vrot.slane %v3083_v56, 4 }
 0x1a7   :  { %v3057_v20 = vadd.f32 %v3056_v48, %v3055_v23  ;;  %v8011_v3 = vadd.f32 %v1794_v11, %v7990_v57  ;;  %v8013_v30 = vadd.f32 %v2011_v15, %v1875_v8  ;;  %v1878_v25 = vmul.f32 %v8006_v46, %v8006_v46 }
 0x1a8   :  { %v8017_v42 = vadd.f32 %v1652_v29, %v1499_v4  ;;  %v3002_v12 = vrot.slane %v3001_v19, 2  ;;  %v3030_v51 = vrot.slane %v3029_v24, 2  ;;  %v3085_v34 = vadd.f32 %v3084_v6, %v3083_v56  ;;  %v1505_v29 = vpop.f32.mrf.mxu0 }
 0x1a9   :  { %v3058_v16 = vrot.slane %v3057_v20, 2  ;;  %v8019_v45 = vadd.f32 %v1656_v43, %v1503_v18  ;;  %v10216_v0 = vsub.f32 %v7623_v44, %v7692_v26  ;;  %v10217_v62 = vsub.f32 %v7635_v22, %v7692_v26 }
 0x1aa   :  { %10214 = vst [vmem:[#allocation64_spill] sm:$0xff] %v8017_v42  ;;  %v10218_v2 = vsub.f32 %v7651_v35, %v7692_v26  ;;  %v3003_v31 = vadd.f32 %v3002_v12, %v3001_v19  ;;  %v3031_v36 = vadd.f32 %v3030_v51, %v3029_v24  ;;  %v3086_v49 = vrot.slane %v3085_v34, 2 }
 0x1ab   :  { %10215 = vst [vmem:[#allocation65_spill] sm:$0xff] %v8019_v45  ;;  %v2228_v50 = vmul.f32 %v7821_v38, %v10216_v0  ;;  %v2232_v40 = vmul.f32 %v7821_v38, %v10217_v62  ;;  %v3059_v23 = vadd.f32 %v3058_v16, %v3057_v20  ;;  %v2330_v44 = vmul.f32 %v7698_v14, %v7880_v7 }
 0x1ac   :  { %v2236_v4 = vmul.f32 %v7821_v38, %v10218_v2  ;;  %v2334_v22 = vmul.f32 %v7698_v14, %v7883_v55  ;;  %v2338_v1 = vmul.f32 %v7698_v14, %v7886_v28  ;;  %v2342_v35 = vmul.f32 %v7698_v14, %v7896_v32 }
 0x1ad   :  { %v3004_v8 = vrot.slane %v3003_v31, 1  ;;  %v3032_v17 = vrot.slane %v3031_v36, 1  ;;  %v3060_v53 = vrot.slane %v3059_v23, 1  ;;  %v3087_v48 = vadd.f32 %v3086_v49, %v3085_v34 }
 0x1ae   :  { %vm2572_vm11 = vcmp.ge.f32.partialorder %v7889_v58, 0.0  ;;  %v8042_v56 = vadd.f32 %v1658_v39, %v1505_v29  ;;  %v2346_v11 = vmul.f32 %v7698_v14, %v2228_v50  ;;  %v2350_v7 = vmul.f32 %v7698_v14, %v2232_v40 }
 0x1af   :  { %v2354_v55 = vmul.f32 %v7698_v14, %v2236_v4  ;;  %v3005_v15 = vadd.f32 %v3004_v8, %v3003_v31  ;;  %v3033_v18 = vadd.f32 %v3032_v17, %v3031_v36  ;;  %v3061_v28 = vadd.f32 %v3060_v53, %v3059_v23  ;;  %v1507_v36 = vpop.f32.mrf.mxu0 }
 0x1b0   :  { %10219 = vst [vmem:[#allocation66_spill] sm:$0xff] %v8042_v56  ;;  %v3088_v43 = vrot.slane %v3087_v48, 1  ;;  %v2448_v32 = vadd.f32 %v10194_v13, %v2330_v44  ;;  %v2452_v19 = vadd.f32 %v10194_v13, %v2334_v22  ;;  %v2456_v24 = vadd.f32 %v10194_v13, %v2338_v1 }
 0x1b1   :  { %v2460_v20 = vadd.f32 %v10194_v13, %v2342_v35  ;;  %v8051_v12 = vmul.f32 0.0625, %v3005_v15  ;;  %v8053_v51 = vmul.f32 0.0625, %v3033_v18  ;;  %v8055_v16 = vmul.f32 0.0625, %v3061_v28 }
 0x1b2   :  { %v3089_v6 = vadd.f32 %v3088_v43, %v3087_v48  ;;  %v1767_v34 = vadd.f32 %v1766_v47, %v8006_v46  ;;  %v2464_v0 = vadd.f32 %v10194_v13, %v2346_v11  ;;  %v2468_v50 = vadd.f32 %v10194_v13, %v2350_v7 }
 0x1b3   :  { %v2472_v62 = vadd.f32 %v10194_v13, %v2354_v55  ;;  %v1984_v40 = vadd.f32 %v1983_v37, %v1878_v25  ;;  %v1879_v2 = vmul.f32 %v8017_v42, %v8017_v42  ;;  %v3239_v29 = vsel %vm10103_vm8, %v8053_v51, %v8051_v12  ;;  %v1660_v37 = vpop.f32.mrf.mxu1 }
 0x1b4   :  { %v8063_v4 = vmul.f32 0.0625, %v3089_v6  ;;  %v1882_v39 = vmul.f32 %v8019_v45, %v8019_v45  ;;  %v1883_v47 = vmul.f32 %v8042_v56, %v8042_v56  ;;  %v3240_v31 = vsel %vm10102_vm9, %v8055_v16, %v3239_v29 }
 0x1b5   :  { %vm2544_vm12 = vcmp.ge.f32.partialorder %v2448_v32, 0.0  ;;  %vm2548_vm13 = vcmp.ge.f32.partialorder %v2452_v19, 0.0  ;;  %vm2552_vm14 = vcmp.ge.f32.partialorder %v2456_v24, 0.0  ;;  %vm2556_vm15 = vcmp.ge.f32.partialorder %v2460_v20, 0.0 }
 0x1b6   :  { %v8076_v25 = vsel %vm10101_vm10, %v8063_v4, %v3240_v31  ;;  %vm2560_vm0 = vcmp.ge.f32.partialorder %v2464_v0, 0.0  ;;  %vm2564_vm1 = vcmp.ge.f32.partialorder %v2468_v50, 0.0  ;;  %vm2568_vm2 = vcmp.ge.f32.partialorder %v2472_v62, 0.0 }
 0x1b7   :  { %3284 = vmatprep.subr.mxu0 %v8076_v25  ;;  %v2640_v23 = vmul.f32 0.1, %v2448_v32  ;;  %v8079_v49 = vadd.f32 %v1660_v37, %v1507_v36  ;;  %v2644_v44 = vmul.f32 0.1, %v2452_v19  ;;  %v2648_v22 = vmul.f32 0.1, %v2456_v24  ;;  %v1662_v37 = vpop.f32.mrf.mxu1 }
 0x1b8   :  { %v2652_v1 = vmul.f32 0.1, %v2460_v20  ;;  %v2656_v35 = vmul.f32 0.1, %v2464_v0  ;;  %v2660_v8 = vmul.f32 0.1, %v2468_v50  ;;  %v2764_v55 = vsel %vm2572_vm11, %v7889_v58, %v7932_v9 }
 0x1b9   :  { %10220 = vst [vmem:[#allocation67_spill] sm:$0xff] %v8079_v49  ;;  %v2664_v17 = vmul.f32 0.1, %v2472_v62  ;;  %v2736_v53 = vsel %vm2544_vm12, %v2448_v32, %v2640_v23  ;;  %v2740_v48 = vsel %vm2548_vm13, %v2452_v19, %v2644_v44  ;;  %v2744_v11 = vsel %vm2552_vm14, %v2456_v24, %v2648_v22 }
 0x1ba   :  { %v2748_v7 = vsel %vm2556_vm15, %v2460_v20, %v2652_v1  ;;  %v2752_v15 = vsel %vm2560_vm0, %v2464_v0, %v2656_v35  ;;  %v2756_v18 = vsel %vm2564_vm1, %v2468_v50, %v2660_v8  ;;  %v2992_v43 = vadd.f32 %v2740_v48, %v2736_v53  ;;  %v10222_v48 = vld [vmem:[#allocation25_spill] sm:$0xff] }
 0x1bb   :  { %v2760_v28 = vsel %vm2568_vm2, %v2472_v62, %v2664_v17  ;;  %v1886_v32 = vmul.f32 %v8079_v49, %v8079_v49  ;;  %v3020_v19 = vadd.f32 %v2748_v7, %v2744_v11  ;;  %v3048_v6 = vadd.f32 %v2756_v18, %v2752_v15  ;;  %v1509_v62 = vpop.f32.mrf.mxu0 }
 0x1bc   :  { %v3076_v24 = vadd.f32 %v2764_v55, %v2760_v28  ;;  %v1796_v20 = vadd.f32 %v8011_v3, %v8017_v42  ;;  %v2013_v29 = vadd.f32 %v8013_v30, %v1879_v2  ;;  %v1768_v58 = vadd.f32 %v1767_v34, %v8019_v45  ;;  %v10223_v55 = vld [vmem:[#allocation27_spill] sm:$0xff] }
 0x1bd   :  { %v2993_v9 = vrot.slane %v2992_v43, 4  ;;  %v1985_v0 = vadd.f32 %v1984_v40, %v1882_v39  ;;  %v3021_v31 = vrot.slane %v3020_v19, 4  ;;  %v3049_v50 = vrot.slane %v3048_v6, 4 }
 0x1be   :  { %v3077_v36 = vrot.slane %v3076_v24, 4  ;;  %v8099_v23 = vadd.f32 %v1796_v20, %v8042_v56  ;;  %v8101_v44 = vadd.f32 %v2013_v29, %v1883_v47  ;;  %v8104_v22 = vadd.f32 %v1768_v58, %v8079_v49 }
 0x1bf   :  { %v2994_v3 = vadd.f32 %v2993_v9, %v2992_v43  ;;  %v8106_v1 = vadd.f32 %v1985_v0, %v1886_v32  ;;  %v3022_v30 = vadd.f32 %v3021_v31, %v3020_v19  ;;  %v3050_v34 = vadd.f32 %v3049_v50, %v3048_v6 }
 0x1c0   :  { %v3078_v2 = vadd.f32 %v3077_v36, %v3076_v24  ;;  %v8112_v8 = vadd.f32 %v1662_v37, %v1509_v62  ;;  %v2101_v11 = vsub.f32 %v10222_v48, %v7706_v27  ;;  %v2105_v15 = vsub.f32 %v10223_v55, %v7706_v27 }
 0x1c1   :  { %v2995_v35 = vrot.slane %v2994_v3, 2  ;;  %v3023_v47 = vrot.slane %v3022_v30, 2  ;;  %v3051_v17 = vrot.slane %v3050_v34, 2  ;;  %v10224_v18 = vsub.f32 %v7395_v60, %v7706_v27 }
 0x1c2   :  { %10221 = vst [vmem:[#allocation68_spill] sm:$0xff] %v8112_v8  ;;  %v3079_v53 = vrot.slane %v3078_v2, 2  ;;  %v10225_v43 = vsub.f32 %v7389_v54, %v7706_v27  ;;  %v10226_v20 = vsub.f32 %v7397_v61, %v7706_v27  ;;  %v10227_v9 = vsub.f32 %v7407_v10, %v7706_v27 }
 0x1c3   :  { %v2996_v7 = vadd.f32 %v2995_v35, %v2994_v3  ;;  %v2149_v28 = vmul.f32 %v7844_v59, %v10224_v18  ;;  %v3024_v19 = vadd.f32 %v3023_v47, %v3022_v30  ;;  %v3052_v6 = vadd.f32 %v3051_v17, %v3050_v34  ;;  %v10231_v30 = vld [vmem:[#allocation11_spill] sm:$0xff]  ;;  %v10237_v18 = vld [vmem:[#allocation17_spill] sm:$0xff] }
 0x1c4   :  { %v2153_v32 = vmul.f32 %v7844_v59, %v10225_v43  ;;  %v3080_v24 = vadd.f32 %v3079_v53, %v3078_v2  ;;  %v2157_v29 = vmul.f32 %v7844_v59, %v10226_v20  ;;  %v2161_v60 = vmul.f32 %v7844_v59, %v10227_v9  ;;  %v10233_v2 = vld [vmem:[#allocation13_spill] sm:$0xff]  ;;  %v10235_v47 = vld [vmem:[#allocation15_spill] sm:$0xff] }
 0x1c5   :  { %v2997_v58 = vrot.slane %v2996_v7, 1  ;;  %v10228_v0 = vsub.f32 %v7423_v5, %v7706_v27  ;;  %v10229_v31 = vsub.f32 %v7438_v41, %v7706_v27  ;;  %v3025_v36 = vrot.slane %v3024_v19, 1 }
 0x1c6   :  { %v3053_v61 = vrot.slane %v3052_v6, 1  ;;  %v3081_v62 = vrot.slane %v3080_v24, 1  ;;  %v10230_v37 = vsub.f32 %v7452_v21, %v7706_v27  ;;  %v10232_v34 = vsub.f32 %v10231_v30, %v7706_v27 }
 0x1c7   :  { %v2165_v54 = vmul.f32 %v7844_v59, %v10228_v0  ;;  %v2169_v50 = vmul.f32 %v7844_v59, %v10229_v31  ;;  %v2998_v3 = vadd.f32 %v2997_v58, %v2996_v7  ;;  %v10234_v35 = vsub.f32 %v10233_v2, %v7706_v27  ;;  %v10239_v58 = vld [vmem:[#allocation19_spill] sm:$0xff]  ;;  %v10241_v31 = vld [vmem:[#allocation21_spill] sm:$0xff] }
 0x1c8   :  { %v2173_v10 = vmul.f32 %v7844_v59, %v10230_v37  ;;  %v2177_v5 = vmul.f32 %v7844_v59, %v10232_v34  ;;  %v10236_v17 = vsub.f32 %v10235_v47, %v7706_v27  ;;  %v3026_v48 = vadd.f32 %v3025_v36, %v3024_v19  ;;  %v10243_v19 = vld [vmem:[#allocation23_spill] sm:$0xff]  ;;  %v10247_v34 = vld [vmem:[#allocation37_spill] sm:$0xff] }
 0x1c9   :  { %v2181_v41 = vmul.f32 %v7844_v59, %v10234_v35  ;;  %v3054_v21 = vadd.f32 %v3053_v61, %v3052_v6  ;;  %v3082_v55 = vadd.f32 %v3081_v62, %v3080_v24  ;;  %v10238_v7 = vsub.f32 %v10237_v18, %v7706_v27 }
 0x1ca   :  { %v2185_v53 = vmul.f32 %v7844_v59, %v10236_v17  ;;  %v8162_v20 = vmul.f32 0.0625, %v2998_v3  ;;  %v10240_v9 = vsub.f32 %v10239_v58, %v7706_v27  ;;  %v10242_v37 = vsub.f32 %v10241_v31, %v7706_v27 }
 0x1cb   :  { %v2189_v43 = vmul.f32 %v7844_v59, %v10238_v7  ;;  %v10244_v6 = vsub.f32 %v10243_v19, %v7706_v27  ;;  %v8176_v36 = vmul.f32 0.0625, %v3026_v48  ;;  %v8178_v61 = vmul.f32 0.0625, %v3054_v21 }
 0x1cc   :  { %v2193_v0 = vmul.f32 %v7844_v59, %v10240_v9  ;;  %v2197_v30 = vmul.f32 %v7844_v59, %v10242_v37  ;;  %v2205_v62 = vmul.f32 %v7844_v59, %v2101_v11  ;;  %v2209_v3 = vmul.f32 %v7844_v59, %v2105_v15 }
 0x1cd   :  { %v2201_v24 = vmul.f32 %v7844_v59, %v10244_v6  ;;  %10245 = vst [vmem:[#allocation25_spill] sm:$0xff] %v8176_v36  ;;  %10246 = vst [vmem:[#allocation27_spill] sm:$0xff] %v8178_v61  ;;  %v2267_v2 = vmul.f32 %v10247_v34, %v2149_v28  ;;  %v2271_v35 = vmul.f32 %v10247_v34, %v2153_v32  ;;  %v8186_v18 = vmul.f32 0.0625, %v3082_v55  ;;  %v10249_v55 = vld [vmem:[#allocation38_spill] sm:$0xff] }
 0x1ce   :  { %v2275_v47 = vmul.f32 %v10247_v34, %v2157_v29  ;;  %v2279_v17 = vmul.f32 %v10247_v34, %v2161_v60  ;;  %v3236_v27 = vsel %vm10103_vm8, %v8176_v36, %v8162_v20  ;;  %v2283_v48 = vmul.f32 %v10247_v34, %v2165_v54 }
 0x1cf   :  { %10248 = vst [vmem:[#allocation11_spill] sm:$0xff] %v8186_v18  ;;  %v2287_v11 = vmul.f32 %v10247_v34, %v2169_v50  ;;  %v3237_v59 = vsel %vm10102_vm9, %v8178_v61, %v3236_v27  ;;  %v2291_v15 = vmul.f32 %v10247_v34, %v2173_v10  ;;  %v2295_v28 = vmul.f32 %v10247_v34, %v2177_v5 }
 0x1d0   :  { %v2299_v32 = vmul.f32 %v10247_v34, %v2181_v41  ;;  %v8200_v29 = vsel %vm10101_vm10, %v8186_v18, %v3237_v59  ;;  %v2303_v60 = vmul.f32 %v10247_v34, %v2185_v53  ;;  %v2307_v21 = vmul.f32 %v10247_v34, %v2189_v43 }
 0x1d1   :  { %v2311_v54 = vmul.f32 %v10247_v34, %v2193_v0  ;;  %3285 = vmatpush1.xpose.msra.mxu0 %v8200_v29  ;;  %v2315_v50 = vmul.f32 %v10247_v34, %v2197_v30  ;;  %v2319_v10 = vmul.f32 %v10247_v34, %v2201_v24  ;;  %v2323_v5 = vmul.f32 %v10247_v34, %v2205_v62 }
 0x1d2   :  { %v2327_v41 = vmul.f32 %v10247_v34, %v2209_v3  ;;  %v2385_v7 = vadd.f32 %v10249_v55, %v2267_v2  ;;  %v2389_v58 = vadd.f32 %v10249_v55, %v2271_v35  ;;  %v2393_v53 = vadd.f32 %v10249_v55, %v2275_v47 }
 0x1d3   :  { %v2397_v43 = vadd.f32 %v10249_v55, %v2279_v17  ;;  %v2401_v9 = vadd.f32 %v10249_v55, %v2283_v48  ;;  %v2405_v0 = vadd.f32 %v10249_v55, %v2287_v11  ;;  %v2409_v31 = vadd.f32 %v10249_v55, %v2291_v15 }
 0x1d4   :  { %v2413_v37 = vadd.f32 %v10249_v55, %v2295_v28  ;;  %v2417_v30 = vadd.f32 %v10249_v55, %v2299_v32  ;;  %v2421_v19 = vadd.f32 %v10249_v55, %v2303_v60  ;;  %v2425_v6 = vadd.f32 %v10249_v55, %v2307_v21 }
 0x1d5   :  { %v2429_v24 = vadd.f32 %v10249_v55, %v2311_v54  ;;  %v2433_v62 = vadd.f32 %v10249_v55, %v2315_v50  ;;  %v2437_v3 = vadd.f32 %v10249_v55, %v2319_v10  ;;  %v2441_v34 = vadd.f32 %v10249_v55, %v2323_v5 }
 0x1d6   :  { %v2445_v2 = vadd.f32 %v10249_v55, %v2327_v41  ;;  %vm2481_vm3 = vcmp.ge.f32.partialorder %v2385_v7, 0.0  ;;  %vm2485_vm4 = vcmp.ge.f32.partialorder %v2389_v58, 0.0  ;;  %vm2489_vm5 = vcmp.ge.f32.partialorder %v2393_v53, 0.0 }
 0x1d7   :  { %vm2493_vm6 = vcmp.ge.f32.partialorder %v2397_v43, 0.0  ;;  %vm2497_vm7 = vcmp.ge.f32.partialorder %v2401_v9, 0.0  ;;  %vm2501_vm11 = vcmp.ge.f32.partialorder %v2405_v0, 0.0  ;;  %vm2505_vm12 = vcmp.ge.f32.partialorder %v2409_v31, 0.0 }
 0x1d8   :  { %vm2509_vm13 = vcmp.ge.f32.partialorder %v2413_v37, 0.0  ;;  %vm2513_vm14 = vcmp.ge.f32.partialorder %v2417_v30, 0.0  ;;  %vm2517_vm15 = vcmp.ge.f32.partialorder %v2421_v19, 0.0  ;;  %vm2521_vm0 = vcmp.ge.f32.partialorder %v2425_v6, 0.0 }
 0x1d9   :  { %vm2525_vm1 = vcmp.ge.f32.partialorder %v2429_v24, 0.0  ;;  %vm2529_vm2 = vcmp.ge.f32.partialorder %v2433_v62, 0.0  ;;  %vm2533_vm10 = vcmp.ge.f32.partialorder %v2437_v3, 0.0  ;;  %vm2537_vm9 = vcmp.ge.f32.partialorder %v2441_v34, 0.0 }
 0x1da   :  { %vm2541_vm8 = vcmp.ge.f32.partialorder %v2445_v2, 0.0  ;;  %v2577_v47 = vmul.f32 0.1, %v2385_v7  ;;  %v2581_v17 = vmul.f32 0.1, %v2389_v58  ;;  %v8230_v48 = vmul.f32 %v8112_v8, %v8112_v8 }
 0x1db   :  { %v2585_v27 = vmul.f32 0.1, %v2393_v53  ;;  %v2589_v11 = vmul.f32 0.1, %v2397_v43  ;;  %v2593_v59 = vmul.f32 0.1, %v2401_v9 }
 0x1dc   :  { %v2597_v15 = vmul.f32 0.1, %v2405_v0  ;;  %v2601_v28 = vmul.f32 0.1, %v2409_v31  ;;  %v2605_v32 = vmul.f32 0.1, %v2413_v37  ;;  %v2673_v21 = vsel %vm2481_vm3, %v2385_v7, %v2577_v47 }
 0x1dd   :  { %v2609_v60 = vmul.f32 0.1, %v2417_v30  ;;  %v2613_v54 = vmul.f32 0.1, %v2421_v19  ;;  %v2617_v50 = vmul.f32 0.1, %v2425_v6  ;;  %v2677_v5 = vsel %vm2485_vm4, %v2389_v58, %v2581_v17 }
 0x1de   :  { %v2621_v10 = vmul.f32 0.1, %v2429_v24  ;;  %v2625_v41 = vmul.f32 0.1, %v2433_v62  ;;  %v2629_v55 = vmul.f32 0.1, %v2437_v3  ;;  %v2681_v39 = vsel %vm2489_vm5, %v2393_v53, %v2585_v27 }
 0x1df   :  { %v2633_v35 = vmul.f32 0.1, %v2441_v34  ;;  %v2637_v40 = vmul.f32 0.1, %v2445_v2  ;;  %v2685_v46 = vsel %vm2493_vm6, %v2397_v43, %v2589_v11  ;;  %v2689_v52 = vsel %vm2497_vm7, %v2401_v9, %v2593_v59 }
 0x1e0   :  { %v2693_v33 = vsel %vm2501_vm11, %v2405_v0, %v2597_v15  ;;  %v2697_v42 = vsel %vm2505_vm12, %v2409_v31, %v2601_v28  ;;  %v2701_v7 = vsel %vm2509_vm13, %v2413_v37, %v2605_v32  ;;  %v2705_v47 = vsel %vm2513_vm14, %v2417_v30, %v2609_v60 }
 0x1e1   :  { %v2709_v58 = vsel %vm2517_vm15, %v2421_v19, %v2613_v54  ;;  %v2713_v17 = vsel %vm2521_vm0, %v2425_v6, %v2617_v50  ;;  %v2717_v57 = vsel %vm2525_vm1, %v2429_v24, %v2621_v10  ;;  %v2721_v53 = vsel %vm2529_vm2, %v2433_v62, %v2625_v41 }
 0x1e2   :  { %v2725_v43 = vsel %vm2533_vm10, %v2437_v3, %v2629_v55  ;;  %v2729_v9 = vsel %vm2537_vm9, %v2441_v34, %v2633_v35  ;;  %v2733_v0 = vsel %vm2541_vm8, %v2445_v2, %v2637_v40  ;;  %v2775_v27 = vadd.f32 %v2677_v5, %v2673_v21 }
 0x1e3   :  { %v2803_v31 = vadd.f32 %v2685_v46, %v2681_v39  ;;  %v2831_v11 = vadd.f32 %v2693_v33, %v2689_v52  ;;  %v2859_v37 = vadd.f32 %v2701_v7, %v2697_v42  ;;  %v2887_v59 = vadd.f32 %v2709_v58, %v2705_v47 }
 0x1e4   :  { %v2915_v30 = vadd.f32 %v2717_v57, %v2713_v17  ;;  %v2776_v15 = vrot.slane %v2775_v27, 4  ;;  %v2943_v28 = vadd.f32 %v2725_v43, %v2721_v53  ;;  %v2971_v6 = vadd.f32 %v2733_v0, %v2729_v9 }
 0x1e5   :  { %v2804_v19 = vrot.slane %v2803_v31, 4  ;;  %v2832_v32 = vrot.slane %v2831_v11, 4  ;;  %v2860_v24 = vrot.slane %v2859_v37, 4  ;;  %v2888_v60 = vrot.slane %v2887_v59, 4 }
 0x1e6   :  { %v2916_v62 = vrot.slane %v2915_v30, 4  ;;  %v2777_v54 = vadd.f32 %v2776_v15, %v2775_v27  ;;  %v2944_v50 = vrot.slane %v2943_v28, 4  ;;  %v2972_v34 = vrot.slane %v2971_v6, 4 }
 0x1e7   :  { %v2805_v3 = vadd.f32 %v2804_v19, %v2803_v31  ;;  %v2833_v35 = vadd.f32 %v2832_v32, %v2831_v11  ;;  %v2861_v40 = vadd.f32 %v2860_v24, %v2859_v37  ;;  %v2889_v2 = vadd.f32 %v2888_v60, %v2887_v59 }
 0x1e8   :  { %v2917_v46 = vadd.f32 %v2916_v62, %v2915_v30  ;;  %v2778_v33 = vrot.slane %v2777_v54, 2  ;;  %v2945_v42 = vadd.f32 %v2944_v50, %v2943_v28  ;;  %v2973_v57 = vadd.f32 %v2972_v34, %v2971_v6 }
 0x1e9   :  { %v2806_v52 = vrot.slane %v2805_v3, 2  ;;  %v2834_v39 = vrot.slane %v2833_v35, 2  ;;  %v2862_v21 = vrot.slane %v2861_v40, 2  ;;  %v2890_v10 = vrot.slane %v2889_v2, 2 }
 0x1ea   :  { %v2918_v5 = vrot.slane %v2917_v46, 2  ;;  %v2779_v41 = vadd.f32 %v2778_v33, %v2777_v54  ;;  %v2946_v7 = vrot.slane %v2945_v42, 2  ;;  %v2974_v47 = vrot.slane %v2973_v57, 2 }
 0x1eb   :  { %v2807_v55 = vadd.f32 %v2806_v52, %v2805_v3  ;;  %v2835_v58 = vadd.f32 %v2834_v39, %v2833_v35  ;;  %v2863_v17 = vadd.f32 %v2862_v21, %v2861_v40  ;;  %v2891_v53 = vadd.f32 %v2890_v10, %v2889_v2  ;;  %v1513_v52 = vpop.f32.mrf.mxu0 }
 0x1ec   :  { %v2919_v43 = vadd.f32 %v2918_v5, %v2917_v46  ;;  %v2780_v9 = vrot.slane %v2779_v41, 1  ;;  %v2947_v27 = vadd.f32 %v2946_v7, %v2945_v42  ;;  %v2975_v31 = vadd.f32 %v2974_v47, %v2973_v57  ;;  %v1666_v42 = vpop.f32.mrf.mxu1 }
 0x1ed   :  { %v2808_v0 = vrot.slane %v2807_v55, 1  ;;  %v2836_v11 = vrot.slane %v2835_v58, 1  ;;  %v2864_v37 = vrot.slane %v2863_v17, 1  ;;  %v2892_v59 = vrot.slane %v2891_v53, 1 }
 0x1ee   :  { %v2920_v30 = vrot.slane %v2919_v43, 1  ;;  %v2781_v15 = vadd.f32 %v2780_v9, %v2779_v41  ;;  %v2948_v28 = vrot.slane %v2947_v27, 1  ;;  %v2976_v6 = vrot.slane %v2975_v31, 1 }
 0x1ef   :  { %v2809_v19 = vadd.f32 %v2808_v0, %v2807_v55  ;;  %v3941_v32 = vpack.c.bf16 %v8063_v4, %v8063_v4  ;;  %v10250_v24 = vpack.c.bf16 %v8051_v12, %v8051_v12  ;;  %v2837_v62 = vadd.f32 %v2836_v11, %v2835_v58 }
 0x1f0   :  { %v2865_v54 = vadd.f32 %v2864_v37, %v2863_v17  ;;  %v10251_v3 = vpack.c.bf16 %v8053_v51, %v8053_v51  ;;  %v2893_v34 = vadd.f32 %v2892_v59, %v2891_v53  ;;  %v8260_v35 = vmul.f32 0.0625, %v2781_v15 }
 0x1f1   :  { %v8253_v60 = vunpack.c.l.b16 %v10250_v24  ;;  %v8262_v40 = vmul.f32 0.0625, %v2809_v19  ;;  %v10252_v4 = vpack.c.bf16 %v8055_v16, %v8055_v16  ;;  %v2921_v12 = vadd.f32 %v2920_v30, %v2919_v43  ;;  %v10256_v43 = vld [vmem:[#allocation3_spill] sm:$0xff]  ;;  %v10257_v24 = vld [vmem:[#allocation4_spill] sm:$0xff] }
 0x1f2   :  { %v8258_v50 = vunpack.c.l.b16 %v10251_v3  ;;  %v2949_v46 = vadd.f32 %v2948_v28, %v2947_v27  ;;  %v8269_v33 = vmul.f32 0.0625, %v2837_v62  ;;  %v8275_v57 = vadd.f32 %v8099_v23, %v8112_v8 }
 0x1f3   :  { %v8267_v2 = vunpack.c.l.b16 %v10252_v4  ;;  %v8279_v39 = vadd.f32 %v8101_v44, %v8230_v48  ;;  %v2977_v16 = vadd.f32 %v2976_v6, %v2975_v31  ;;  %v8285_v5 = vmul.f32 0.0625, %v2865_v54  ;;  %v10258_v54 = vld [vmem:[#allocation5_spill] sm:$0xff] }
 0x1f4   :  { %vm10253_vm8 = vcmask 1041409   ;;  %v8292_v55 = vmul.f32 0.0625, %v2893_v34  ;;  %vm10254_vm9 = vcmask 1042434   ;;  %v8296_v48 = vadd.f32 %v1666_v42, %v1513_v52  ;;  %v10259_v34 = vld [vmem:[#allocation6_spill] sm:$0xff]  ;;  %v10261_v52 = vld [vmem:[#allocation8_spill] sm:$0xff] }
 0x1f5   :  { %v3215_v41 = vsel %vm10253_vm8, %v8262_v40, %v8260_v35  ;;  %v8298_v7 = vmul.f32 0.0625, %v2921_v12  ;;  %v8300_v47 = vmul.f32 0.0625, %v2949_v46  ;;  %vm10117_vm10 = vcmask 1044484   ;;  %v10260_v12 = vld [vmem:[#allocation7_spill] sm:$0xff] }
 0x1f6   :  { %v3216_v44 = vsel %vm10254_vm9, %v8269_v33, %v3215_v41  ;;  %vm10255_vm3 = vcmask 1043459   ;;  %v8304_v17 = vmul.f32 0.0625, %v2977_v16  ;;  %vm10116_vm4 = vcmask 1045509   ;;  %v10263_v41 = vld [vmem:[#allocation10_spill] sm:$0xff] }
 0x1f7   :  { %v3217_v58 = vsel %vm10255_vm3, %v8285_v5, %v3216_v44  ;;  %v2044_v9 = vsub.f32 %v10256_v43, %v7692_v26  ;;  %vm10115_vm5 = vcmask 1046534   ;;  %vm10114_vm6 = vcmask 1047559   ;;  %v10265_v43 = vld [vmem:[#allocation14_spill] sm:$0xff] }
 0x1f8   :  { %v3218_v53 = vsel %vm10117_vm10, %v8292_v55, %v3217_v58  ;;  %v3897_v27 = vpack.c.bf16 %v8260_v35, %v8260_v35  ;;  %v8330_v6 = vunpack.c.l.b16 %v3941_v32  ;;  %v2048_v62 = vsub.f32 %v10257_v24, %v7692_v26  ;;  %v10262_v32 = vld [vmem:[#allocation9_spill] sm:$0xff]  ;;  %v10264_v58 = vld [vmem:[#allocation12_spill] sm:$0xff]  ;;  %v10267_v24 = vld [vmem:[#allocation18_spill] sm:$0xff] }
 0x1f9   :  { %v3219_v0 = vsel %vm10116_vm4, %v8298_v7, %v3218_v53  ;;  %v2052_v3 = vsub.f32 %v10258_v54, %v7692_v26  ;;  %v2056_v4 = vsub.f32 %v10259_v34, %v7692_v26  ;;  %v2060_v46 = vsub.f32 %v10260_v12, %v7692_v26  ;;  %v10268_v34 = vld [vmem:[#allocation20_spill] sm:$0xff] }
 0x1fa   :  { %v3220_v31 = vsel %vm10115_vm5, %v8300_v47, %v3219_v0  ;;  %v2064_v42 = vsub.f32 %v10261_v52, %v7692_v26  ;;  %v2068_v16 = vsub.f32 %v10262_v32, %v7692_v26  ;;  %v2072_v44 = vsub.f32 %v10263_v41, %v7692_v26  ;;  %v10269_v52 = vld [vmem:[#allocation22_spill] sm:$0xff]  ;;  %v10270_v41 = vld [vmem:[#allocation24_spill] sm:$0xff] }
 0x1fb   :  { %v3221_v30 = vsel %vm10114_vm6, %v8304_v17, %v3220_v31  ;;  %v2076_v53 = vsub.f32 %v10264_v58, %v7692_v26  ;;  %v2080_v0 = vsub.f32 %v10265_v43, %v7692_v26  ;;  %v10266_v31 = vld [vmem:[#allocation16_spill] sm:$0xff]  ;;  %v2088_v54 = vsub.f32 %v10267_v24, %v7692_v26  ;;  %v10271_v58 = vld [vmem:[#allocation26_spill] sm:$0xff] }
 0x1fc   :  { %3286 = vmatprep.subr.mxu0 %v3221_v30  ;;  %3320 = vmatprep.mubr.f32.mxu0 %v3221_v30  ;;  %v2084_v30 = vsub.f32 %v10266_v31, %v7692_v26  ;;  %v2092_v12 = vsub.f32 %v10268_v34, %v7692_v26  ;;  %v2096_v32 = vsub.f32 %v10269_v52, %v7692_v26 }
 0x1fd   :  { %v2100_v23 = vsub.f32 %v10270_v41, %v7692_v26  ;;  %v2104_v10 = vsub.f32 %v10271_v58, %v7692_v26  ;;  %v2148_v43 = vmul.f32 %v7821_v38, %v2044_v9  ;;  %v2152_v21 = vmul.f32 %v7821_v38, %v2048_v62 }
 0x1fe   :  { %v2156_v31 = vmul.f32 %v7821_v38, %v2052_v3  ;;  %v2160_v24 = vmul.f32 %v7821_v38, %v2056_v4  ;;  %v2164_v51 = vmul.f32 %v7821_v38, %v2060_v46  ;;  %v2168_v34 = vmul.f32 %v7821_v38, %v2064_v42 }
 0x1ff   :  { %v2172_v52 = vmul.f32 %v7821_v38, %v2068_v16  ;;  %v2176_v28 = vmul.f32 %v7821_v38, %v2072_v44  ;;  %v2180_v41 = vmul.f32 %v7821_v38, %v2076_v53  ;;  %v2184_v26 = vmul.f32 %v7821_v38, %v2080_v0 }
 0x200   :  { %v2188_v9 = vmul.f32 %v7821_v38, %v2084_v30  ;;  %v2192_v62 = vmul.f32 %v7821_v38, %v2088_v54  ;;  %v2196_v3 = vmul.f32 %v7821_v38, %v2092_v12  ;;  %v2200_v4 = vmul.f32 %v7821_v38, %v2096_v32 }
 0x201   :  { %v2204_v46 = vmul.f32 %v7821_v38, %v2100_v23  ;;  %v2208_v42 = vmul.f32 %v7821_v38, %v2104_v10  ;;  %v2266_v16 = vmul.f32 %v7698_v14, %v2148_v43  ;;  %v2270_v44 = vmul.f32 %v7698_v14, %v2152_v21 }
 0x202   :  { %v2274_v53 = vmul.f32 %v7698_v14, %v2156_v31  ;;  %v2278_v0 = vmul.f32 %v7698_v14, %v2160_v24  ;;  %v2282_v30 = vmul.f32 %v7698_v14, %v2164_v51  ;;  %v2286_v54 = vmul.f32 %v7698_v14, %v2168_v34 }
 0x203   :  { %v2290_v12 = vmul.f32 %v7698_v14, %v2172_v52  ;;  %v2294_v32 = vmul.f32 %v7698_v14, %v2176_v28  ;;  %v2298_v23 = vmul.f32 %v7698_v14, %v2180_v41  ;;  %v2302_v38 = vmul.f32 %v7698_v14, %v2184_v26 }
 0x204   :  { %v2306_v10 = vmul.f32 %v7698_v14, %v2188_v9  ;;  %v2310_v21 = vmul.f32 %v7698_v14, %v2192_v62  ;;  %v2314_v58 = vmul.f32 %v7698_v14, %v2196_v3  ;;  %v2318_v43 = vmul.f32 %v7698_v14, %v2200_v4 }
 0x205   :  { %v2322_v51 = vmul.f32 %v7698_v14, %v2204_v46  ;;  %v2326_v31 = vmul.f32 %v7698_v14, %v2208_v42  ;;  %v2384_v24 = vadd.f32 %v10194_v13, %v2266_v16  ;;  %v2388_v28 = vadd.f32 %v10194_v13, %v2270_v44 }
 0x206   :  { %v2392_v34 = vadd.f32 %v10194_v13, %v2274_v53  ;;  %v2396_v52 = vadd.f32 %v10194_v13, %v2278_v0  ;;  %v2400_v41 = vadd.f32 %v10194_v13, %v2282_v30  ;;  %v2404_v26 = vadd.f32 %v10194_v13, %v2286_v54  ;;  %v8410_v0 = vpop.f32.mrf.mxu0  ;;  %v8412_v30 = vpop.f32.mrf.mxu1 }
 0x207   :  { %v2408_v9 = vadd.f32 %v10194_v13, %v2290_v12  ;;  %v2412_v62 = vadd.f32 %v10194_v13, %v2294_v32  ;;  %v2416_v3 = vadd.f32 %v10194_v13, %v2298_v23  ;;  %v2420_v14 = vadd.f32 %v10194_v13, %v2302_v38 }
 0x208   :  { %v2424_v4 = vadd.f32 %v10194_v13, %v2306_v10  ;;  %v2428_v46 = vadd.f32 %v10194_v13, %v2310_v21  ;;  %v2432_v42 = vadd.f32 %v10194_v13, %v2314_v58  ;;  %v2436_v16 = vadd.f32 %v10194_v13, %v2318_v43  ;;  %v8423_v37 = vpop.f32.mrf.mxu0  ;;  %v8425_v11 = vpop.f32.mrf.mxu1 }
 0x209   :  { %v2440_v44 = vadd.f32 %v10194_v13, %v2322_v51  ;;  %v2444_v53 = vadd.f32 %v10194_v13, %v2326_v31  ;;  %vm2480_vm7 = vcmp.ge.f32.partialorder %v2384_v24, 0.0  ;;  %vm2484_vm11 = vcmp.ge.f32.partialorder %v2388_v28, 0.0 }
 0x20a   :  { %vm2488_vm12 = vcmp.ge.f32.partialorder %v2392_v34, 0.0  ;;  %vm2492_vm13 = vcmp.ge.f32.partialorder %v2396_v52, 0.0  ;;  %vm2496_vm14 = vcmp.ge.f32.partialorder %v2400_v41, 0.0  ;;  %vm2500_vm15 = vcmp.ge.f32.partialorder %v2404_v26, 0.0 }
 0x20b   :  { %vm2504_vm0 = vcmp.ge.f32.partialorder %v2408_v9, 0.0  ;;  %vm2508_vm1 = vcmp.ge.f32.partialorder %v2412_v62, 0.0  ;;  %vm2512_vm2 = vcmp.ge.f32.partialorder %v2416_v3, 0.0  ;;  %vm2516_vm8 = vcmp.ge.f32.partialorder %v2420_v14, 0.0 }
 0x20c   :  { %vm2520_vm9 = vcmp.ge.f32.partialorder %v2424_v4, 0.0  ;;  %vm2524_vm3 = vcmp.ge.f32.partialorder %v2428_v46, 0.0  ;;  %vm2528_vm6 = vcmp.ge.f32.partialorder %v2432_v42, 0.0  ;;  %vm2532_vm5 = vcmp.ge.f32.partialorder %v2436_v16, 0.0 }
 0x20d   :  { %vm2536_vm4 = vcmp.ge.f32.partialorder %v2440_v44, 0.0  ;;  %vm2540_vm10 = vcmp.ge.f32.partialorder %v2444_v53, 0.0  ;;  %v2576_v54 = vmul.f32 0.1, %v2384_v24  ;;  %v2580_v12 = vmul.f32 0.1, %v2388_v28 }
 0x20e   :  { %v2584_v32 = vmul.f32 0.1, %v2392_v34  ;;  %v8419_v23 = vunpack.c.l.b16 %v3897_v27  ;;  %v2588_v38 = vmul.f32 0.1, %v2396_v52  ;;  %v2592_v10 = vmul.f32 0.1, %v2400_v41 }
 0x20f   :  { %v2596_v21 = vmul.f32 0.1, %v2404_v26  ;;  %v2600_v58 = vmul.f32 0.1, %v2408_v9  ;;  %v2604_v43 = vmul.f32 0.1, %v2412_v62  ;;  %v2672_v31 = vsel %vm2480_vm7, %v2384_v24, %v2576_v54 }
 0x210   :  { %v2608_v51 = vmul.f32 0.1, %v2416_v3  ;;  %v2612_v19 = vmul.f32 0.1, %v2420_v14  ;;  %v2616_v15 = vmul.f32 0.1, %v2424_v4  ;;  %v2676_v13 = vsel %vm2484_vm11, %v2388_v28, %v2580_v12 }
 0x211   :  { %v2620_v59 = vmul.f32 0.1, %v2428_v46  ;;  %v2624_v35 = vmul.f32 0.1, %v2432_v42  ;;  %v2628_v27 = vmul.f32 0.1, %v2436_v16  ;;  %v2680_v8 = vsel %vm2488_vm12, %v2392_v34, %v2584_v32  ;;  %v8439_v32 = vpop.f32.mrf.mxu0 }
 0x212   :  { %v2632_v63 = vmul.f32 0.1, %v2440_v44  ;;  %v2636_v56 = vmul.f32 0.1, %v2444_v53  ;;  %v2684_v49 = vsel %vm2492_vm13, %v2396_v52, %v2588_v38  ;;  %v2688_v45 = vsel %vm2496_vm14, %v2400_v41, %v2592_v10  ;;  %v8441_v41 = vpop.f32.mrf.mxu1 }
 0x213   :  { %v2692_v24 = vsel %vm2500_vm15, %v2404_v26, %v2596_v21  ;;  %v2696_v54 = vsel %vm2504_vm0, %v2408_v9, %v2600_v58  ;;  %v2700_v28 = vsel %vm2508_vm1, %v2412_v62, %v2604_v43  ;;  %v2704_v12 = vsel %vm2512_vm2, %v2416_v3, %v2608_v51  ;;  %v8445_v43 = vpop.f32.mrf.mxu0 }
 0x214   :  { %v2708_v18 = vsel %vm2516_vm8, %v2420_v14, %v2612_v19  ;;  %v2712_v61 = vsel %vm2520_vm9, %v2424_v4, %v2616_v15  ;;  %v2716_v36 = vsel %vm2524_vm3, %v2428_v46, %v2620_v59  ;;  %v2720_v34 = vsel %vm2528_vm6, %v2432_v42, %v2624_v35  ;;  %v8447_v51 = vpop.f32.mrf.mxu1 }
 0x215   :  { %v2724_v52 = vsel %vm2532_vm5, %v2436_v16, %v2628_v27  ;;  %v2728_v26 = vsel %vm2536_vm4, %v2440_v44, %v2632_v63  ;;  %v2732_v9 = vsel %vm2540_vm10, %v2444_v53, %v2636_v56  ;;  %v2768_v62 = vadd.f32 %v2676_v13, %v2672_v31 }
 0x216   :  { %v2796_v3 = vadd.f32 %v2684_v49, %v2680_v8  ;;  %v2824_v38 = vadd.f32 %v2692_v24, %v2688_v45  ;;  %v2852_v19 = vadd.f32 %v2700_v28, %v2696_v54  ;;  %v2880_v14 = vadd.f32 %v2708_v18, %v2704_v12  ;;  %v8449_v28 = vpop.f32.mrf.mxu0  ;;  %v8451_v12 = vpop.f32.mrf.mxu1 }
 0x217   :  { %v2908_v15 = vadd.f32 %v2716_v36, %v2712_v61  ;;  %v2769_v4 = vrot.slane %v2768_v62, 4  ;;  %v2936_v46 = vadd.f32 %v2724_v52, %v2720_v34  ;;  %v2964_v42 = vadd.f32 %v2732_v9, %v2728_v26 }
 0x218   :  { %v2797_v59 = vrot.slane %v2796_v3, 4  ;;  %v2825_v10 = vrot.slane %v2824_v38, 4  ;;  %v2853_v16 = vrot.slane %v2852_v19, 4  ;;  %v2881_v21 = vrot.slane %v2880_v14, 4 }
 0x219   :  { %v2909_v58 = vrot.slane %v2908_v15, 4  ;;  %v2770_v63 = vadd.f32 %v2769_v4, %v2768_v62  ;;  %v2937_v44 = vrot.slane %v2936_v46, 4  ;;  %v2965_v49 = vrot.slane %v2964_v42, 4 }
 0x21a   :  { %v2798_v56 = vadd.f32 %v2797_v59, %v2796_v3  ;;  %v2826_v45 = vadd.f32 %v2825_v10, %v2824_v38  ;;  %v2854_v8 = vadd.f32 %v2853_v16, %v2852_v19  ;;  %v2882_v18 = vadd.f32 %v2881_v21, %v2880_v14  ;;  %v8453_v21 = vpop.f32.mrf.mxu0 }
 0x21b   :  { %v2910_v36 = vadd.f32 %v2909_v58, %v2908_v15  ;;  %v2771_v61 = vrot.slane %v2770_v63, 2  ;;  %v2938_v13 = vadd.f32 %v2937_v44, %v2936_v46  ;;  %v2966_v31 = vadd.f32 %v2965_v49, %v2964_v42  ;;  %v8455_v58 = vpop.f32.mrf.mxu1 }
 0x21c   :  { %v2799_v53 = vrot.slane %v2798_v56, 2  ;;  %v2827_v35 = vrot.slane %v2826_v45, 2  ;;  %v2855_v27 = vrot.slane %v2854_v8, 2  ;;  %v2883_v24 = vrot.slane %v2882_v18, 2 }
 0x21d   :  { %v2911_v54 = vrot.slane %v2910_v36, 2  ;;  %v2772_v34 = vadd.f32 %v2771_v61, %v2770_v63  ;;  %v2939_v26 = vrot.slane %v2938_v13, 2  ;;  %v2967_v9 = vrot.slane %v2966_v31, 2 }
 0x21e   :  { %v2800_v52 = vadd.f32 %v2799_v53, %v2798_v56  ;;  %v2828_v62 = vadd.f32 %v2827_v35, %v2826_v45  ;;  %v2856_v3 = vadd.f32 %v2855_v27, %v2854_v8  ;;  %v2884_v38 = vadd.f32 %v2883_v24, %v2882_v18 }
 0x21f   :  { %v2912_v19 = vadd.f32 %v2911_v54, %v2910_v36  ;;  %v2773_v14 = vrot.slane %v2772_v34, 1  ;;  %v2940_v4 = vadd.f32 %v2939_v26, %v2938_v13  ;;  %v2968_v59 = vadd.f32 %v2967_v9, %v2966_v31  ;;  %v8473_v9 = vpop.f32.mrf.mxu0 }
 0x220   :  { %v2801_v15 = vrot.slane %v2800_v52, 1  ;;  %v2829_v46 = vrot.slane %v2828_v62, 1  ;;  %v2857_v42 = vrot.slane %v2856_v3, 1  ;;  %v2885_v10 = vrot.slane %v2884_v38, 1 }
 0x221   :  { %v2913_v16 = vrot.slane %v2912_v19, 1  ;;  %v2774_v63 = vadd.f32 %v2773_v14, %v2772_v34  ;;  %v2941_v44 = vrot.slane %v2940_v4, 1  ;;  %v2969_v49 = vrot.slane %v2968_v59, 1 }
 0x222   :  { %v2802_v56 = vadd.f32 %v2801_v15, %v2800_v52  ;;  %v10272_v45 = vpack.c.bf16 %v8262_v40, %v8262_v40  ;;  %v2830_v18 = vadd.f32 %v2829_v46, %v2828_v62  ;;  %v2858_v36 = vadd.f32 %v2857_v42, %v2856_v3  ;;  %v8475_v62 = vpop.f32.mrf.mxu1 }
 0x223   :  { %v2886_v61 = vadd.f32 %v2885_v10, %v2884_v38  ;;  %v10273_v53 = vpack.c.bf16 %v8269_v33, %v8269_v33  ;;  %v2914_v31 = vadd.f32 %v2913_v16, %v2912_v19  ;;  %v3105_v35 = vmul.f32 0.0625, %v2774_v63 }
 0x224   :  { %v4125_v8 = vunpack.c.l.b16 %v10272_v45  ;;  %v3109_v27 = vmul.f32 0.0625, %v2802_v56  ;;  %v10274_v24 = vpack.c.bf16 %v8285_v5, %v8285_v5  ;;  %v10275_v34 = vpack.c.bf16 %v8292_v55, %v8292_v55  ;;  %v1533_v45 = vpop.f32.mrf.mxu0 }
 0x225   :  { %v4129_v13 = vunpack.c.l.b16 %v10273_v53  ;;  %v2942_v40 = vadd.f32 %v2941_v44, %v2940_v4  ;;  %v8471_v26 = vmul.f32 0.0625, %v2830_v18  ;;  %v1890_v33 = vmul.f32 %v8296_v48, %v8296_v48 }
 0x226   :  { %v4133_v54 = vunpack.c.l.b16 %v10274_v24  ;;  %v8469_v52 = vunpack.c.l.b16 %v10275_v34  ;;  %v2970_v3 = vadd.f32 %v2969_v49, %v2968_v59  ;;  %v8479_v38 = vmul.f32 0.0625, %v2858_v36 }
 0x227   :  { %vm10276_vm10 = vcmask 1041409   ;;  %v10277_v55 = vpack.c.bf16 %v8298_v7, %v8298_v7  ;;  %v8485_v14 = vmul.f32 0.0625, %v2886_v61  ;;  %vm10278_vm4 = vcmask 1042434  }
 0x228   :  { %v3202_v5 = vsel %vm10276_vm10, %v3109_v27, %v3105_v35  ;;  %v3896_v4 = vpack.c.bf16 %v3105_v35, %v3105_v35  ;;  %v8489_v46 = vmul.f32 0.0625, %v2914_v31  ;;  %vm10279_vm5 = vcmask 1043459   ;;  %vm10286_vm13 = vmmov %vm10276_vm10 }
 0x229   :  { %v4141_v19 = vunpack.c.l.b16 %v10277_v55  ;;  %v3204_v15 = vsel %vm10278_vm4, %v8471_v26, %v3202_v5  ;;  %v8495_v59 = vadd.f32 %v8412_v30, %v8410_v0  ;;  %v8499_v10 = vadd.f32 %v8425_v11, %v8423_v37  ;;  %v1686_v0 = vpop.f32.mrf.mxu1  ;;  %v6405_v55 = vld [vmem:[%s10007_s5 + $0xc4] ss:$16 sps:$4 sm:$0xff]   ;;  %vm10287_vm14 = vmmov %vm10278_vm4 }
 0x22a   :  { %v3206_v42 = vsel %vm10279_vm5, %v8479_v38, %v3204_v15  ;;  %v10280_v7 = vpack.c.bf16 %v8300_v47, %v8300_v47  ;;  %v10281_v63 = vpack.c.bf16 %v8304_v17, %v8304_v17  ;;  %v8507_v44 = vmul.f32 0.0625, %v2942_v40  ;;  %v6402_v17 = vld [vmem:[%s10007_s5 + $0xe4] ss:$16 sps:$4 sm:$0xff]   ;;  %vm10288_vm15 = vmmov %vm10276_vm10 }
 0x22b   :  { %vm10282_vm6 = vcmask 1044484   ;;  %v1770_v30 = vadd.f32 %v8104_v22, %v8296_v48  ;;  %v1987_v11 = vadd.f32 %v8106_v1, %v1890_v33  ;;  %v8514_v37 = vmul.f32 0.0625, %v2970_v3  ;;  %v1535_v33 = vpop.f32.mrf.mxu0  ;;  %v1688_v3 = vpop.f32.mrf.mxu1  ;;  %vm10289_vm0 = vmmov %vm10279_vm5 }
 0x22c   :  { %v4145_v16 = vunpack.c.l.b16 %v10280_v7  ;;  %v4149_v56 = vunpack.c.l.b16 %v10281_v63  ;;  %v3208_v49 = vsel %vm10282_vm6, %v8485_v14, %v3206_v42  ;;  %vm10283_vm7 = vcmask 1045509   ;;  %vm10290_vm1 = vmmov %vm10278_vm4 }
 0x22d   :  { %v3210_v47 = vsel %vm10283_vm7, %v8489_v46, %v3208_v49  ;;  %vm10284_vm11 = vcmask 1046534   ;;  %v3900_v36 = vpack.c.bf16 %v3109_v27, %v3109_v27  ;;  %v3904_v61 = vpack.c.bf16 %v8471_v26, %v8471_v26  ;;  %v6400_v27 = vld [vmem:[%s10007_s5 + $0xe0] ss:$16 sps:$4 sm:$0xff]   ;;  %vm10291_vm2 = vmmov %vm10282_vm6  ;;  %v1537_v7 = vpop.f32.mrf.mxu0 }
 0x22e   :  { %v3212_v18 = vsel %vm10284_vm11, %v8507_v44, %v3210_v47  ;;  %v8525_v53 = vunpack.c.l.b16 %v3896_v4  ;;  %vm10285_vm12 = vcmask 1047559   ;;  %v1799_v1 = vadd.f32 %v8275_v57, %v8495_v59  ;;  %v6403_v4 = vld [vmem:[%s10007_s5 + $0xc0] ss:$16 sps:$4 sm:$0xff]   ;;  %vm10292_vm8 = vmmov %vm10289_vm0 }
 0x22f   :  { %v3214_v22 = vsel %vm10285_vm12, %v8514_v37, %v3212_v18  ;;  %v1891_v31 = vmul.f32 %v8495_v59, %v8495_v59  ;;  %v1771_v35 = vadd.f32 %v1770_v30, %v8499_v10  ;;  %v1894_v24 = vmul.f32 %v8499_v10, %v8499_v10  ;;  %vm10293_vm9 = vmmov %vm10283_vm7  ;;  %v6408_v30 = vld [vmem:[%s10007_s5 + $0xa4] ss:$16 sps:$4 sm:$0xff]  }
 0x230   :  { %3287 = vmatpush1.xpose.msra.mxu0 %v3214_v22  ;;  %v8541_v34 = vadd.f32 %v8441_v41, %v8439_v32  ;;  %v8545_v57 = vadd.f32 %v8447_v51, %v8445_v43  ;;  %v4175_v40 = vsel %vm10286_vm13, %v4125_v8, %v8419_v23  ;;  %v4199_v32 = vsel %vm10288_vm15, %v8258_v50, %v8253_v60  ;;  %vm10294_vm3 = vmmov %vm10284_vm11 }
 0x231   :  { %v2016_v5 = vadd.f32 %v8279_v39, %v1891_v31  ;;  %4856 = vmatprep.subr.bf16.mxu0 %v6402_v17  ;;  %v4176_v15 = vsel %vm10287_vm14, %v4129_v13, %v4175_v40  ;;  %v8559_v41 = vadd.f32 %v8451_v12, %v8449_v28  ;;  %v1988_v23 = vadd.f32 %v1987_v11, %v1894_v24  ;;  %vm10295_vm10 = vmmov %vm10285_vm12  ;;  %v10297_v40 = vld [vmem:[#allocation25_spill] sm:$0xff] }
 0x232   :  { %v1800_v43 = vadd.f32 %v1799_v1, %v8541_v34  ;;  %v1895_v39 = vmul.f32 %v8541_v34, %v8541_v34  ;;  %v1772_v51 = vadd.f32 %v1771_v35, %v8545_v57  ;;  %v1898_v8 = vmul.f32 %v8545_v57, %v8545_v57  ;;  %vm10301_vm4 = vmmov %vm10286_vm13 }
 0x233   :  { %3321 = vmatmul.mubr.f32.vlgmr.msra.gmra.mxu0 %v3214_v22  ;;  %v4177_v13 = vsel %vm10289_vm0, %v4133_v54, %v4176_v15  ;;  %v4200_v60 = vsel %vm10290_vm1, %v8267_v2, %v4199_v32  ;;  %v1899_v50 = vmul.f32 %v8559_v41, %v8559_v41  ;;  %v4124_v28 = vunpack.c.l.b16 %v3900_v36  ;;  %v1690_v2 = vpop.f32.mrf.mxu1  ;;  %v6411_v22 = vld [vmem:[%s10007_s5 + $0x84] ss:$16 sps:$4 sm:$0xff]   ;;  %vm10302_vm5 = vmmov %vm10301_vm4 }
 0x234   :  { %3325 = vmatprep.mubr.f32.mxu0 %v8076_v25  ;;  %4857 = vmatpush1.bf16.msra.mxu0 %v6400_v27  ;;  %v2017_v12 = vadd.f32 %v2016_v5, %v1895_v39  ;;  %v4178_v42 = vsel %vm10291_vm2, %v8469_v52, %v4177_v13  ;;  %v4201_v54 = vsel %vm10292_vm8, %v8330_v6, %v4200_v60  ;;  %v10299_v39 = vld [vmem:[#allocation27_spill] sm:$0xff]  ;;  %vm10305_vm6 = vmmov %vm10290_vm1 }
 0x235   :  { %4858 = vmatprep.subr.bf16.mxu0 %v6405_v55  ;;  %v1989_v63 = vadd.f32 %v1988_v23, %v1898_v8  ;;  %v4179_v49 = vsel %vm10293_vm9, %v4141_v19, %v4178_v42  ;;  %v1801_v25 = vadd.f32 %v1800_v43, %v8559_v41  ;;  %v8587_v11 = vadd.f32 %v8455_v58, %v8453_v21  ;;  %v6409_v13 = vld [vmem:[%s10007_s5 + $0x80] ss:$16 sps:$4 sm:$0xff]   ;;  %vm10306_vm7 = vmmov %vm10290_vm1 }
 0x236   :  { %v4180_v52 = vsel %vm10294_vm3, %v4145_v16, %v4179_v49  ;;  %v2018_v47 = vadd.f32 %v2017_v12, %v1899_v50  ;;  %v8592_v6 = vadd.f32 %v8475_v62, %v8473_v9  ;;  %v8594_v17 = vadd.f32 %v1686_v0, %v1533_v45  ;;  %v6406_v9 = vld [vmem:[%s10007_s5 + $0xa0] ss:$16 sps:$4 sm:$0xff]   ;;  %v1692_v45 = vpop.f32.mrf.mxu1  ;;  %v6414_v12 = vld [vmem:[%s10007_s5 + $0x64] ss:$16 sps:$4 sm:$0xff]   ;;  %vm10307_vm11 = vmmov %vm10289_vm0 }
 0x237   :  { %3326 = vmatmul.mubr.f32.gmra.mxu0 %v8200_v29  ;;  %v4181_v19 = vsel %vm10295_vm10, %v4149_v56, %v4180_v52  ;;  %v1773_v18 = vadd.f32 %v1772_v51, %v8587_v11  ;;  %v1902_v36 = vmul.f32 %v8587_v11, %v8587_v11  ;;  %v8601_v21 = vadd.f32 %v1688_v3, %v1535_v33  ;;  %v1539_v56 = vpop.f32.mrf.mxu0  ;;  %v10303_v49 = vld [vmem:[#allocation11_spill] sm:$0xff]  ;;  %vm10308_vm12 = vmmov %vm10289_vm0 }
 0x238   :  { %4859 = vmatpush1.bf16.msra.mxu0 %v6403_v4  ;;  %v8603_v58 = vpack.c.b16 %v4201_v54, %v4181_v19  ;;  %v1802_v62 = vadd.f32 %v1801_v25, %v8592_v6  ;;  %v1903_v29 = vmul.f32 %v8592_v6, %v8592_v6  ;;  %v1906_v16 = vmul.f32 %v8594_v17, %v8594_v17  ;;  %v6412_v52 = vld [vmem:[%s10007_s5 + $0x60] ss:$16 sps:$4 sm:$0xff]   ;;  %vm10309_vm13 = vmmov %vm10291_vm2 }
 0x239   :  { %4860 = vmatprep.subr.bf16.mxu0 %v6408_v30  ;;  %v1990_v0 = vadd.f32 %v1989_v63, %v1902_v36  ;;  %v1774_v1 = vadd.f32 %v1773_v18, %v8594_v17  ;;  %v1907_v31 = vmul.f32 %v8601_v21, %v8601_v21  ;;  %v8619_v35 = vadd.f32 %v1690_v2, %v1537_v7  ;;  %vm10310_vm14 = vmmov %vm10293_vm9 }
 0x23a   :  { %v10296_v27 = vpack.c.bf16 %v8162_v20, %v8162_v20  ;;  %v10298_v33 = vpack.c.bf16 %v10297_v40, %v10297_v40  ;;  %4888 = vmatprep.mubr.bf16.mxu0 %v8603_v58  ;;  %v2019_v5 = vadd.f32 %v2018_v47, %v1903_v29  ;;  %v1803_v55 = vadd.f32 %v1802_v62, %v8601_v21  ;;  %v6417_v62 = vld [vmem:[%s10007_s5 + $0x44] ss:$16 sps:$4 sm:$0xff]   ;;  %vm10311_vm15 = vmmov %vm10294_vm3 }
 0x23b   :  { %v1991_v15 = vadd.f32 %v1990_v0, %v1906_v16  ;;  %v1775_v32 = vadd.f32 %v1774_v1, %v8619_v35  ;;  %v1910_v23 = vmul.f32 %v8619_v35, %v8619_v35  ;;  %v8632_v43 = vadd.f32 %v1692_v45, %v1539_v56  ;;  %vm10315_vm0 = vmmov %vm10295_vm10 }
 0x23c   :  { %v4152_v24 = vunpack.c.l.b16 %v10296_v27  ;;  %v4156_v3 = vunpack.c.l.b16 %v10298_v33  ;;  %v10300_v20 = vpack.c.bf16 %v10299_v39, %v10299_v39  ;;  %v4128_v8 = vunpack.c.l.b16 %v3904_v61  ;;  %4861 = vmatpush1.bf16.msra.mxu0 %v6406_v9 }
 0x23d   :  { %v2020_v60 = vadd.f32 %v2019_v5, %v1907_v31  ;;  %v4168_v50 = vsel %vm10301_vm4, %v4124_v28, %v8525_v53  ;;  %4862 = vmatprep.subr.bf16.mxu0 %v6411_v22  ;;  %v1776_v4 = vrot.slane %v1775_v32, 4  ;;  %v1992_v42 = vadd.f32 %v1991_v15, %v1910_v23  ;;  %v6415_v31 = vld [vmem:[%s10007_s5 + $0x40] ss:$16 sps:$4 sm:$0xff]  }
 0x23e   :  { %v4160_v51 = vunpack.c.l.b16 %v10300_v20  ;;  %v1804_v54 = vadd.f32 %v1803_v55, %v8632_v43  ;;  %v1911_v26 = vmul.f32 %v8632_v43, %v8632_v43  ;;  %v3908_v61 = vpack.c.bf16 %v8479_v38, %v8479_v38 }
 0x23f   :  { %v4196_v7 = vsel %vm10302_vm5, %v4156_v3, %v4152_v24  ;;  %v1777_v2 = vadd.f32 %v1776_v4, %v1775_v32  ;;  %v1993_v63 = vrot.slane %v1992_v42, 4  ;;  %v10304_v25 = vpack.c.bf16 %v10303_v49, %v10303_v49  ;;  %v6426_v49 = vld [vmem:[%s10007_s5 + $0x1e4] ss:$16 sps:$4 sm:$0xff]  }
 0x240   :  { %v1805_v53 = vrot.slane %v1804_v54, 4  ;;  %v2021_v28 = vadd.f32 %v2020_v60, %v1911_v26  ;;  %4863 = vmatpush1.bf16.msra.mxu0 %v6409_v13  ;;  %v4169_v47 = vsel %vm10305_vm6, %v4128_v8, %v4168_v50  ;;  %v4197_v19 = vsel %vm10306_vm7, %v4160_v51, %v4196_v7  ;;  %v6418_v51 = vld [vmem:[%s10007_s5 + $0x20] ss:$16 sps:$4 sm:$0xff]  }
 0x241   :  { %v4164_v30 = vunpack.c.l.b16 %v10304_v25  ;;  %4864 = vmatprep.subr.bf16.mxu0 %v6414_v12  ;;  %v1778_v38 = vrot.slane %v1777_v2, 2  ;;  %v1994_v18 = vadd.f32 %v1993_v63, %v1992_v42  ;;  %v3912_v29 = vpack.c.bf16 %v8485_v14, %v8485_v14  ;;  %v6420_v14 = vld [vmem:[%s10007_s5 + $0x24] ss:$16 sps:$4 sm:$0xff]   ;;  %v6421_v7 = vld [vmem:[%s10007_s5] ss:$16 sps:$4 sm:$0xff]  }
 0x242   :  { %v1806_v36 = vadd.f32 %v1805_v53, %v1804_v54  ;;  %v2022_v9 = vrot.slane %v2021_v28, 4  ;;  %v4132_v16 = vunpack.c.l.b16 %v3908_v61  ;;  %v3916_v5 = vpack.c.bf16 %v8489_v46, %v8489_v46  ;;  %v6423_v12 = vld [vmem:[%s10007_s5 + $0x4] ss:$16 sps:$4 sm:$0xff]  }
 0x243   :  { %v8668_v56 = vsel %vm10307_vm11, %v4164_v30, %v4197_v19  ;;  %v1779_v45 = vadd.f32 %v1778_v38, %v1777_v2  ;;  %v1995_v0 = vrot.slane %v1994_v18, 2  ;;  %v4136_v55 = vunpack.c.l.b16 %v3912_v29 }
 0x244   :  { %v1807_v22 = vrot.slane %v1806_v36, 2  ;;  %v2023_v1 = vadd.f32 %v2022_v9, %v2021_v28  ;;  %4865 = vmatpush1.bf16.msra.mxu0 %v6412_v52  ;;  %v4170_v27 = vsel %vm10308_vm12, %v4132_v16, %v4169_v47  ;;  %v3920_v20 = vpack.c.bf16 %v8507_v44, %v8507_v44  ;;  %v10312_v47 = vld [vmem:[#allocation29_spill] sm:$0xff] }
 0x245   :  { %v1780_v24 = vrot.slane %v1779_v45, 1  ;;  %v1996_v40 = vadd.f32 %v1995_v0, %v1994_v18  ;;  %4866 = vmatprep.subr.bf16.mxu0 %v6417_v62  ;;  %v4171_v8 = vsel %vm10309_vm13, %v4136_v55, %v4170_v27  ;;  %v4140_v4 = vunpack.c.l.b16 %v3916_v5  ;;  %v6424_v18 = vld [vmem:[%s10007_s5 + $0x1e0] ss:$16 sps:$4 sm:$0xff]   ;;  %v6429_v62 = vld [vmem:[%s10007_s5 + $0x1c4] ss:$16 sps:$4 sm:$0xff]  }
 0x246   :  { %v1808_v33 = vadd.f32 %v1807_v22, %v1806_v36  ;;  %v2024_v3 = vrot.slane %v2023_v1, 2  ;;  %v3924_v26 = vpack.c.bf16 %v8514_v37, %v8514_v37  ;;  %v4144_v63 = vunpack.c.l.b16 %v3920_v20  ;;  %v6621_v22 = vld [vmem:[%s10006_s4] sm:$0xf]  ;;  %v10317_v5 = vld [vmem:[#allocation65_spill] sm:$0xff] }
 0x247   :  { %v1781_v15 = vadd.f32 %v1780_v24, %v1779_v45  ;;  %v1997_v32 = vrot.slane %v1996_v40, 1  ;;  %v4172_v2 = vsel %vm10310_vm14, %v4140_v4, %v4171_v8  ;;  %v8707_v19 = vsub.s32 2, %v10312_v47  ;;  %v6620_v45 = vld [vmem:[%s10005_s3] sm:$0xf]  ;;  %v6435_v4 = vld [vmem:[%s10007_s5 + $0x184] ss:$16 sps:$4 sm:$0xff]  }
 0x248   :  { %v1809_v23 = vrot.slane %v1808_v33, 1  ;;  %v2025_v39 = vadd.f32 %v2024_v3, %v2023_v1  ;;  %4867 = vmatpush1.bf16.msra.mxu0 %v6415_v31  ;;  %v4173_v30 = vsel %vm10311_vm15, %v4144_v63, %v4172_v2  ;;  %v4148_v52 = vunpack.c.l.b16 %v3924_v26  ;;  %v6427_v27 = vld [vmem:[%s10007_s5 + $0x1c0] ss:$16 sps:$4 sm:$0xff]   ;;  %v6432_v3 = vld [vmem:[%s10007_s5 + $0x1a4] ss:$16 sps:$4 sm:$0xff]   ;;  %v10322_v63 = vld [vmem:[#allocation34_spill] sm:$0xff] }
 0x249   :  { %v8685_v13 = vmul.f32 0.0052083335, %v1781_v15  ;;  %v1998_v60 = vadd.f32 %v1997_v32, %v1996_v40  ;;  %4868 = vmatprep.subr.bf16.mxu0 %v6420_v14  ;;  %10313 = vst [vmem:[#allocation13_spill] sm:$0xff] %v8707_v19  ;;  %v8713_v9 = vsub.s32 3, %v10312_v47  ;;  %v8723_v0 = vrot.slane %v6620_v45, %v8707_v19 }
 0x24a   :  { %v1810_v50 = vadd.f32 %v1809_v23, %v1808_v33  ;;  %v2026_v46 = vrot.slane %v2025_v39, 1  ;;  %v4174_v16 = vsel %vm10315_vm0, %v4148_v52, %v4173_v30  ;;  %v8729_v1 = vrot.slane %v6621_v22, %v8707_v19  ;;  %v10335_v52 = vld [vmem:[#allocation62_spill] sm:$0xff]  ;;  %v10336_v30 = vld [vmem:[#allocation64_spill] sm:$0xff] }
 0x24b   :  { %v2030_v42 = vmul.f32 0.0052083335, %v1998_v60  ;;  %v2034_v44 = vmul.f32 %v8685_v13, %v8685_v13  ;;  %10314 = vst [vmem:[#allocation15_spill] sm:$0xff] %v8713_v9  ;;  %v2138_v24 = vsub.f32 %v8619_v35, %v8685_v13  ;;  %v8737_v40 = vrot.slane %v6620_v45, %v8713_v9  ;;  %v10318_v35 = vld [vmem:[#allocation67_spill] sm:$0xff] }
 0x24c   :  { %v8692_v54 = vmul.f32 0.0052083335, %v1810_v50  ;;  %v2027_v61 = vadd.f32 %v2026_v46, %v2025_v39  ;;  %4869 = vmatpush1.bf16.msra.mxu0 %v6418_v51  ;;  %10316 = vst [vmem:[#allocation17_spill] sm:$0xff] %v8729_v1  ;;  %v8740_v33 = vrot.slane %v6621_v22, %v8713_v9  ;;  %v8746_v14 = vpack.c.b16 %v8668_v56, %v4174_v16  ;;  %v10319_v39 = vld [vmem:[#allocation66_spill] sm:$0xff]  ;;  %v10320_v51 = vld [vmem:[#allocation68_spill] sm:$0xff]  ;;  %v10330_v16 = vld [vmem:[#allocation53_spill] sm:$0xff] }
 0x24d   :  { %v2038_v53 = vsub.f32 %v2030_v42, %v2034_v44  ;;  %4870 = vmatprep.subr.bf16.mxu0 %v6423_v12  ;;  %v2110_v55 = vsub.f32 %v10317_v5, %v8685_v13  ;;  %v2114_v15 = vsub.f32 %v10318_v35, %v8685_v13  ;;  %v2118_v32 = vsub.f32 %v8296_v48, %v8685_v13  ;;  %v6430_v60 = vld [vmem:[%s10007_s5 + $0x1a0] ss:$16 sps:$4 sm:$0xff]   ;;  %v10331_v22 = vld [vmem:[#allocation54_spill] sm:$0xff]  ;;  %v6438_v5 = vld [vmem:[%s10007_s5 + $0x164] ss:$16 sps:$4 sm:$0xff]  }
 0x24e   :  { %v2035_v28 = vmul.f32 %v8692_v54, %v8692_v54  ;;  %v2031_v25 = vmul.f32 0.0052083335, %v2027_v61  ;;  %v2122_v42 = vsub.f32 %v8499_v10, %v8685_v13  ;;  %v2126_v44 = vsub.f32 %v8545_v57, %v8685_v13  ;;  %v10324_v10 = vld [vmem:[#allocation41_spill] sm:$0xff]  ;;  %v10325_v57 = vld [vmem:[#allocation43_spill] sm:$0xff]  ;;  %v10333_v35 = vld [vmem:[#allocation58_spill] sm:$0xff] }
 0x24f   :  { %v2042_v37 = vmax.f32 %v2038_v53, 0.0  ;;  %v2130_v26 = vsub.f32 %v8587_v11, %v8685_v13  ;;  %v2134_v61 = vsub.f32 %v8594_v17, %v8685_v13  ;;  %v10326_v11 = vld [vmem:[#allocation45_spill] sm:$0xff]  ;;  %v10327_v17 = vld [vmem:[#allocation47_spill] sm:$0xff] }
 0x250   :  { %v2039_v38 = vsub.f32 %v2031_v25, %v2035_v28  ;;  %4871 = vmatpush1.bf16.msra.mxu0 %v6421_v7  ;;  %v10321_v7 = vld [vmem:[#allocation33_spill] sm:$0xff]  ;;  %v10323_v28 = vld [vmem:[#allocation39_spill] sm:$0xff] }
 0x251   :  { %v2142_v36 = vadd.f32 1e-05, %v2042_v37  ;;  %4872 = vmatprep.subr.bf16.mxu0 %v6426_v49  ;;  %v10337_v37 = vld [vmem:[#allocation28_spill] sm:$0xff]  ;;  %v10339_v49 = vld [vmem:[#allocation35_spill] sm:$0xff] }
 0x252   :  { %v2043_v29 = vmax.f32 %v2039_v38, 0.0  ;;  %v10328_v38 = vld [vmem:[#allocation49_spill] sm:$0xff] }
 0x253   :  { %6596 = vrsqrt.f32 %v2142_v36  ;;  %v6433_v36 = vld [vmem:[%s10007_s5 + $0x180] ss:$16 sps:$4 sm:$0xff]  }
 0x254   :  { %v2143_v31 = vadd.f32 1e-05, %v2043_v29  ;;  %4873 = vmatpush2.bf16.msra.mxu0 %v6424_v18  ;;  %v10334_v18 = vld [vmem:[#allocation60_spill] sm:$0xff]  ;;  %v10341_v29 = vld [vmem:[#allocation42_spill] sm:$0xff]  ;;  %v6436_v53 = vld [vmem:[%s10007_s5 + $0x160] ss:$16 sps:$4 sm:$0xff]  }
 0x255   :  { %4874 = vmatprep.subr.bf16.mxu0 %v6429_v62  ;;  %v10329_v62 = vld [vmem:[#allocation51_spill] sm:$0xff] }
 0x256   :  { %6598 = vrsqrt.f32 %v2143_v31 }
 0x258   :  { %4875 = vmatpush2.bf16.msra.mxu0 %v6427_v27  ;;  %v10332_v27 = vld [vmem:[#allocation56_spill] sm:$0xff] }
 0x259   :  { %4876 = vmatprep.subr.bf16.mxu0 %v6432_v3 }
 0x25c   :  { %4877 = vmatpush2.bf16.msra.mxu0 %v6430_v60  ;;  %v10340_v60 = vld [vmem:[#allocation40_spill] sm:$0xff] }
 0x25d   :  { %4878 = vmatprep.subr.bf16.mxu0 %v6435_v4  ;;  %v10338_v4 = vld [vmem:[#allocation30_spill] sm:$0xff] }
 0x260   :  { %v8838_v8 = vpop.eup %6596  ;;  %4879 = vmatpush2.bf16.msra.mxu0 %v6433_v36  ;;  %v6441_v36 = vld [vmem:[%s10007_s5 + $0x144] ss:$16 sps:$4 sm:$0xff]  }
 0x261   :  { %v2242_v48 = vmul.f32 %v8838_v8, %v2138_v24  ;;  %4880 = vmatprep.subr.bf16.mxu0 %v6438_v5  ;;  %v2214_v9 = vmul.f32 %v8838_v8, %v2110_v55  ;;  %v2218_v20 = vmul.f32 %v8838_v8, %v2114_v15  ;;  %v2222_v46 = vmul.f32 %v8838_v8, %v2118_v32 }
 0x262   :  { %v8863_v23 = vmul.f32 %v8838_v8, %v2122_v42  ;;  %v8873_v19 = vmul.f32 %v8838_v8, %v2126_v44  ;;  %v8876_v47 = vmul.f32 %v8838_v8, %v2130_v26  ;;  %v8879_v15 = vmul.f32 %v8838_v8, %v2134_v61 }
 0x263   :  { %v8867_v50 = vpop.eup %6598  ;;  %v8870_v55 = vmul.f32 %v8723_v0, %v2242_v48  ;;  %v10352_v32 = vsub.f32 %v8632_v43, %v8692_v54  ;;  %v6439_v48 = vld [vmem:[%s10007_s5 + $0x140] ss:$16 sps:$4 sm:$0xff]   ;;  %v10353_v44 = vsub.f32 %v10319_v39, %v8692_v54  ;;  %v10354_v26 = vsub.f32 %v10320_v51, %v8692_v54 }
 0x264   :  { %4881 = vmatpush2.bf16.msra.mxu0 %v6436_v53  ;;  %v10355_v43 = vsub.f32 %v8495_v59, %v8692_v54  ;;  %v6444_v53 = vld [vmem:[%s10007_s5 + $0x124] ss:$16 sps:$4 sm:$0xff]   ;;  %v10356_v39 = vsub.f32 %v8541_v34, %v8692_v54  ;;  %v10357_v51 = vsub.f32 %v8559_v41, %v8692_v54  ;;  %v10358_v59 = vsub.f32 %v8592_v6, %v8692_v54 }
 0x265   :  { %v2243_v42 = vmul.f32 %v8867_v50, %v10352_v32  ;;  %v2215_v5 = vmul.f32 %v8867_v50, %v10353_v44  ;;  %v2219_v61 = vmul.f32 %v8867_v50, %v10354_v26  ;;  %4882 = vmatprep.subr.bf16.mxu0 %v6441_v36  ;;  %v8916_v36 = vmul.f32 %v8723_v0, %v2214_v9 }
 0x266   :  { %v2223_v32 = vmul.f32 %v8867_v50, %v10355_v43  ;;  %v2227_v44 = vmul.f32 %v8867_v50, %v10356_v39  ;;  %v2231_v26 = vmul.f32 %v8867_v50, %v10357_v51  ;;  %v2235_v43 = vmul.f32 %v8867_v50, %v10358_v59 }
 0x267   :  { %v2361_v24 = vmul.f32 %v8737_v40, %v2243_v42  ;;  %v10359_v34 = vsub.f32 %v8601_v21, %v8692_v54  ;;  %v2333_v56 = vmul.f32 %v8737_v40, %v2215_v5  ;;  %v2337_v41 = vmul.f32 %v8737_v40, %v2219_v61  ;;  %v6442_v21 = vld [vmem:[%s10007_s5 + $0x120] ss:$16 sps:$4 sm:$0xff]  }
 0x268   :  { %v2341_v51 = vmul.f32 %v8737_v40, %v2223_v32  ;;  %v2345_v6 = vmul.f32 %v8737_v40, %v2227_v44  ;;  %v8928_v59 = vmul.f32 %v8723_v0, %v2218_v20  ;;  %v8931_v9 = vmul.f32 %v8723_v0, %v2222_v46  ;;  %4883 = vmatpush2.bf16.msra.mxu0 %v6439_v48  ;;  %v6447_v20 = vld [vmem:[%s10007_s5 + $0x104] ss:$16 sps:$4 sm:$0xff]  }
 0x269   :  { %v2239_v39 = vmul.f32 %v8867_v50, %v10359_v34  ;;  %v2479_v42 = vadd.f32 %v8740_v33, %v2361_v24  ;;  %v2349_v5 = vmul.f32 %v8737_v40, %v2231_v26  ;;  %v2353_v61 = vmul.f32 %v8737_v40, %v2235_v43  ;;  %4884 = vmatprep.subr.bf16.mxu0 %v6444_v53  ;;  %v6445_v26 = vld [vmem:[%s10007_s5 + $0x100] ss:$16 sps:$4 sm:$0xff]  }
 0x26a   :  { %v2451_v46 = vadd.f32 %v8740_v33, %v2333_v56  ;;  %v2455_v24 = vadd.f32 %v8740_v33, %v2337_v41  ;;  %v2459_v48 = vadd.f32 %v8740_v33, %v2341_v51  ;;  %v2463_v44 = vadd.f32 %v8740_v33, %v2345_v6  ;;  %v6450_v56 = vld [vmem:[%s10007_s5 + $0xec] ss:$16 sps:$4 sm:$0xff]  }
 0x26b   :  { %v2357_v32 = vmul.f32 %v8737_v40, %v2239_v39  ;;  %vm2575_vm1 = vcmp.ge.f32.partialorder %v2479_v42, 0.0  ;;  %v2671_v34 = vmul.f32 0.1, %v2479_v42  ;;  %v2467_v53 = vadd.f32 %v8740_v33, %v2349_v5 }
 0x26c   :  { %v2471_v43 = vadd.f32 %v8740_v33, %v2353_v61  ;;  %vm2547_vm2 = vcmp.ge.f32.partialorder %v2451_v46, 0.0  ;;  %vm2551_vm8 = vcmp.ge.f32.partialorder %v2455_v24, 0.0  ;;  %vm2555_vm9 = vcmp.ge.f32.partialorder %v2459_v48, 0.0  ;;  %4885 = vmatpush2.bf16.msra.mxu0 %v6442_v21 }
 0x26d   :  { %v2475_v39 = vadd.f32 %v8740_v33, %v2357_v32  ;;  %vm2559_vm3 = vcmp.ge.f32.partialorder %v2463_v44, 0.0  ;;  %vm2563_vm10 = vcmp.ge.f32.partialorder %v2467_v53, 0.0  ;;  %v2643_v41 = vmul.f32 0.1, %v2451_v46  ;;  %4886 = vmatprep.subr.bf16.mxu0 %v6447_v20  ;;  %v6448_v20 = vld [vmem:[%s10007_s5 + $0xe8] ss:$16 sps:$4 sm:$0xff]  }
 0x26e   :  { %vm2567_vm4 = vcmp.ge.f32.partialorder %v2471_v43, 0.0  ;;  %v2647_v51 = vmul.f32 0.1, %v2455_v24  ;;  %v2651_v6 = vmul.f32 0.1, %v2459_v48  ;;  %v2767_v5 = vsel %vm2575_vm1, %v2479_v42, %v2671_v34 }
 0x26f   :  { %vm2571_vm5 = vcmp.ge.f32.partialorder %v2475_v39, 0.0  ;;  %v2655_v61 = vmul.f32 0.1, %v2463_v44  ;;  %v2659_v25 = vmul.f32 0.1, %v2467_v53  ;;  %v2739_v2 = vsel %vm2547_vm2, %v2451_v46, %v2643_v41 }
 0x270   :  { %v2663_v12 = vmul.f32 0.1, %v2471_v43  ;;  %v2667_v32 = vmul.f32 0.1, %v2475_v39  ;;  %v2743_v3 = vsel %vm2551_vm8, %v2455_v24, %v2647_v51  ;;  %v2747_v21 = vsel %vm2555_vm9, %v2459_v48, %v2651_v6  ;;  %4887 = vmatpush2.bf16.msra.mxu0 %v6445_v26  ;;  %v6453_v24 = vld [vmem:[%s10007_s5 + $0xcc] ss:$16 sps:$4 sm:$0xff]  }
 0x271   :  { %v2344_v31 = vmul.f32 %v8723_v0, %v8863_v23  ;;  %v2751_v42 = vsel %vm2559_vm3, %v2463_v44, %v2655_v61  ;;  %v2755_v34 = vsel %vm2563_vm10, %v2467_v53, %v2659_v25  ;;  %v3013_v46 = vadd.f32 %v2743_v3, %v2739_v2  ;;  %4942 = vmatprep.subr.bf16.mxu0 %v6450_v56 }
 0x272   :  { %v2759_v45 = vsel %vm2567_vm4, %v2471_v43, %v2663_v12  ;;  %v2763_v48 = vsel %vm2571_vm5, %v2475_v39, %v2667_v32  ;;  %v3041_v23 = vadd.f32 %v2751_v42, %v2747_v21  ;;  %v2348_v41 = vmul.f32 %v8723_v0, %v8873_v19  ;;  %v6451_v19 = vld [vmem:[%s10007_s5 + $0xc8] ss:$16 sps:$4 sm:$0xff]  }
 0x273   :  { %v3069_v26 = vadd.f32 %v2759_v45, %v2755_v34  ;;  %v8976_v44 = vadd.f32 %v8729_v1, %v8870_v55  ;;  %v3014_v25 = vrot.slane %v3013_v46, 4  ;;  %v3097_v53 = vadd.f32 %v2767_v5, %v2763_v48  ;;  %4889 = vmatmul.mubr.bf16.vlgmr.msra.gmra.mxu0 %v8746_v14 }
 0x274   :  { %v2352_v12 = vmul.f32 %v8723_v0, %v8876_v47  ;;  %v3042_v2 = vrot.slane %v3041_v23, 4  ;;  %v2356_v43 = vmul.f32 %v8723_v0, %v8879_v15  ;;  %v2450_v45 = vadd.f32 %v8729_v1, %v8916_v36  ;;  %4943 = vmatpush1.bf16.msra.mxu0 %v6448_v20  ;;  %4974 = vmatprep.mubr.bf16.mxu0 %v8603_v58  ;;  %v6456_v15 = vld [vmem:[%s10007_s5 + $0xac] ss:$16 sps:$4 sm:$0xff]  }
 0x275   :  { %v3070_v3 = vrot.slane %v3069_v26, 4  ;;  %v3015_v55 = vadd.f32 %v3014_v25, %v3013_v46  ;;  %v3098_v56 = vrot.slane %v3097_v53, 4  ;;  %v2454_v47 = vadd.f32 %v8729_v1, %v8928_v59  ;;  %4944 = vmatprep.subr.bf16.mxu0 %v6453_v24  ;;  %v6459_v46 = vld [vmem:[%s10007_s5 + $0x8c] ss:$16 sps:$4 sm:$0xff]  }
 0x276   :  { %v2458_v39 = vadd.f32 %v8729_v1, %v8931_v9  ;;  %v3043_v36 = vadd.f32 %v3042_v2, %v3041_v23  ;;  %v2462_v58 = vadd.f32 %v8729_v1, %v2344_v31  ;;  %v2466_v6 = vadd.f32 %v8729_v1, %v2348_v41  ;;  %v6454_v31 = vld [vmem:[%s10007_s5 + $0xa8] ss:$16 sps:$4 sm:$0xff]  }
 0x277   :  { %v3071_v51 = vadd.f32 %v3070_v3, %v3069_v26  ;;  %vm2574_vm6 = vcmp.ge.f32.partialorder %v8976_v44, 0.0  ;;  %v2670_v5 = vmul.f32 0.1, %v8976_v44  ;;  %v3016_v61 = vrot.slane %v3015_v55, 2  ;;  %v6457_v23 = vld [vmem:[%s10007_s5 + $0x88] ss:$16 sps:$4 sm:$0xff]  }
 0x278   :  { %v3099_v59 = vadd.f32 %v3098_v56, %v3097_v53  ;;  %v2470_v32 = vadd.f32 %v8729_v1, %v2352_v12  ;;  %v3044_v9 = vrot.slane %v3043_v36, 2  ;;  %v2474_v20 = vadd.f32 %v8729_v1, %v2356_v43  ;;  %4945 = vmatpush1.bf16.msra.mxu0 %v6451_v19 }
 0x279   :  { %v3072_v21 = vrot.slane %v3071_v51, 2  ;;  %vm2546_vm7 = vcmp.ge.f32.partialorder %v2450_v45, 0.0  ;;  %v3017_v42 = vadd.f32 %v3016_v61, %v3015_v55  ;;  %vm2550_vm11 = vcmp.ge.f32.partialorder %v2454_v47, 0.0  ;;  %4946 = vmatprep.subr.bf16.mxu0 %v6456_v15  ;;  %v6462_v15 = vld [vmem:[%s10007_s5 + $0x6c] ss:$16 sps:$4 sm:$0xff]  }
 0x27a   :  { %v3100_v34 = vrot.slane %v3099_v59, 2  ;;  %vm2554_vm12 = vcmp.ge.f32.partialorder %v2458_v39, 0.0  ;;  %v3045_v24 = vadd.f32 %v3044_v9, %v3043_v36  ;;  %vm2558_vm13 = vcmp.ge.f32.partialorder %v2462_v58, 0.0 }
 0x27b   :  { %v3073_v48 = vadd.f32 %v3072_v21, %v3071_v51  ;;  %vm2562_vm14 = vcmp.ge.f32.partialorder %v2466_v6, 0.0  ;;  %v3018_v26 = vrot.slane %v3017_v42, 1  ;;  %vm2566_vm15 = vcmp.ge.f32.partialorder %v2470_v32, 0.0 }
 0x27c   :  { %v3101_v41 = vadd.f32 %v3100_v34, %v3099_v59  ;;  %v2642_v25 = vmul.f32 0.1, %v2450_v45  ;;  %v3046_v53 = vrot.slane %v3045_v24, 1  ;;  %v2646_v2 = vmul.f32 0.1, %v2454_v47  ;;  %4947 = vmatpush1.bf16.msra.mxu0 %v6454_v31 }
 0x27d   :  { %v3074_v12 = vrot.slane %v3073_v48, 1  ;;  %v2650_v3 = vmul.f32 0.1, %v2458_v39  ;;  %v3019_v43 = vadd.f32 %v3018_v26, %v3017_v42  ;;  %v2654_v55 = vmul.f32 0.1, %v2462_v58  ;;  %4948 = vmatprep.subr.bf16.mxu0 %v6459_v46 }
 0x27e   :  { %v3102_v19 = vrot.slane %v3101_v41, 1  ;;  %v2658_v56 = vmul.f32 0.1, %v2466_v6  ;;  %v3047_v36 = vadd.f32 %v3046_v53, %v3045_v24  ;;  %v2662_v61 = vmul.f32 0.1, %v2470_v32 }
 0x27f   :  { %v3075_v51 = vadd.f32 %v3074_v12, %v3073_v48  ;;  %v2666_v59 = vmul.f32 0.1, %v2474_v20  ;;  %v3140_v21 = vmul.f32 0.0625, %v3019_v43  ;;  %vm2570_vm0 = vcmp.ge.f32.partialorder %v2474_v20, 0.0  ;;  %v6460_v24 = vld [vmem:[%s10007_s5 + $0x68] ss:$16 sps:$4 sm:$0xff]  }
 0x280   :  { %v3103_v9 = vadd.f32 %v3102_v19, %v3101_v41  ;;  %v2738_v34 = vsel %vm2546_vm7, %v2450_v45, %v2642_v25  ;;  %v9015_v1 = vmul.f32 0.0625, %v3047_v36  ;;  %v2742_v42 = vsel %vm2550_vm11, %v2454_v47, %v2646_v2  ;;  %4949 = vmatpush1.bf16.msra.mxu0 %v6457_v23  ;;  %v6465_v25 = vld [vmem:[%s10007_s5 + $0x4c] ss:$16 sps:$4 sm:$0xff]   ;;  %v10362_v2 = vld [vmem:[#allocation63_spill] sm:$0xff] }
 0x281   :  { %v9017_v31 = vmul.f32 0.0625, %v3075_v51  ;;  %v2746_v46 = vsel %vm2554_vm12, %v2458_v39, %v2650_v3  ;;  %v3931_v26 = vpack.c.bf16 %v3140_v21, %v3140_v21  ;;  %v2750_v41 = vsel %vm2558_vm13, %v2462_v58, %v2654_v55  ;;  %4950 = vmatprep.subr.bf16.mxu0 %v6462_v15  ;;  %v6468_v15 = vld [vmem:[%s10007_s5 + $0x2c] ss:$16 sps:$4 sm:$0xff]  }
 0x282   :  { %v9024_v48 = vmul.f32 0.0625, %v3103_v9  ;;  %v2754_v45 = vsel %vm2562_vm14, %v2466_v6, %v2658_v56  ;;  %vm10360_vm1 = vcmask 1041409   ;;  %v2758_v39 = vsel %vm2566_vm15, %v2470_v32, %v2662_v61 }
 0x283   :  { %v3245_v47 = vsel %vm10360_vm1, %v9015_v1, %v3140_v21  ;;  %v2762_v23 = vsel %vm2570_vm0, %v2474_v20, %v2666_v59  ;;  %v2766_v53 = vsel %vm2574_vm6, %v8976_v44, %v2670_v5  ;;  %vm10361_vm2 = vcmask 1042434   ;;  %vm10380_vm9 = vmmov %vm10360_vm1 }
 0x284   :  { %v3246_v58 = vsel %vm10361_vm2, %v9017_v31, %v3245_v47  ;;  %v3935_v6 = vpack.c.bf16 %v9015_v1, %v9015_v1  ;;  %v3006_v12 = vadd.f32 %v2742_v42, %v2738_v34  ;;  %v2106_v3 = vsub.f32 %v10362_v2, %v8685_v13  ;;  %4951 = vmatpush1.bf16.msra.mxu0 %v6460_v24  ;;  %v6463_v1 = vld [vmem:[%s10007_s5 + $0x48] ss:$16 sps:$4 sm:$0xff]   ;;  %vm10381_vm3 = vmmov %vm10361_vm2 }
 0x285   :  { %vm10363_vm8 = vcmask 1043459   ;;  %v3939_v32 = vpack.c.bf16 %v9017_v31, %v9017_v31  ;;  %v3943_v44 = vpack.c.bf16 %v9024_v48, %v9024_v48  ;;  %v3034_v5 = vadd.f32 %v2750_v41, %v2746_v46  ;;  %4952 = vmatprep.subr.bf16.mxu0 %v6465_v25 }
 0x286   :  { %v9046_v43 = vsel %vm10363_vm8, %v9024_v48, %v3246_v58  ;;  %v9056_v20 = vunpack.c.l.b16 %v3931_v26  ;;  %v3007_v19 = vrot.slane %v3006_v12, 4  ;;  %v3062_v55 = vadd.f32 %v2758_v39, %v2754_v45  ;;  %vm10382_vm10 = vmmov %vm10363_vm8 }
 0x287   :  { %3359 = vmatprep.subr.mxu1 %v9046_v43  ;;  %v3090_v56 = vadd.f32 %v2766_v53, %v2762_v23  ;;  %v3035_v36 = vrot.slane %v3034_v5, 4  ;;  %v10364_v51 = vsub.f32 %v10321_v7, %v8692_v54  ;;  %v10365_v59 = vsub.f32 %v10322_v63, %v8692_v54 }
 0x288   :  { %v10366_v21 = vsub.f32 %v10323_v28, %v8692_v54  ;;  %v3008_v31 = vadd.f32 %v3007_v19, %v3006_v12  ;;  %v3063_v42 = vrot.slane %v3062_v55, 4  ;;  %v10367_v24 = vsub.f32 %v10324_v10, %v8692_v54  ;;  %4953 = vmatpush1.bf16.msra.mxu0 %v6463_v1  ;;  %v6466_v10 = vld [vmem:[%s10007_s5 + $0x28] ss:$16 sps:$4 sm:$0xff]  }
 0x289   :  { %v2151_v61 = vmul.f32 %v8867_v50, %v10364_v51  ;;  %v2155_v9 = vmul.f32 %v8867_v50, %v10365_v59  ;;  %v3091_v46 = vrot.slane %v3090_v56, 4  ;;  %v3036_v48 = vadd.f32 %v3035_v36, %v3034_v5  ;;  %4954 = vmatprep.subr.bf16.mxu0 %v6468_v15 }
 0x28a   :  { %v2159_v34 = vmul.f32 %v8867_v50, %v10366_v21  ;;  %v2163_v7 = vmul.f32 %v8867_v50, %v10367_v24  ;;  %v10368_v26 = vsub.f32 %v10325_v57, %v8692_v54  ;;  %v10369_v41 = vsub.f32 %v10326_v11, %v8692_v54 }
 0x28b   :  { %v10370_v45 = vsub.f32 %v10327_v17, %v8692_v54  ;;  %v3009_v47 = vrot.slane %v3008_v31, 2  ;;  %v3064_v39 = vadd.f32 %v3063_v42, %v3062_v55  ;;  %v3092_v57 = vadd.f32 %v3091_v46, %v3090_v56 }
 0x28c   :  { %v2167_v63 = vmul.f32 %v8867_v50, %v10368_v26  ;;  %v2171_v28 = vmul.f32 %v8867_v50, %v10369_v41  ;;  %v10371_v23 = vsub.f32 %v10328_v38, %v8692_v54  ;;  %v3037_v53 = vrot.slane %v3036_v48, 2  ;;  %v6471_v38 = vld [vmem:[%s10007_s5 + $0xc] ss:$16 sps:$4 sm:$0xff]   ;;  %4955 = vmatpush1.bf16.msra.mxu0 %v6466_v10 }
 0x28d   :  { %v2175_v25 = vmul.f32 %v8867_v50, %v10370_v45  ;;  %v10372_v17 = vsub.f32 %v10329_v62, %v8692_v54  ;;  %v10373_v12 = vsub.f32 %v10330_v16, %v8692_v54  ;;  %v10374_v1 = vsub.f32 %v10331_v22, %v8692_v54  ;;  %4956 = vmatprep.subr.bf16.mxu0 %v6471_v38  ;;  %v6477_v10 = vld [vmem:[%s10007_s5 + $0x1ec] ss:$16 sps:$4 sm:$0xff]  }
 0x28e   :  { %v2179_v11 = vmul.f32 %v8867_v50, %v10371_v23  ;;  %v3010_v55 = vadd.f32 %v3009_v47, %v3008_v31  ;;  %v3065_v56 = vrot.slane %v3064_v39, 2  ;;  %v3093_v15 = vrot.slane %v3092_v57, 2 }
 0x28f   :  { %v2183_v58 = vmul.f32 %v8867_v50, %v10372_v17  ;;  %v2187_v5 = vmul.f32 %v8867_v50, %v10373_v12  ;;  %v2191_v19 = vmul.f32 %v8867_v50, %v10374_v1  ;;  %v10375_v62 = vsub.f32 %v10332_v27, %v8692_v54  ;;  %v6475_v12 = vld [vmem:[%s10007_s5 + $0x1e8] ss:$16 sps:$4 sm:$0xff]  }
 0x290   :  { %v3038_v16 = vadd.f32 %v3037_v53, %v3036_v48  ;;  %v10376_v51 = vsub.f32 %v10333_v35, %v8692_v54  ;;  %v10377_v59 = vsub.f32 %v10334_v18, %v8692_v54  ;;  %v10378_v31 = vsub.f32 %v10335_v52, %v8692_v54  ;;  %v6469_v18 = vld [vmem:[%s10007_s5 + $0x8] ss:$16 sps:$4 sm:$0xff]  }
 0x291   :  { %v2195_v36 = vmul.f32 %v8867_v50, %v10375_v62  ;;  %v3011_v46 = vrot.slane %v3010_v55, 1  ;;  %v3066_v27 = vadd.f32 %v3065_v56, %v3064_v39  ;;  %v3094_v24 = vadd.f32 %v3093_v15, %v3092_v57  ;;  %4957 = vmatpush1.bf16.msra.mxu0 %v6469_v18 }
 0x292   :  { %v2199_v22 = vmul.f32 %v8867_v50, %v10376_v51  ;;  %v2203_v21 = vmul.f32 %v8867_v50, %v10377_v59  ;;  %v2207_v42 = vmul.f32 %v8867_v50, %v10378_v31  ;;  %v10379_v48 = vsub.f32 %v10336_v30, %v8692_v54  ;;  %4958 = vmatprep.subr.bf16.mxu0 %v6477_v10 }
 0x293   :  { %v9134_v26 = vunpack.c.l.b16 %v3935_v6  ;;  %v9136_v41 = vunpack.c.l.b16 %v3939_v32  ;;  %v9138_v52 = vunpack.c.l.b16 %v3943_v44  ;;  %v3039_v45 = vrot.slane %v3038_v16, 1 }
 0x294   :  { %v2211_v35 = vmul.f32 %v8867_v50, %v10379_v48  ;;  %v3012_v47 = vadd.f32 %v3011_v46, %v3010_v55  ;;  %v3067_v54 = vrot.slane %v3066_v27, 1  ;;  %v3095_v30 = vrot.slane %v3094_v24, 1 }
 0x295   :  { %v2269_v50 = vmul.f32 %v8737_v40, %v2151_v61  ;;  %v3040_v39 = vadd.f32 %v3039_v45, %v3038_v16  ;;  %v2273_v57 = vmul.f32 %v8737_v40, %v2155_v9  ;;  %v2277_v6 = vmul.f32 %v8737_v40, %v2159_v34  ;;  %4959 = vmatpush2.bf16.msra.mxu0 %v6475_v12  ;;  %v6499_v12 = vld [vmem:[%s10007_s5 + $0x168] ss:$16 sps:$4 sm:$0xff]  }
 0x296   :  { %v2281_v32 = vmul.f32 %v8737_v40, %v2163_v7  ;;  %v3068_v44 = vadd.f32 %v3067_v54, %v3066_v27  ;;  %v3096_v23 = vadd.f32 %v3095_v30, %v3094_v24  ;;  %v3139_v53 = vmul.f32 0.0625, %v3012_v47  ;;  %v6483_v7 = vld [vmem:[%s10007_s5 + $0x1cc] ss:$16 sps:$4 sm:$0xff]  }
 0x297   :  { %v2285_v17 = vmul.f32 %v8737_v40, %v2167_v63  ;;  %v9151_v1 = vmul.f32 0.0625, %v3040_v39  ;;  %v2289_v61 = vmul.f32 %v8737_v40, %v2171_v28  ;;  %v2293_v9 = vmul.f32 %v8737_v40, %v2175_v25  ;;  %4960 = vmatprep.subr.bf16.mxu0 %v6483_v7  ;;  %v6507_v7 = vld [vmem:[%s10007_s5 + $0x14c] ss:$16 sps:$4 sm:$0xff]  }
 0x298   :  { %v2297_v34 = vmul.f32 %v8737_v40, %v2179_v11  ;;  %v9159_v38 = vmul.f32 0.0625, %v3068_v44  ;;  %v9161_v63 = vmul.f32 0.0625, %v3096_v23  ;;  %v3930_v55 = vpack.c.bf16 %v3139_v53, %v3139_v53  ;;  %v6493_v23 = vld [vmem:[%s10007_s5 + $0x188] ss:$16 sps:$4 sm:$0xff]  }
 0x299   :  { %v2301_v56 = vmul.f32 %v8737_v40, %v2183_v58  ;;  %v3242_v15 = vsel %vm10380_vm9, %v9151_v1, %v3139_v53  ;;  %v2305_v28 = vmul.f32 %v8737_v40, %v2187_v5  ;;  %v2309_v25 = vmul.f32 %v8737_v40, %v2191_v19  ;;  %v6481_v58 = vld [vmem:[%s10007_s5 + $0x1c8] ss:$16 sps:$4 sm:$0xff]  }
 0x29a   :  { %v2313_v11 = vmul.f32 %v8737_v40, %v2195_v36  ;;  %v3243_v62 = vsel %vm10381_vm3, %v9159_v38, %v3242_v15  ;;  %v3934_v16 = vpack.c.bf16 %v9151_v1, %v9151_v1  ;;  %v2317_v51 = vmul.f32 %v8737_v40, %v2199_v22  ;;  %v6489_v22 = vld [vmem:[%s10007_s5 + $0x1ac] ss:$16 sps:$4 sm:$0xff]   ;;  %4961 = vmatpush2.bf16.msra.mxu0 %v6481_v58 }
 0x29b   :  { %v2321_v59 = vmul.f32 %v8737_v40, %v2203_v21  ;;  %v9180_v5 = vsel %vm10382_vm10, %v9161_v63, %v3243_v62  ;;  %v3938_v19 = vpack.c.bf16 %v9159_v38, %v9159_v38  ;;  %v3942_v36 = vpack.c.bf16 %v9161_v63, %v9161_v63  ;;  %4962 = vmatprep.subr.bf16.mxu0 %v6489_v22 }
 0x29c   :  { %v9186_v31 = vunpack.c.l.b16 %v3930_v55  ;;  %3360 = vmatpush1.xpose.msra.mxu1 %v9180_v5  ;;  %v2325_v21 = vmul.f32 %v8737_v40, %v2207_v42  ;;  %v2329_v46 = vmul.f32 %v8737_v40, %v2211_v35  ;;  %v2387_v27 = vadd.f32 %v8740_v33, %v2269_v50  ;;  %v6487_v35 = vld [vmem:[%s10007_s5 + $0x1a8] ss:$16 sps:$4 sm:$0xff]  }
 0x29d   :  { %v2391_v24 = vadd.f32 %v8740_v33, %v2273_v57  ;;  %v2395_v48 = vadd.f32 %v8740_v33, %v2277_v6  ;;  %v2399_v18 = vadd.f32 %v8740_v33, %v2281_v32  ;;  %v2403_v45 = vadd.f32 %v8740_v33, %v2285_v17  ;;  %v6495_v6 = vld [vmem:[%s10007_s5 + $0x18c] ss:$16 sps:$4 sm:$0xff]  }
 0x29e   :  { %v2407_v10 = vadd.f32 %v8740_v33, %v2289_v61  ;;  %v2411_v47 = vadd.f32 %v8740_v33, %v2293_v9  ;;  %v2415_v54 = vadd.f32 %v8740_v33, %v2297_v34  ;;  %v2419_v42 = vadd.f32 %v8740_v33, %v2301_v56  ;;  %4963 = vmatpush2.bf16.msra.mxu0 %v6487_v35 }
 0x29f   :  { %v9204_v40 = vadd.f32 %v8740_v33, %v2305_v28  ;;  %v2427_v30 = vadd.f32 %v8740_v33, %v2309_v25  ;;  %v2431_v50 = vadd.f32 %v8740_v33, %v2313_v11  ;;  %v2435_v39 = vadd.f32 %v8740_v33, %v2317_v51  ;;  %4964 = vmatprep.subr.bf16.mxu0 %v6495_v6 }
 0x2a0   :  { %v9213_v57 = vadd.f32 %v8740_v33, %v2321_v59  ;;  %v2443_v32 = vadd.f32 %v8740_v33, %v2325_v21  ;;  %v2447_v44 = vadd.f32 %v8740_v33, %v2329_v46  ;;  %vm2483_vm4 = vcmp.ge.f32.partialorder %v2387_v27, 0.0  ;;  %v6501_v33 = vld [vmem:[%s10007_s5 + $0x16c] ss:$16 sps:$4 sm:$0xff]  }
 0x2a1   :  { %vm2487_vm5 = vcmp.ge.f32.partialorder %v2391_v24, 0.0  ;;  %vm2491_vm6 = vcmp.ge.f32.partialorder %v2395_v48, 0.0  ;;  %vm2495_vm7 = vcmp.ge.f32.partialorder %v2399_v18, 0.0  ;;  %vm2499_vm11 = vcmp.ge.f32.partialorder %v2403_v45, 0.0 }
 0x2a2   :  { %vm2503_vm12 = vcmp.ge.f32.partialorder %v2407_v10, 0.0  ;;  %vm2507_vm13 = vcmp.ge.f32.partialorder %v2411_v47, 0.0  ;;  %vm2511_vm14 = vcmp.ge.f32.partialorder %v2415_v54, 0.0  ;;  %vm2515_vm15 = vcmp.ge.f32.partialorder %v2419_v42, 0.0  ;;  %4965 = vmatpush2.bf16.msra.mxu0 %v6493_v23 }
 0x2a3   :  { %vm2519_vm0 = vcmp.ge.f32.partialorder %v9204_v40, 0.0  ;;  %vm2523_vm1 = vcmp.ge.f32.partialorder %v2427_v30, 0.0  ;;  %vm2527_vm2 = vcmp.ge.f32.partialorder %v2431_v50, 0.0  ;;  %vm2531_vm8 = vcmp.ge.f32.partialorder %v2435_v39, 0.0  ;;  %4966 = vmatprep.subr.bf16.mxu0 %v6501_v33  ;;  %v6505_v33 = vld [vmem:[%s10007_s5 + $0x148] ss:$16 sps:$4 sm:$0xff]  }
 0x2a4   :  { %vm2535_vm9 = vcmp.ge.f32.partialorder %v9213_v57, 0.0  ;;  %vm2539_vm3 = vcmp.ge.f32.partialorder %v2443_v32, 0.0  ;;  %vm2543_vm10 = vcmp.ge.f32.partialorder %v2447_v44, 0.0  ;;  %v2579_v53 = vmul.f32 0.1, %v2387_v27 }
 0x2a5   :  { %v2583_v17 = vmul.f32 0.1, %v2391_v24  ;;  %v9231_v1 = vunpack.c.l.b16 %v3934_v16  ;;  %v2587_v61 = vmul.f32 0.1, %v2395_v48  ;;  %v2591_v9 = vmul.f32 0.1, %v2399_v18 }
 0x2a6   :  { %v2595_v34 = vmul.f32 0.1, %v2403_v45  ;;  %v2599_v55 = vmul.f32 0.1, %v2407_v10  ;;  %v2603_v56 = vmul.f32 0.1, %v2411_v47  ;;  %v2675_v28 = vsel %vm2483_vm4, %v2387_v27, %v2579_v53  ;;  %4967 = vmatpush2.bf16.msra.mxu0 %v6499_v12 }
 0x2a7   :  { %v2607_v15 = vmul.f32 0.1, %v2415_v54  ;;  %v2611_v25 = vmul.f32 0.1, %v2419_v42  ;;  %v2615_v11 = vmul.f32 0.1, %v9204_v40  ;;  %v2679_v16 = vsel %vm2487_vm5, %v2391_v24, %v2583_v17  ;;  %4968 = vmatprep.subr.bf16.mxu0 %v6507_v7 }
 0x2a8   :  { %v2619_v62 = vmul.f32 0.1, %v2427_v30  ;;  %v2623_v51 = vmul.f32 0.1, %v2431_v50  ;;  %v2627_v59 = vmul.f32 0.1, %v2435_v39  ;;  %v2683_v22 = vsel %vm2491_vm6, %v2395_v48, %v2587_v61 }
 0x2a9   :  { %v2631_v58 = vmul.f32 0.1, %v9213_v57  ;;  %v2635_v21 = vmul.f32 0.1, %v2443_v32  ;;  %v2639_v46 = vmul.f32 0.1, %v2447_v44  ;;  %v2687_v35 = vsel %vm2495_vm7, %v2399_v18, %v2591_v9 }
 0x2aa   :  { %v2691_v27 = vsel %vm2499_vm11, %v2403_v45, %v2595_v34  ;;  %v2695_v6 = vsel %vm2503_vm12, %v2407_v10, %v2599_v55  ;;  %v2699_v23 = vsel %vm2507_vm13, %v2411_v47, %v2603_v56  ;;  %v2703_v53 = vsel %vm2511_vm14, %v2415_v54, %v2607_v15  ;;  %v6513_v47 = vld [vmem:[%s10007_s5 + $0x12c] ss:$16 sps:$4 sm:$0xff]   ;;  %4969 = vmatpush2.bf16.msra.mxu0 %v6505_v33  ;;  %v6511_v55 = vld [vmem:[%s10007_s5 + $0x128] ss:$16 sps:$4 sm:$0xff]  }
 0x2ab   :  { %v2707_v24 = vsel %vm2515_vm15, %v2419_v42, %v2611_v25  ;;  %v2711_v48 = vsel %vm2519_vm0, %v9204_v40, %v2615_v11  ;;  %v2715_v18 = vsel %vm2523_vm1, %v2427_v30, %v2619_v62  ;;  %v2719_v45 = vsel %vm2527_vm2, %v2431_v50, %v2623_v51  ;;  %4970 = vmatprep.subr.bf16.mxu0 %v6513_v47 }
 0x2ac   :  { %v2723_v10 = vsel %vm2531_vm8, %v2435_v39, %v2627_v59  ;;  %v2727_v54 = vsel %vm2535_vm9, %v9213_v57, %v2631_v58  ;;  %v2731_v42 = vsel %vm2539_vm3, %v2443_v32, %v2635_v21  ;;  %v2735_v17 = vsel %vm2543_vm10, %v2447_v44, %v2639_v46  ;;  %v6519_v44 = vld [vmem:[%s10007_s5 + $0x10c] ss:$16 sps:$4 sm:$0xff]  }
 0x2ad   :  { %v2789_v40 = vadd.f32 %v2679_v16, %v2675_v28  ;;  %v2817_v12 = vadd.f32 %v2687_v35, %v2683_v22  ;;  %v2845_v30 = vadd.f32 %v2695_v6, %v2691_v27  ;;  %v2873_v61 = vadd.f32 %v2703_v53, %v2699_v23  ;;  %v6517_v27 = vld [vmem:[%s10007_s5 + $0x108] ss:$16 sps:$4 sm:$0xff]  }
 0x2ae   :  { %v2901_v50 = vadd.f32 %v2711_v48, %v2707_v24  ;;  %v2929_v39 = vadd.f32 %v2719_v45, %v2715_v18  ;;  %v2957_v34 = vadd.f32 %v2727_v54, %v2723_v10  ;;  %v2985_v7 = vadd.f32 %v2735_v17, %v2731_v42  ;;  %4971 = vmatpush2.bf16.msra.mxu0 %v6511_v55 }
 0x2af   :  { %v2790_v9 = vrot.slane %v2789_v40, 4  ;;  %v2818_v56 = vrot.slane %v2817_v12, 4  ;;  %v2846_v57 = vrot.slane %v2845_v30, 4  ;;  %v2874_v15 = vrot.slane %v2873_v61, 4  ;;  %4972 = vmatprep.subr.bf16.mxu0 %v6519_v44 }
 0x2b0   :  { %v2902_v32 = vrot.slane %v2901_v50, 4  ;;  %v2930_v25 = vrot.slane %v2929_v39, 4  ;;  %v2958_v11 = vrot.slane %v2957_v34, 4  ;;  %v2986_v62 = vrot.slane %v2985_v7, 4 }
 0x2b1   :  { %v2791_v28 = vadd.f32 %v2790_v9, %v2789_v40  ;;  %v2819_v16 = vadd.f32 %v2818_v56, %v2817_v12  ;;  %v2847_v51 = vadd.f32 %v2846_v57, %v2845_v30  ;;  %v2875_v59 = vadd.f32 %v2874_v15, %v2873_v61 }
 0x2b2   :  { %v2903_v58 = vadd.f32 %v2902_v32, %v2901_v50  ;;  %v2931_v21 = vadd.f32 %v2930_v25, %v2929_v39  ;;  %v2959_v46 = vadd.f32 %v2958_v11, %v2957_v34  ;;  %v2987_v35 = vadd.f32 %v2986_v62, %v2985_v7  ;;  %4973 = vmatpush2.bf16.msra.mxu0 %v6517_v27 }
 0x2b3   :  { %v2792_v22 = vrot.slane %v2791_v28, 2  ;;  %v2820_v6 = vrot.slane %v2819_v16, 2  ;;  %v2848_v23 = vrot.slane %v2847_v51, 2  ;;  %v2876_v53 = vrot.slane %v2875_v59, 2 }
 0x2b4   :  { %v2904_v24 = vrot.slane %v2903_v58, 2  ;;  %v2932_v48 = vrot.slane %v2931_v21, 2  ;;  %v2960_v18 = vrot.slane %v2959_v46, 2  ;;  %v2988_v45 = vrot.slane %v2987_v35, 2 }
 0x2b5   :  { %v2793_v33 = vadd.f32 %v2792_v22, %v2791_v28  ;;  %v2821_v10 = vadd.f32 %v2820_v6, %v2819_v16  ;;  %v2849_v47 = vadd.f32 %v2848_v23, %v2847_v51  ;;  %v2877_v54 = vadd.f32 %v2876_v53, %v2875_v59  ;;  %4975 = vmatmul.mubr.bf16.vlgmr.msra.gmra.mxu0 %v8746_v14 }
 0x2b6   :  { %v2905_v42 = vadd.f32 %v2904_v24, %v2903_v58  ;;  %v2933_v40 = vadd.f32 %v2932_v48, %v2931_v21  ;;  %v2961_v12 = vadd.f32 %v2960_v18, %v2959_v46  ;;  %v2989_v30 = vadd.f32 %v2988_v45, %v2987_v35 }
 0x2b7   :  { %v2794_v17 = vrot.slane %v2793_v33, 1  ;;  %v2822_v61 = vrot.slane %v2821_v10, 1  ;;  %v2850_v50 = vrot.slane %v2849_v47, 1  ;;  %v2878_v9 = vrot.slane %v2877_v54, 1 }
 0x2b8   :  { %v2906_v39 = vrot.slane %v2905_v42, 1  ;;  %v2934_v7 = vrot.slane %v2933_v40, 1  ;;  %v2962_v55 = vrot.slane %v2961_v12, 1  ;;  %v2990_v56 = vrot.slane %v2989_v30, 1 }
 0x2b9   :  { %v2795_v34 = vadd.f32 %v2794_v17, %v2793_v33  ;;  %v2823_v57 = vadd.f32 %v2822_v61, %v2821_v10  ;;  %v2851_v15 = vadd.f32 %v2850_v50, %v2849_v47  ;;  %v2879_v32 = vadd.f32 %v2878_v9, %v2877_v54 }
 0x2ba   :  { %v2907_v44 = vadd.f32 %v2906_v39, %v2905_v42  ;;  %v2935_v28 = vadd.f32 %v2934_v7, %v2933_v40  ;;  %v2963_v25 = vadd.f32 %v2962_v55, %v2961_v12  ;;  %v2991_v11 = vadd.f32 %v2990_v56, %v2989_v30  ;;  %v10395_v56 = vld [vmem:[#allocation44_spill] sm:$0xff] }
 0x2bb   :  { %v3108_v62 = vmul.f32 0.0625, %v2795_v34  ;;  %v3112_v16 = vmul.f32 0.0625, %v2823_v57  ;;  %v3116_v51 = vmul.f32 0.0625, %v2851_v15  ;;  %v3120_v59 = vmul.f32 0.0625, %v2879_v32  ;;  %v10397_v15 = vld [vmem:[#allocation46_spill] sm:$0xff] }
 0x2bc   :  { %v3124_v58 = vmul.f32 0.0625, %v2907_v44  ;;  %v3128_v22 = vmul.f32 0.0625, %v2935_v28  ;;  %v9274_v21 = vmul.f32 0.0625, %v2963_v25  ;;  %v9276_v46 = vmul.f32 0.0625, %v2991_v11  ;;  %v10399_v28 = vld [vmem:[#allocation48_spill] sm:$0xff]  ;;  %v10401_v11 = vld [vmem:[#allocation50_spill] sm:$0xff] }
 0x2bd   :  { %v3899_v35 = vpack.c.bf16 %v3108_v62, %v3108_v62  ;;  %vm10383_vm4 = vcmask 1041409   ;;  %v3903_v6 = vpack.c.bf16 %v3112_v16, %v3112_v16  ;;  %v3907_v23 = vpack.c.bf16 %v3116_v51, %v3116_v51 }
 0x2be   :  { %v3229_v27 = vsel %vm10383_vm4, %v3112_v16, %v3108_v62  ;;  %v3911_v53 = vpack.c.bf16 %v3120_v59, %v3120_v59  ;;  %v9282_v14 = vunpack.c.l.b16 %v3938_v19  ;;  %v9287_v24 = vunpack.c.l.b16 %v3942_v36 }
 0x2bf   :  { %vm10384_vm5 = vcmask 1042434   ;;  %v3915_v48 = vpack.c.bf16 %v3124_v58, %v3124_v58  ;;  %vm10385_vm6 = vcmask 1043459   ;;  %v3919_v45 = vpack.c.bf16 %v3128_v22, %v3128_v22 }
 0x2c0   :  { %v3230_v33 = vsel %vm10384_vm5, %v3116_v51, %v3229_v27  ;;  %v3923_v10 = vpack.c.bf16 %v9274_v21, %v9274_v21  ;;  %v10386_v47 = vsub.f32 %v10337_v37, %v8685_v13  ;;  %vm10387_vm7 = vcmask 1044484   ;;  %v10403_v51 = vld [vmem:[#allocation52_spill] sm:$0xff] }
 0x2c1   :  { %v3231_v18 = vsel %vm10385_vm6, %v3120_v59, %v3230_v33  ;;  %v3927_v63 = vpack.c.bf16 %v9276_v46, %v9276_v46  ;;  %v9300_v36 = vunpack.c.l.b16 %v3899_v35  ;;  %v9302_v54 = vunpack.c.l.b16 %v3903_v6  ;;  %v10407_v6 = vld [vmem:[#allocation55_spill] sm:$0xff]  ;;  %v10409_v33 = vld [vmem:[#allocation57_spill] sm:$0xff] }
 0x2c2   :  { %v2150_v38 = vmul.f32 %v8838_v8, %v10386_v47  ;;  %v3232_v19 = vsel %vm10387_vm7, %v3124_v58, %v3231_v18  ;;  %vm10388_vm11 = vcmask 1045509   ;;  %v9305_v17 = vunpack.c.l.b16 %v3907_v23 }
 0x2c3   :  { %v3233_v42 = vsel %vm10388_vm11, %v3128_v22, %v3232_v19  ;;  %v9307_v40 = vunpack.c.l.b16 %v3911_v53  ;;  %v9309_v12 = vunpack.c.l.b16 %v3915_v48  ;;  %vm10389_vm12 = vcmask 1046534   ;;  %v10405_v22 = vld [vmem:[#allocation36_spill] sm:$0xff] }
 0x2c4   :  { %v3234_v37 = vsel %vm10389_vm12, %v9274_v21, %v3233_v42  ;;  %v10390_v30 = vsub.f32 %v10338_v4, %v8685_v13  ;;  %v10391_v50 = vsub.f32 %v10339_v49, %v8685_v13  ;;  %v10392_v39 = vsub.f32 %v10340_v60, %v8685_v13  ;;  %v10413_v42 = vld [vmem:[#allocation61_spill] sm:$0xff] }
 0x2c5   :  { %vm10393_vm13 = vcmask 1047559   ;;  %v10394_v55 = vsub.f32 %v10341_v29, %v8685_v13  ;;  %v10396_v57 = vsub.f32 %v10395_v56, %v8685_v13  ;;  %v10398_v32 = vsub.f32 %v10397_v15, %v8685_v13 }
 0x2c6   :  { %v2154_v61 = vmul.f32 %v8838_v8, %v10390_v30  ;;  %v2158_v9 = vmul.f32 %v8838_v8, %v10391_v50  ;;  %v2162_v34 = vmul.f32 %v8838_v8, %v10392_v39  ;;  %v3235_v7 = vsel %vm10393_vm13, %v9276_v46, %v3234_v37 }
 0x2c7   :  { %v2166_v4 = vmul.f32 %v8838_v8, %v10394_v55  ;;  %v2170_v49 = vmul.f32 %v8838_v8, %v10396_v57  ;;  %v2174_v60 = vmul.f32 %v8838_v8, %v10398_v32  ;;  %3361 = vmatprep.subr.mxu1 %v3235_v7  ;;  %v9339_v44 = vunpack.c.l.b16 %v3919_v45  ;;  %3395 = vmatprep.mubr.f32.mxu1 %v3235_v7  ;;  %v10411_v45 = vld [vmem:[#allocation59_spill] sm:$0xff] }
 0x2c8   :  { %v10400_v25 = vsub.f32 %v10399_v28, %v8685_v13  ;;  %v10402_v62 = vsub.f32 %v10401_v11, %v8685_v13  ;;  %v10404_v59 = vsub.f32 %v10403_v51, %v8685_v13  ;;  %v10406_v35 = vsub.f32 %v10405_v22, %v8685_v13 }
 0x2c9   :  { %v10408_v23 = vsub.f32 %v10407_v6, %v8685_v13  ;;  %v10410_v48 = vsub.f32 %v10409_v33, %v8685_v13  ;;  %v10412_v47 = vsub.f32 %v10411_v45, %v8685_v13  ;;  %v10414_v37 = vsub.f32 %v10413_v42, %v8685_v13 }
 0x2ca   :  { %v2178_v29 = vmul.f32 %v8838_v8, %v10400_v25  ;;  %v2182_v16 = vmul.f32 %v8838_v8, %v10402_v62  ;;  %v2186_v58 = vmul.f32 %v8838_v8, %v10404_v59  ;;  %v2190_v27 = vmul.f32 %v8838_v8, %v10406_v35 }
 0x2cb   :  { %v2194_v53 = vmul.f32 %v8838_v8, %v10408_v23  ;;  %v2198_v18 = vmul.f32 %v8838_v8, %v10410_v48  ;;  %v2202_v19 = vmul.f32 %v8838_v8, %v10412_v47  ;;  %v2206_v30 = vmul.f32 %v8838_v8, %v10414_v37 }
 0x2cc   :  { %v2210_v50 = vmul.f32 %v8838_v8, %v2106_v3  ;;  %v2268_v39 = vmul.f32 %v8723_v0, %v2150_v38  ;;  %v2272_v7 = vmul.f32 %v8723_v0, %v2154_v61  ;;  %v2276_v55 = vmul.f32 %v8723_v0, %v2158_v9 }
 0x2cd   :  { %v2280_v56 = vmul.f32 %v8723_v0, %v2162_v34  ;;  %v2284_v57 = vmul.f32 %v8723_v0, %v2166_v4  ;;  %v2288_v15 = vmul.f32 %v8723_v0, %v2170_v49  ;;  %v2292_v32 = vmul.f32 %v8723_v0, %v2174_v60  ;;  %v10415_v4 = vld [vmem:[#allocation17_spill] sm:$0xff] }
 0x2ce   :  { %v2296_v28 = vmul.f32 %v8723_v0, %v2178_v29  ;;  %v2300_v13 = vmul.f32 %v8723_v0, %v2182_v16  ;;  %v2304_v8 = vmul.f32 %v8723_v0, %v2186_v58  ;;  %v2308_v2 = vmul.f32 %v8723_v0, %v2190_v27 }
 0x2cf   :  { %v2312_v3 = vmul.f32 %v8723_v0, %v2194_v53  ;;  %v2316_v38 = vmul.f32 %v8723_v0, %v2198_v18  ;;  %v2320_v61 = vmul.f32 %v8723_v0, %v2202_v19  ;;  %v2324_v9 = vmul.f32 %v8723_v0, %v2206_v30 }
 0x2d0   :  { %v2328_v34 = vmul.f32 %v8723_v0, %v2210_v50  ;;  %v2386_v49 = vadd.f32 %v10415_v4, %v2268_v39  ;;  %v2390_v60 = vadd.f32 %v10415_v4, %v2272_v7  ;;  %v2394_v25 = vadd.f32 %v10415_v4, %v2276_v55 }
 0x2d1   :  { %v2398_v29 = vadd.f32 %v10415_v4, %v2280_v56  ;;  %v2402_v11 = vadd.f32 %v10415_v4, %v2284_v57  ;;  %v2406_v62 = vadd.f32 %v10415_v4, %v2288_v15  ;;  %v2410_v16 = vadd.f32 %v10415_v4, %v2292_v32 }
 0x2d2   :  { %v2414_v51 = vadd.f32 %v10415_v4, %v2296_v28  ;;  %v2418_v59 = vadd.f32 %v10415_v4, %v2300_v13  ;;  %v2422_v0 = vadd.f32 %v10415_v4, %v2304_v8  ;;  %v2426_v58 = vadd.f32 %v10415_v4, %v2308_v2 }
 0x2d3   :  { %v2430_v22 = vadd.f32 %v10415_v4, %v2312_v3  ;;  %v2434_v35 = vadd.f32 %v10415_v4, %v2316_v38  ;;  %v2438_v27 = vadd.f32 %v10415_v4, %v2320_v61  ;;  %v2442_v6 = vadd.f32 %v10415_v4, %v2324_v9 }
 0x2d4   :  { %v2446_v23 = vadd.f32 %v10415_v4, %v2328_v34  ;;  %vm2482_vm14 = vcmp.ge.f32.partialorder %v2386_v49, 0.0  ;;  %vm2486_vm15 = vcmp.ge.f32.partialorder %v2390_v60, 0.0  ;;  %vm2490_vm0 = vcmp.ge.f32.partialorder %v2394_v25, 0.0 }
 0x2d5   :  { %vm2498_vm2 = vcmp.ge.f32.partialorder %v2402_v11, 0.0  ;;  %vm2502_vm8 = vcmp.ge.f32.partialorder %v2406_v62, 0.0  ;;  %vm2506_vm9 = vcmp.ge.f32.partialorder %v2410_v16, 0.0  ;;  %vm2510_vm3 = vcmp.ge.f32.partialorder %v2414_v51, 0.0 }
 0x2d6   :  { %vm2514_vm10 = vcmp.ge.f32.partialorder %v2418_v59, 0.0  ;;  %vm2518_vm4 = vcmp.ge.f32.partialorder %v2422_v0, 0.0  ;;  %vm2522_vm5 = vcmp.ge.f32.partialorder %v2426_v58, 0.0  ;;  %vm2526_vm6 = vcmp.ge.f32.partialorder %v2430_v22, 0.0 }
 0x2d7   :  { %vm2530_vm7 = vcmp.ge.f32.partialorder %v2434_v35, 0.0  ;;  %vm2534_vm11 = vcmp.ge.f32.partialorder %v2438_v27, 0.0  ;;  %vm2538_vm12 = vcmp.ge.f32.partialorder %v2442_v6, 0.0  ;;  %v2578_v53 = vmul.f32 0.1, %v2386_v49 }
 0x2d8   :  { %v2582_v33 = vmul.f32 0.1, %v2390_v60  ;;  %v2586_v48 = vmul.f32 0.1, %v2394_v25  ;;  %v2590_v18 = vmul.f32 0.1, %v2398_v29 }
 0x2d9   :  { %v2594_v45 = vmul.f32 0.1, %v2402_v11  ;;  %vm10416_vm1 = vcmask 1041409   ;;  %v2598_v19 = vmul.f32 0.1, %v2406_v62  ;;  %v2674_v30 = vsel %vm2482_vm14, %v2386_v49, %v2578_v53 }
 0x2da   :  { %v9412_v47 = vsel %vm10416_vm1, %v9302_v54, %v9300_v36  ;;  %v2602_v42 = vmul.f32 0.1, %v2410_v16  ;;  %v2606_v37 = vmul.f32 0.1, %v2414_v51  ;;  %v2610_v50 = vmul.f32 0.1, %v2418_v59 }
 0x2db   :  { %v2614_v39 = vmul.f32 0.1, %v2422_v0  ;;  %v2618_v7 = vmul.f32 0.1, %v2426_v58  ;;  %v2678_v55 = vsel %vm2486_vm15, %v2390_v60, %v2582_v33  ;;  %v2622_v56 = vmul.f32 0.1, %v2430_v22  ;;  %vm10419_vm15 = vmmov %vm10416_vm1 }
 0x2dc   :  { %v2626_v57 = vmul.f32 0.1, %v2434_v35  ;;  %v2630_v15 = vmul.f32 0.1, %v2438_v27  ;;  %v2682_v32 = vsel %vm2490_vm0, %v2394_v25, %v2586_v48  ;;  %v2634_v28 = vmul.f32 0.1, %v2442_v6 }
 0x2dd   :  { %v2638_v13 = vmul.f32 0.1, %v2446_v23  ;;  %vm10417_vm13 = vcmp.ge.f32.partialorder %v2398_v29, 0.0  ;;  %v2690_v54 = vsel %vm2498_vm2, %v2402_v11, %v2594_v45  ;;  %v2694_v8 = vsel %vm2502_vm8, %v2406_v62, %v2598_v19 }
 0x2de   :  { %v2686_v36 = vsel %vm10417_vm13, %v2398_v29, %v2590_v18  ;;  %v2698_v2 = vsel %vm2506_vm9, %v2410_v16, %v2602_v42  ;;  %v2702_v3 = vsel %vm2510_vm3, %v2414_v51, %v2606_v37  ;;  %v2706_v38 = vsel %vm2514_vm10, %v2418_v59, %v2610_v50  ;;  %vm10426_vm10 = vmmov %vm10419_vm15 }
 0x2df   :  { %v2710_v61 = vsel %vm2518_vm4, %v2422_v0, %v2614_v39  ;;  %v2714_v9 = vsel %vm2522_vm5, %v2426_v58, %v2618_v7  ;;  %v2718_v34 = vsel %vm2526_vm6, %v2430_v22, %v2622_v56  ;;  %v2722_v4 = vsel %vm2530_vm7, %v2434_v35, %v2626_v57  ;;  %vm10427_vm4 = vmmov %vm10426_vm10 }
 0x2e0   :  { %v2726_v49 = vsel %vm2534_vm11, %v2438_v27, %v2630_v15  ;;  %v2730_v60 = vsel %vm2538_vm12, %v2442_v6, %v2634_v28  ;;  %vm10418_vm14 = vcmp.ge.f32.partialorder %v2446_v23, 0.0  ;;  %v2782_v29 = vadd.f32 %v2678_v55, %v2674_v30 }
 0x2e1   :  { %v2734_v25 = vsel %vm10418_vm14, %v2446_v23, %v2638_v13  ;;  %v2810_v11 = vadd.f32 %v2686_v36, %v2682_v32  ;;  %v2838_v62 = vadd.f32 %v2694_v8, %v2690_v54  ;;  %v2866_v16 = vadd.f32 %v2702_v3, %v2698_v2 }
 0x2e2   :  { %v2894_v51 = vadd.f32 %v2710_v61, %v2706_v38  ;;  %v2783_v59 = vrot.slane %v2782_v29, 4  ;;  %v2922_v53 = vadd.f32 %v2718_v34, %v2714_v9  ;;  %v2950_v0 = vadd.f32 %v2726_v49, %v2722_v4 }
 0x2e3   :  { %v2978_v33 = vadd.f32 %v2734_v25, %v2730_v60  ;;  %v2811_v58 = vrot.slane %v2810_v11, 4  ;;  %v2839_v48 = vrot.slane %v2838_v62, 4  ;;  %v2867_v22 = vrot.slane %v2866_v16, 4 }
 0x2e4   :  { %v2895_v18 = vrot.slane %v2894_v51, 4  ;;  %v2784_v35 = vadd.f32 %v2783_v59, %v2782_v29  ;;  %v2923_v45 = vrot.slane %v2922_v53, 4  ;;  %v2951_v27 = vrot.slane %v2950_v0, 4 }
 0x2e5   :  { %v2979_v19 = vrot.slane %v2978_v33, 4  ;;  %v2812_v6 = vadd.f32 %v2811_v58, %v2810_v11  ;;  %v2840_v42 = vadd.f32 %v2839_v48, %v2838_v62  ;;  %v2868_v23 = vadd.f32 %v2867_v22, %v2866_v16 }
 0x2e6   :  { %v2896_v37 = vadd.f32 %v2895_v18, %v2894_v51  ;;  %v2785_v30 = vrot.slane %v2784_v35, 2  ;;  %v2924_v50 = vadd.f32 %v2923_v45, %v2922_v53  ;;  %v2952_v39 = vadd.f32 %v2951_v27, %v2950_v0 }
 0x2e7   :  { %v2980_v7 = vadd.f32 %v2979_v19, %v2978_v33  ;;  %v2813_v55 = vrot.slane %v2812_v6, 2  ;;  %v2841_v56 = vrot.slane %v2840_v42, 2  ;;  %v2869_v57 = vrot.slane %v2868_v23, 2 }
 0x2e8   :  { %v2897_v15 = vrot.slane %v2896_v37, 2  ;;  %v2786_v32 = vadd.f32 %v2785_v30, %v2784_v35  ;;  %v2925_v28 = vrot.slane %v2924_v50, 2  ;;  %v2953_v13 = vrot.slane %v2952_v39, 2 }
 0x2e9   :  { %v2981_v36 = vrot.slane %v2980_v7, 2  ;;  %v2814_v54 = vadd.f32 %v2813_v55, %v2812_v6  ;;  %v2842_v8 = vadd.f32 %v2841_v56, %v2840_v42  ;;  %v2870_v2 = vadd.f32 %v2869_v57, %v2868_v23 }
 0x2ea   :  { %v2898_v3 = vadd.f32 %v2897_v15, %v2896_v37  ;;  %v2787_v38 = vrot.slane %v2786_v32, 1  ;;  %v2926_v61 = vadd.f32 %v2925_v28, %v2924_v50  ;;  %v2954_v9 = vadd.f32 %v2953_v13, %v2952_v39 }
 0x2eb   :  { %v2982_v34 = vadd.f32 %v2981_v36, %v2980_v7  ;;  %v2815_v4 = vrot.slane %v2814_v54, 1  ;;  %v2843_v49 = vrot.slane %v2842_v8, 1  ;;  %v2871_v60 = vrot.slane %v2870_v2, 1 }
 0x2ec   :  { %v2899_v25 = vrot.slane %v2898_v3, 1  ;;  %v2788_v29 = vadd.f32 %v2787_v38, %v2786_v32  ;;  %v2927_v11 = vrot.slane %v2926_v61, 1  ;;  %v2955_v62 = vrot.slane %v2954_v9, 1 }
 0x2ed   :  { %v2983_v16 = vrot.slane %v2982_v34, 1  ;;  %v2816_v51 = vadd.f32 %v2815_v4, %v2814_v54  ;;  %v2844_v59 = vadd.f32 %v2843_v49, %v2842_v8  ;;  %v2872_v53 = vadd.f32 %v2871_v60, %v2870_v2 }
 0x2ee   :  { %v2900_v0 = vadd.f32 %v2899_v25, %v2898_v3  ;;  %v2928_v33 = vadd.f32 %v2927_v11, %v2926_v61  ;;  %v2956_v58 = vadd.f32 %v2955_v62, %v2954_v9  ;;  %v3107_v22 = vmul.f32 0.0625, %v2788_v29  ;;  %v6474_v61 = vld [vmem:[%s10007_s5 + $0x2e4] ss:$16 sps:$4 sm:$0xff]  }
 0x2ef   :  { %v2984_v48 = vadd.f32 %v2983_v16, %v2982_v34  ;;  %v3111_v18 = vmul.f32 0.0625, %v2816_v51  ;;  %v3115_v35 = vmul.f32 0.0625, %v2844_v59  ;;  %v3119_v45 = vmul.f32 0.0625, %v2872_v53  ;;  %v6480_v29 = vld [vmem:[%s10007_s5 + $0x2c4] ss:$16 sps:$4 sm:$0xff]  }
 0x2f0   :  { %v3123_v27 = vmul.f32 0.0625, %v2900_v0  ;;  %v3127_v19 = vmul.f32 0.0625, %v2928_v33  ;;  %v3131_v6 = vmul.f32 0.0625, %v2956_v58  ;;  %v3898_v23 = vpack.c.bf16 %v3107_v22, %v3107_v22  ;;  %v6492_v58 = vld [vmem:[%s10007_s5 + $0x284] ss:$16 sps:$4 sm:$0xff]  }
 0x2f1   :  { %v3135_v42 = vmul.f32 0.0625, %v2984_v48  ;;  %v3222_v37 = vsel %vm10419_vm15, %v3111_v18, %v3107_v22  ;;  %v3902_v30 = vpack.c.bf16 %v3111_v18, %v3111_v18  ;;  %v3906_v50 = vpack.c.bf16 %v3115_v35, %v3115_v35  ;;  %vm10435_vm15 = vmmov %vm10427_vm4  ;;  %v6498_v18 = vld [vmem:[%s10007_s5 + $0x264] ss:$16 sps:$4 sm:$0xff]  }
 0x2f2   :  { %v3910_v39 = vpack.c.bf16 %v3119_v45, %v3119_v45  ;;  %v4147_v7 = vunpack.c.l.b16 %v3923_v10  ;;  %vm10420_vm0 = vcmask 1042434   ;;  %v3914_v56 = vpack.c.bf16 %v3123_v27, %v3123_v27 }
 0x2f3   :  { %v3223_v55 = vsel %vm10420_vm0, %v3115_v35, %v3222_v37  ;;  %v3918_v57 = vpack.c.bf16 %v3127_v19, %v3127_v19  ;;  %v4151_v15 = vunpack.c.l.b16 %v3927_v63  ;;  %vm10421_vm1 = vcmask 1043459   ;;  %vm10425_vm3 = vmmov %vm10420_vm0  ;;  %v9496_v33 = vpop.f32.mrf.mxu0  ;;  %v6514_v37 = vld [vmem:[%s10007_s5 + $0x200] ss:$16 sps:$4 sm:$0xff]  }
 0x2f4   :  { %v3224_v32 = vsel %vm10421_vm1, %v3119_v45, %v3223_v55  ;;  %v4122_v28 = vunpack.c.l.b16 %v3898_v23  ;;  %v4126_v13 = vunpack.c.l.b16 %v3902_v30  ;;  %vm10422_vm2 = vcmask 1044484   ;;  %vm10429_vm6 = vmmov %vm10421_vm1  ;;  %v6496_v45 = vld [vmem:[%s10007_s5 + $0x260] ss:$16 sps:$4 sm:$0xff]   ;;  %v6516_v23 = vld [vmem:[%s10007_s5 + $0x204] ss:$16 sps:$4 sm:$0xff]  }
 0x2f5   :  { %v3225_v36 = vsel %vm10422_vm2, %v3123_v27, %v3224_v32  ;;  %v3922_v54 = vpack.c.bf16 %v3131_v6, %v3131_v6  ;;  %v3926_v8 = vpack.c.bf16 %v3135_v42, %v3135_v42  ;;  %v4130_v2 = vunpack.c.l.b16 %v3906_v50  ;;  %vm10430_vm7 = vmmov %vm10420_vm0  ;;  %v3324_v48 = vpop.f32.mrf.mxu0  ;;  %v6504_v27 = vld [vmem:[%s10007_s5 + $0x244] ss:$16 sps:$4 sm:$0xff]   ;;  %v6520_v50 = vld [vmem:[%s10007_s5 + $0x3e0] ss:$16 sps:$4 sm:$0xff]  }
 0x2f6   :  { %vm10423_vm8 = vcmask 1045509   ;;  %v4134_v10 = vunpack.c.l.b16 %v3910_v39  ;;  %v4138_v3 = vunpack.c.l.b16 %v3914_v56  ;;  %v4142_v38 = vunpack.c.l.b16 %v3918_v57  ;;  %vm10431_vm11 = vmmov %vm10420_vm0  ;;  %v6522_v30 = vld [vmem:[%s10007_s5 + $0x3e4] ss:$16 sps:$4 sm:$0xff]   ;;  %v6526_v56 = vld [vmem:[%s10007_s5 + $0x3a0] ss:$16 sps:$4 sm:$0xff]  }
 0x2f7   :  { %v3226_v21 = vsel %vm10423_vm8, %v3127_v19, %v3225_v36  ;;  %vm10424_vm9 = vcmask 1046534   ;;  %v4190_v63 = vsel %vm10425_vm3, %v9305_v17, %v9412_v47  ;;  %v4205_v9 = vsel %vm10426_vm10, %v9134_v26, %v9056_v20  ;;  %v6472_v17 = vld [vmem:[%s10007_s5 + $0x2e0] ss:$16 sps:$4 sm:$0xff]   ;;  %vm10432_vm12 = vmmov %vm10422_vm2  ;;  %v9505_v22 = vpop.f32.mrf.mxu0  ;;  %v6525_v39 = vld [vmem:[%s10007_s5 + $0x3c4] ss:$16 sps:$4 sm:$0xff]  }
 0x2f8   :  { %v3227_v46 = vsel %vm10424_vm9, %v3131_v6, %v3226_v21  ;;  %v4182_v34 = vsel %vm10427_vm4, %v4126_v13, %v4122_v28  ;;  %vm10428_vm5 = vcmask 1047559   ;;  %v4191_v49 = vsel %vm10429_vm6, %v9307_v40, %v4190_v63  ;;  %vm10433_vm13 = vmmov %vm10421_vm1  ;;  %v6502_v19 = vld [vmem:[%s10007_s5 + $0x240] ss:$16 sps:$4 sm:$0xff]   ;;  %v6510_v6 = vld [vmem:[%s10007_s5 + $0x224] ss:$16 sps:$4 sm:$0xff]  }
 0x2f9   :  { %v3228_v4 = vsel %vm10428_vm5, %v3135_v42, %v3227_v46  ;;  %v4206_v60 = vsel %vm10430_vm7, %v9136_v41, %v4205_v9  ;;  %v4183_v25 = vsel %vm10431_vm11, %v4130_v2, %v4182_v34  ;;  %v4192_v20 = vsel %vm10432_vm12, %v9309_v12, %v4191_v49  ;;  %vm10434_vm14 = vmmov %vm10421_vm1  ;;  %v3329_v35 = vpop.f32.mrf.mxu0  ;;  %v6508_v42 = vld [vmem:[%s10007_s5 + $0x220] ss:$16 sps:$4 sm:$0xff]   ;;  %v6528_v55 = vld [vmem:[%s10007_s5 + $0x3a4] ss:$16 sps:$4 sm:$0xff]  }
 0x2fa   :  { %3362 = vmatpush1.xpose.msra.mxu1 %v3228_v4  ;;  %v4207_v26 = vsel %vm10433_vm13, %v9138_v52, %v4206_v60  ;;  %v4184_v47 = vsel %vm10434_vm14, %v4134_v10, %v4183_v25  ;;  %v4202_v40 = vsel %vm10435_vm15, %v9231_v1, %v9186_v31  ;;  %v4146_v41 = vunpack.c.l.b16 %v3922_v54  ;;  %vm10436_vm0 = vmmov %vm10423_vm8  ;;  %v6531_v57 = vld [vmem:[%s10007_s5 + $0x384] ss:$16 sps:$4 sm:$0xff]   ;;  %v6532_v28 = vld [vmem:[%s10007_s5 + $0x360] ss:$16 sps:$4 sm:$0xff]  }
 0x2fb   :  { %4899 = vmatprep.subr.bf16.mxu1 %v6474_v61  ;;  %v4193_v11 = vsel %vm10436_vm0, %v9339_v44, %v4192_v20  ;;  %vm10437_vm1 = vmmov %vm10422_vm2  ;;  %v4150_v62 = vunpack.c.l.b16 %v3926_v8  ;;  %v6534_v32 = vld [vmem:[%s10007_s5 + $0x364] ss:$16 sps:$4 sm:$0xff]   ;;  %v6535_v36 = vld [vmem:[%s10007_s5 + $0x340] ss:$16 sps:$4 sm:$0xff]   ;;  %v6622_v34 = vmov 0.0   ;;  %vm3423_vm11 = vcmask 93184  }
 0x2fc   :  { %v4185_v12 = vsel %vm10437_vm1, %v4138_v3, %v4184_v47  ;;  %vm10438_vm2 = vmmov %vm10425_vm3  ;;  %v6537_v13 = vld [vmem:[%s10007_s5 + $0x344] ss:$16 sps:$4 sm:$0xff]   ;;  %v6538_v8 = vld [vmem:[%s10007_s5 + $0x320] ss:$16 sps:$4 sm:$0xff]   ;;  %5132 = vmatprep.mubr.f32.mxu0 %v6622_v34  ;;  %vm3419_vm12 = vcmask 97280   ;;  %vm3456_vm13 = vcmask 1043456  }
 0x2fd   :  { %v4203_v52 = vsel %vm10438_vm2, %v9282_v14, %v4202_v40  ;;  %vm10439_vm8 = vmmov %vm10424_vm9  ;;  %3396 = vmatmul.mubr.f32.vlgmr.msra.gmra.mxu1 %v3228_v4  ;;  %v6478_v14 = vld [vmem:[%s10007_s5 + $0x2c0] ss:$16 sps:$4 sm:$0xff]   ;;  %v6540_v54 = vld [vmem:[%s10007_s5 + $0x324] ss:$16 sps:$4 sm:$0xff]  }
 0x2fe   :  { %v4194_v16 = vsel %vm10439_vm8, %v4147_v7, %v4193_v11  ;;  %vm10440_vm9 = vmmov %vm10436_vm0  ;;  %3400 = vmatprep.mubr.f32.mxu1 %v9046_v43  ;;  %4900 = vmatpush1.bf16.msra.mxu1 %v6472_v17  ;;  %v6484_v43 = vld [vmem:[%s10007_s5 + $0x2a0] ss:$16 sps:$4 sm:$0xff]   ;;  %v6543_v2 = vld [vmem:[%s10007_s5 + $0x304] ss:$16 sps:$4 sm:$0xff]  }
 0x2ff   :  { %v4186_v51 = vsel %vm10440_vm9, %v4142_v38, %v4185_v12  ;;  %vm10441_vm3 = vmmov %vm10429_vm6  ;;  %4901 = vmatprep.subr.bf16.mxu1 %v6480_v29  ;;  %v6523_v7 = vld [vmem:[%s10007_s5 + $0x3c0] ss:$16 sps:$4 sm:$0xff]   ;;  %v6546_v10 = vld [vmem:[%s10007_s5 + $0x2ec] ss:$16 sps:$4 sm:$0xff]  }
 0x300   :  { %v4204_v31 = vsel %vm10441_vm3, %v9287_v24, %v4203_v52  ;;  %vm10442_vm10 = vmmov %vm10428_vm5  ;;  %v6486_v24 = vld [vmem:[%s10007_s5 + $0x2a4] ss:$16 sps:$4 sm:$0xff]   ;;  %v6541_v21 = vld [vmem:[%s10007_s5 + $0x300] ss:$16 sps:$4 sm:$0xff]  }
 0x301   :  { %v4195_v1 = vsel %vm10442_vm10, %v4151_v15, %v4194_v16  ;;  %vm10443_vm4 = vmmov %vm10439_vm8  ;;  %3401 = vmatmul.mubr.f32.gmra.mxu1 %v9180_v5  ;;  %v6490_v5 = vld [vmem:[%s10007_s5 + $0x280] ss:$16 sps:$4 sm:$0xff]   ;;  %v6544_v3 = vld [vmem:[%s10007_s5 + $0x2e8] ss:$16 sps:$4 sm:$0xff]  }
 0x302   :  { %v4187_v59 = vsel %vm10443_vm4, %v4146_v41, %v4186_v51  ;;  %v9487_v44 = vpack.c.b16 %v4207_v26, %v4195_v1  ;;  %4902 = vmatpush1.bf16.msra.mxu1 %v6478_v14  ;;  %v6529_v15 = vld [vmem:[%s10007_s5 + $0x380] ss:$16 sps:$4 sm:$0xff]   ;;  %v6549_v38 = vld [vmem:[%s10007_s5 + $0x2cc] ss:$16 sps:$4 sm:$0xff]   ;;  %v6547_v61 = vld [vmem:[%s10007_s5 + $0x2c8] ss:$16 sps:$4 sm:$0xff]  }
 0x303   :  { %v4188_v53 = vsel %vm10428_vm5, %v4150_v62, %v4187_v59  ;;  %4903 = vmatprep.subr.bf16.mxu1 %v6486_v24  ;;  %v6552_v46 = vld [vmem:[%s10007_s5 + $0x2ac] ss:$16 sps:$4 sm:$0xff]   ;;  %v6550_v63 = vld [vmem:[%s10007_s5 + $0x2a8] ss:$16 sps:$4 sm:$0xff]  }
 0x304   :  { %v9493_v0 = vpack.c.b16 %v4204_v31, %v4188_v53  ;;  %4931 = vmatprep.mubr.bf16.mxu1 %v9487_v44  ;;  %v6555_v9 = vld [vmem:[%s10007_s5 + $0x28c] ss:$16 sps:$4 sm:$0xff]   ;;  %v6553_v4 = vld [vmem:[%s10007_s5 + $0x288] ss:$16 sps:$4 sm:$0xff]  }
 0x305   :  { %v6558_v49 = vld [vmem:[%s10007_s5 + $0x26c] ss:$16 sps:$4 sm:$0xff]   ;;  %v6556_v60 = vld [vmem:[%s10007_s5 + $0x268] ss:$16 sps:$4 sm:$0xff]  }
 0x306   :  { %4904 = vmatpush1.bf16.msra.mxu1 %v6484_v43  ;;  %v6561_v25 = vld [vmem:[%s10007_s5 + $0x24c] ss:$16 sps:$4 sm:$0xff]   ;;  %v6559_v17 = vld [vmem:[%s10007_s5 + $0x248] ss:$16 sps:$4 sm:$0xff]  }
 0x307   :  { %4905 = vmatprep.subr.bf16.mxu1 %v6492_v58  ;;  %v6564_v20 = vld [vmem:[%s10007_s5 + $0x22c] ss:$16 sps:$4 sm:$0xff]   ;;  %v6562_v26 = vld [vmem:[%s10007_s5 + $0x228] ss:$16 sps:$4 sm:$0xff]   ;;  %v10444_v58 = vlaneseq }
 0x308   :  { %v6567_v47 = vld [vmem:[%s10007_s5 + $0x20c] ss:$16 sps:$4 sm:$0xff]   ;;  %v6565_v40 = vld [vmem:[%s10007_s5 + $0x208] ss:$16 sps:$4 sm:$0xff]  }
 0x309   :  { %v6570_v41 = vld [vmem:[%s10007_s5 + $0x3ec] ss:$16 sps:$4 sm:$0xff]   ;;  %v6568_v29 = vld [vmem:[%s10007_s5 + $0x3e8] ss:$16 sps:$4 sm:$0xff]   ;;  %v9684_v48 = vand.u32 127, %v10444_v58 }
 0x30a   :  { %4906 = vmatpush1.bf16.msra.mxu1 %v6490_v5  ;;  %v6573_v11 = vld [vmem:[%s10007_s5 + $0x3cc] ss:$16 sps:$4 sm:$0xff]   ;;  %v6571_v12 = vld [vmem:[%s10007_s5 + $0x3c8] ss:$16 sps:$4 sm:$0xff]   ;;  %v10445_v5 = vld [vmem:[#allocation29_spill] sm:$0xff] }
 0x30b   :  { %4907 = vmatprep.subr.bf16.mxu1 %v6498_v18  ;;  %v6576_v52 = vld [vmem:[%s10007_s5 + $0x3ac] ss:$16 sps:$4 sm:$0xff]   ;;  %v6574_v62 = vld [vmem:[%s10007_s5 + $0x3a8] ss:$16 sps:$4 sm:$0xff]   ;;  %v9687_v18 = vadd.s32 8, %v10445_v5  ;;  %vm3411_vm6 = vcmp.eq.s32.totalorder %v10445_v5, %v9684_v48 }
 0x30c   :  { %v6579_v16 = vld [vmem:[%s10007_s5 + $0x38c] ss:$16 sps:$4 sm:$0xff]   ;;  %v6577_v51 = vld [vmem:[%s10007_s5 + $0x388] ss:$16 sps:$4 sm:$0xff]  }
 0x30d   :  { %v6582_v31 = vld [vmem:[%s10007_s5 + $0x36c] ss:$16 sps:$4 sm:$0xff]   ;;  %v6580_v1 = vld [vmem:[%s10007_s5 + $0x368] ss:$16 sps:$4 sm:$0xff]   ;;  %vm3412_vm7 = vcmp.eq.s32.totalorder %v9687_v18, %v9684_v48 }
 0x30e   :  { %4908 = vmatpush1.bf16.msra.mxu1 %v6496_v45  ;;  %v6585_v59 = vld [vmem:[%s10007_s5 + $0x34c] ss:$16 sps:$4 sm:$0xff]   ;;  %v6583_v14 = vld [vmem:[%s10007_s5 + $0x348] ss:$16 sps:$4 sm:$0xff]  }
 0x30f   :  { %4909 = vmatprep.subr.bf16.mxu1 %v6504_v27  ;;  %v6586_v53 = vld [vmem:[%s10007_s5 + $0x328] ss:$16 sps:$4 sm:$0xff]   ;;  %v6591_v24 = vld [vmem:[%s10007_s5 + $0x30c] ss:$16 sps:$4 sm:$0xff]  }
 0x310   :  { %v6589_v43 = vld [vmem:[%s10007_s5 + $0x308] ss:$16 sps:$4 sm:$0xff]  }
 0x312   :  { %4910 = vmatpush1.bf16.msra.mxu1 %v6502_v19 }
 0x313   :  { %4911 = vmatprep.subr.bf16.mxu1 %v6510_v6  ;;  %v5895_v6 = vsel %vm3412_vm7, 1.0, %v6622_v34 }
 0x316   :  { %4912 = vmatpush1.bf16.msra.mxu1 %v6508_v42 }
 0x317   :  { %4913 = vmatprep.subr.bf16.mxu1 %v6516_v23 }
 0x31a   :  { %4914 = vmatpush1.bf16.msra.mxu1 %v6514_v37 }
 0x31b   :  { %4915 = vmatprep.subr.bf16.mxu1 %v6522_v30 }
 0x31e   :  { %4916 = vmatpush2.bf16.msra.mxu1 %v6520_v50 }
 0x31f   :  { %4917 = vmatprep.subr.bf16.mxu1 %v6525_v39 }
 0x322   :  { %4918 = vmatpush2.bf16.msra.mxu1 %v6523_v7 }
 0x323   :  { %4919 = vmatprep.subr.bf16.mxu1 %v6528_v55 }
 0x326   :  { %4920 = vmatpush2.bf16.msra.mxu1 %v6526_v56 }
 0x327   :  { %4921 = vmatprep.subr.bf16.mxu1 %v6531_v57 }
 0x32a   :  { %4922 = vmatpush2.bf16.msra.mxu1 %v6529_v15 }
 0x32b   :  { %4923 = vmatprep.subr.bf16.mxu1 %v6534_v32 }
 0x32e   :  { %4924 = vmatpush2.bf16.msra.mxu1 %v6532_v28 }
 0x32f   :  { %4925 = vmatprep.subr.bf16.mxu1 %v6537_v13 }
 0x332   :  { %4926 = vmatpush2.bf16.msra.mxu1 %v6535_v36 }
 0x333   :  { %4927 = vmatprep.subr.bf16.mxu1 %v6540_v54  ;;  %v4890_v7 = vpop.f32.mrf.mxu0 }
 0x335   :  { %v4892_v55 = vpop.f32.mrf.mxu0 }
 0x336   :  { %4928 = vmatpush2.bf16.msra.mxu1 %v6538_v8 }
 0x337   :  { %4929 = vmatprep.subr.bf16.mxu1 %v6543_v2  ;;  %v4894_v57 = vpop.f32.mrf.mxu0 }
 0x339   :  { %v4896_v28 = vpop.f32.mrf.mxu0 }
 0x33a   :  { %4930 = vmatpush2.bf16.msra.mxu1 %v6541_v21 }
 0x33b   :  { %4985 = vmatprep.subr.bf16.mxu1 %v6546_v10 }
 0x33d   :  { %4932 = vmatmul.mubr.bf16.vlgmr.msra.gmra.mxu1 %v9493_v0 }
 0x33e   :  { %4986 = vmatpush1.bf16.msra.mxu1 %v6544_v3  ;;  %5017 = vmatprep.mubr.bf16.mxu1 %v9487_v44  ;;  %v6588_v44 = vld [vmem:[%s10007_s5 + $0x32c] ss:$16 sps:$4 sm:$0xff]  }
 0x33f   :  { %4987 = vmatprep.subr.bf16.mxu1 %v6549_v38 }
 0x342   :  { %4988 = vmatpush1.bf16.msra.mxu1 %v6547_v61 }
 0x343   :  { %4989 = vmatprep.subr.bf16.mxu1 %v6552_v46 }
 0x346   :  { %4990 = vmatpush1.bf16.msra.mxu1 %v6550_v63 }
 0x347   :  { %4991 = vmatprep.subr.bf16.mxu1 %v6555_v9 }
 0x34a   :  { %4992 = vmatpush1.bf16.msra.mxu1 %v6553_v4 }
 0x34b   :  { %4993 = vmatprep.subr.bf16.mxu1 %v6558_v49 }
 0x34e   :  { %4994 = vmatpush1.bf16.msra.mxu1 %v6556_v60 }
 0x34f   :  { %4995 = vmatprep.subr.bf16.mxu1 %v6561_v25 }
 0x352   :  { %4996 = vmatpush1.bf16.msra.mxu1 %v6559_v17 }
 0x353   :  { %4997 = vmatprep.subr.bf16.mxu1 %v6564_v20 }
 0x356   :  { %4998 = vmatpush1.bf16.msra.mxu1 %v6562_v26 }
 0x357   :  { %4999 = vmatprep.subr.bf16.mxu1 %v6567_v47 }
 0x35a   :  { %5000 = vmatpush1.bf16.msra.mxu1 %v6565_v40 }
 0x35b   :  { %5001 = vmatprep.subr.bf16.mxu1 %v6570_v41 }
 0x35e   :  { %5002 = vmatpush2.bf16.msra.mxu1 %v6568_v29 }
 0x35f   :  { %5003 = vmatprep.subr.bf16.mxu1 %v6573_v11 }
 0x362   :  { %5004 = vmatpush2.bf16.msra.mxu1 %v6571_v12 }
 0x363   :  { %5005 = vmatprep.subr.bf16.mxu1 %v6576_v52 }
 0x366   :  { %5006 = vmatpush2.bf16.msra.mxu1 %v6574_v62 }
 0x367   :  { %5007 = vmatprep.subr.bf16.mxu1 %v6579_v16 }
 0x36a   :  { %5008 = vmatpush2.bf16.msra.mxu1 %v6577_v51 }
 0x36b   :  { %5009 = vmatprep.subr.bf16.mxu1 %v6582_v31 }
 0x36e   :  { %5010 = vmatpush2.bf16.msra.mxu1 %v6580_v1 }
 0x36f   :  { %5011 = vmatprep.subr.bf16.mxu1 %v6585_v59 }
 0x372   :  { %5012 = vmatpush2.bf16.msra.mxu1 %v6583_v14 }
 0x373   :  { %5013 = vmatprep.subr.bf16.mxu1 %v6588_v44 }
 0x375   :  { %v4976_v2 = vpop.f32.mrf.mxu0 }
 0x376   :  { %5014 = vmatpush2.bf16.msra.mxu1 %v6586_v53 }
 0x377   :  { %5015 = vmatprep.subr.bf16.mxu1 %v6591_v24  ;;  %v4978_v10 = vpop.f32.mrf.mxu0 }
 0x379   :  { %v4980_v61 = vpop.f32.mrf.mxu0 }
 0x37a   :  { %5016 = vmatpush2.bf16.msra.mxu1 %v6589_v43 }
 0x37b   :  { %v4982_v4 = vpop.f32.mrf.mxu0 }
 0x37d   :  { %5018 = vmatmul.mubr.bf16.vlgmr.msra.gmra.mxu1 %v9493_v0  ;;  %v5894_v0 = vsel %vm3411_vm6, 1.0, %v6622_v34 }
 0x37e   :  { %5209 = vmatprep.mubr.f32.mxu1 %v6622_v34 }
 0x3bd   :  { %v3397_v35 = vpop.f32.mrf.mxu1 }
 0x3be   :  { %v3398_v45 = vadd.f32 %v3397_v35, %v9496_v33 }
 0x3bf   :  { %v3399_v27 = vpop.f32.mrf.mxu1 }
 0x3c0   :  { %v3417_v23 = vmul.f32 %v5894_v0, %v3398_v45  ;;  %v3436_v62 = vmul.f32 2.0, %v3398_v45 }
 0x3c1   :  { %v3402_v19 = vpop.f32.mrf.mxu1 }
 0x3c2   :  { %v3403_v42 = vadd.f32 %v3402_v19, %v9505_v22  ;;  %v3420_v50 = vsel %vm3419_vm12, %v3417_v23, 0.0 }
 0x3c3   :  { %v3404_v37 = vpop.f32.mrf.mxu1 }
 0x3c4   :  { %v3418_v33 = vmul.f32 %v5895_v6, %v3403_v42  ;;  %v3437_v29 = vmul.f32 2.0, %v3403_v42 }
 0x3c6   :  { %v3424_v30 = vsel %vm3423_vm11, %v3418_v33, 0.0 }
 0x3c7   :  { %3425 = vadd.xlane.f32.xlu0 %v3424_v30  ;;  %v3427_v39 = vadd.f32 %v3424_v30, %v3420_v50 }
 0x3c9   :  { %v3428_v21 = vrot.slane %v3427_v39, 4 }
 0x3cb   :  { %3421 = vadd.xlane.f32.xlu0 %v3420_v50  ;;  %v3429_v38 = vadd.f32 %v3428_v21, %v3427_v39 }
 0x3cd   :  { %v3430_v9 = vrot.slane %v3429_v38, 2 }
 0x3cf   :  { %v3431_v26 = vadd.f32 %v3430_v9, %v3429_v38 }
 0x3d1   :  { %v3432_v47 = vrot.slane %v3431_v26, 1 }
 0x3d3   :  { %v3433_v40 = vadd.f32 %v3432_v47, %v3431_v26 }
 0x3fd   :  { %v4933_v56 = vpop.f32.mrf.mxu1 }
 0x3fe   :  { %v4934_v8 = vadd.f32 %v4933_v56, %v4890_v7 }
 0x3ff   :  { %v4935_v15 = vpop.f32.mrf.mxu1 }
 0x400   :  { %v4936_v54 = vadd.f32 %v4935_v15, %v4892_v55 }
 0x401   :  { %v4937_v32 = vpop.f32.mrf.mxu1 }
 0x402   :  { %v4938_v36 = vadd.f32 %v4937_v32, %v4894_v57 }
 0x403   :  { %v4939_v22 = vpop.f32.mrf.mxu1 }
 0x404   :  { %v4940_v13 = vadd.f32 %v4939_v22, %v4896_v28 }
 0x406   :  { %6081 = vmatprep.subr.msk.mxu0 %vm3456_vm13, %v4940_v13 }
 0x407   :  { %6082 = vmatpush1.msk.msra.mxu0 %vm3456_vm13, %v4938_v36 }
 0x408   :  { %5098 = vmatprep.subr.mxu0 %v4936_v54 }
 0x409   :  { %5099 = vmatpush1.msra.mxu0 %v4934_v8 }
 0x43d   :  { %v5019_v3 = vpop.f32.mrf.mxu1 }
 0x43e   :  { %v5020_v20 = vadd.f32 %v5019_v3, %v4976_v2 }
 0x43f   :  { %v5021_v46 = vpop.f32.mrf.mxu1 }
 0x440   :  { %v5022_v17 = vadd.f32 %v5021_v46, %v4978_v10  ;;  %v6624_v46 = vmov 0  }
 0x441   :  { %v5023_v63 = vpop.f32.mrf.mxu1  ;;  %6114 = vset.pattern.permute.xlu0 %v6624_v46 }
 0x442   :  { %v5024_v25 = vadd.f32 %v5023_v63, %v4980_v61  ;;  %v6623_v61 = vmov 1  }
 0x443   :  { %v5025_v49 = vpop.f32.mrf.mxu1  ;;  %6115 = vset.pattern.permute.xlu1 %v6623_v61 }
 0x444   :  { %v5026_v60 = vadd.f32 %v5025_v49, %v4982_v4 }
 0x446   :  { %6085 = vmatprep.subr.msk.mxu1 %vm3456_vm13, %v5026_v60 }
 0x447   :  { %6086 = vmatpush1.msk.msra.mxu1 %vm3456_vm13, %v5024_v25 }
 0x448   :  { %5175 = vmatprep.subr.mxu1 %v5022_v17 }
 0x449   :  { %5176 = vmatpush1.msra.mxu1 %v5020_v20 }
 0x450   :  { %v3426_v41 = vpop.xlane.xlu0 %3425 }
 0x451   :  { %v3435_v11 = vadd.f32 %v3433_v40, %v3426_v41 }
 0x453   :  { %v3439_v12 = vsub.f32 %v3435_v11, %v3437_v29 }
 0x454   :  { %v3422_v52 = vpop.xlane.xlu0 %3421 }
 0x455   :  { %v3441_v16 = vmax.f32 %v3439_v12, 0.0  ;;  %v3434_v51 = vadd.f32 %v3433_v40, %v3422_v52 }
 0x457   :  { %v3438_v31 = vsub.f32 %v3434_v51, %v3436_v62  ;;  %v9712_v1 = vsel %vm3412_vm7, 0.0, %v3441_v16 }
 0x458   :  { %v3468_v59 = vsel %vm3423_vm11, %v9712_v1, 0.0  ;;  %vm3445_vm14 = vcmp.ne.f32.partialorder %v9712_v1, 0.0  ;;  %v3505_v16 = vmul.f32 -0.5, %v9712_v1 }
 0x459   :  { %v3440_v14 = vmax.f32 %v3438_v31, 0.0  ;;  %3469 = vadd.xlane.f32.xlu0 %v3468_v59  ;;  %v5897_v44 = vsel %vm3445_vm14, 1.0, %v6622_v34 }
 0x45a   :  { %v3453_v53 = vsel %vm3423_vm11, %v5897_v44, 0.0  ;;  %v6626_v44 = vmov 5  }
 0x45b   :  { %v3442_v24 = vsel %vm3411_vm6, 0.0, %v3440_v14  ;;  %3454 = vadd.xlane.f32.xlu1 %v3453_v53  ;;  %v6625_v14 = vmov 2  }
 0x45c   :  { %vm3444_vm15 = vcmp.ne.f32.partialorder %v3442_v24, 0.0  ;;  %v3465_v18 = vsel %vm3419_vm12, %v3442_v24, 0.0  ;;  %v3504_v11 = vmul.f32 -0.5, %v3442_v24 }
 0x45d   :  { %v5896_v43 = vsel %vm3444_vm15, 1.0, %v6622_v34 }
 0x45e   :  { %v3450_v58 = vsel %vm3419_vm12, %v5896_v43, 0.0  ;;  %v6629_v43 = vmov 3  }
 0x45f   :  { %3451 = vadd.xlane.f32.xlu1 %v3450_v58  ;;  %v6630_v58 = vmov 10  }
 0x463   :  { %3466 = vadd.xlane.f32.xlu1 %v3465_v18  ;;  %v6631_v18 = vmov 4  }
 0x4e2   :  { %v3470_v0 = vpop.xlane.xlu0 %3469 }
 0x4e3   :  { %v3471_v42 = vsel %vm3456_vm13, %v3470_v0, 0.0 }
 0x4e4   :  { %v3455_v35 = vpop.xlane.xlu1 %3454 }
 0x4e5   :  { %v3457_v45 = vsel %vm3456_vm13, %v3455_v35, 0.0  ;;  %v6632_v35 = vmov 11  }
 0x4e8   :  { %v3452_v27 = vpop.xlane.xlu1 %3451 }
 0x4e9   :  { %v3458_v19 = vadd.f32 %v3457_v45, %v3452_v27  ;;  %v6633_v45 = vmov 7   ;;  %v6634_v27 = vmov 8  }
 0x4eb   :  { %v3459_v6 = vrot.slane %v3458_v19, 4 }
 0x4ec   :  { %v3467_v23 = vpop.xlane.xlu1 %3466 }
 0x4ed   :  { %v3460_v37 = vadd.f32 %v3459_v6, %v3458_v19  ;;  %v3472_v33 = vadd.f32 %v3471_v42, %v3467_v23 }
 0x4ef   :  { %v3461_v30 = vrot.slane %v3460_v37, 2  ;;  %v3473_v50 = vrot.slane %v3472_v33, 4 }
 0x4f1   :  { %v3462_v39 = vadd.f32 %v3461_v30, %v3460_v37  ;;  %v3474_v55 = vadd.f32 %v3473_v50, %v3472_v33  ;;  %v10446_v37 = vld [vmem:[#allocation31_spill] sm:$0xff]  ;;  %v10447_v30 = vld [vmem:[#allocation32_spill] sm:$0xff] }
 0x4f3   :  { %v3463_v7 = vrot.slane %v3462_v39, 1  ;;  %v3475_v57 = vrot.slane %v3474_v55, 2 }
 0x4f5   :  { %v3464_v56 = vadd.f32 %v3463_v7, %v3462_v39  ;;  %v3476_v15 = vadd.f32 %v3475_v57, %v3474_v55  ;;  %v10448_v7 = vld [vmem:[#allocation13_spill] sm:$0xff] }
 0x4f7   :  { %6600 = vrcp.f32 %v3464_v56  ;;  %v3477_v32 = vrot.slane %v3476_v15, 1  ;;  %v5898_v63 = vadd.f32 -1.0, %v3464_v56 }
 0x4f9   :  { %v3478_v28 = vadd.f32 %v3477_v32, %v3476_v15  ;;  %6602 = vrcp.f32 %v5898_v63  ;;  %v10449_v32 = vld [vmem:[#allocation15_spill] sm:$0xff]  ;;  %v3701_v63 = vsub.s32 6, %v10445_v5 }
 0x504   :  { %v6601_v22 = vpop.eup %6600 }
 0x505   :  { %v3480_v13 = vmul.f32 %v6601_v22, %v3478_v28  ;;  %v3645_v22 = vsub.s32 4, %v10445_v5 }
 0x506   :  { %v6603_v41 = vpop.eup %6602 }
 0x507   :  { %v3482_v36 = vsub.f32 %v9712_v1, %v3480_v13  ;;  %v3481_v54 = vsub.f32 %v3442_v24, %v3480_v13  ;;  %v6627_v1 = vmov 6   ;;  %v6628_v24 = vmov 9  }
 0x509   :  { %v3484_v8 = vmul.f32 %v3482_v36, %v3482_v36  ;;  %v3483_v2 = vmul.f32 %v3481_v54, %v3481_v54 }
 0x50b   :  { %v3486_v21 = vsel %vm3445_vm14, %v3484_v8, 0.0  ;;  %v3485_v10 = vsel %vm3444_vm15, %v3483_v2, 0.0 }
 0x50c   :  { %v3490_v3 = vsel %vm3423_vm11, %v3486_v21, 0.0  ;;  %v3487_v38 = vsel %vm3419_vm12, %v3485_v10, 0.0 }
 0x50d   :  { %3491 = vadd.xlane.f32.xlu0 %v3490_v3  ;;  %3488 = vadd.xlane.f32.xlu1 %v3487_v38  ;;  %v3673_v3 = vsub.s32 5, %v10445_v5 }
 0x596   :  { %v3492_v9 = vpop.xlane.xlu0 %3491  ;;  %v3489_v4 = vpop.xlane.xlu1 %3488 }
 0x597   :  { %v3493_v49 = vsel %vm3456_vm13, %v3492_v9, 0.0 }
 0x598   :  { %v3494_v60 = vadd.f32 %v3493_v49, %v3489_v4 }
 0x59a   :  { %v3495_v25 = vrot.slane %v3494_v60, 4 }
 0x59c   :  { %v3496_v17 = vadd.f32 %v3495_v25, %v3494_v60  ;;  %v3729_v25 = vsub.s32 7, %v10445_v5 }
 0x59e   :  { %v3497_v20 = vrot.slane %v3496_v17, 2 }
 0x5a0   :  { %v3498_v26 = vadd.f32 %v3497_v20, %v3496_v17 }
 0x5a2   :  { %v3499_v47 = vrot.slane %v3498_v26, 1 }
 0x5a4   :  { %v3500_v40 = vadd.f32 %v3499_v47, %v3498_v26 }
 0x5a6   :  { %v3503_v29 = vmul.f32 %v6603_v41, %v3500_v40 }
 0x5a8   :  { %6604 = vrsqrt.f32 %v3503_v29 }
 0x5b5   :  { %v6605_v12 = vpop.eup %6604 }
 0x5b6   :  { %v3507_v52 = vmul.f32 %v6605_v12, %v3504_v11  ;;  %v3508_v51 = vmul.f32 %v6605_v12, %v3505_v16 }
 0x5b8   :  { %v3509_v62 = vmul.f32 1.442695, %v3507_v52  ;;  %v3511_v31 = vmul.f32 1.442695, %v3508_v51 }
 0x5ba   :  { %6606 = vpow2.f32 %v3509_v62 }
 0x5bb   :  { %6608 = vpow2.f32 %v3511_v31 }
 0x5c7   :  { %v9738_v59 = vpop.eup %6606 }
 0x5c8   :  { %3544 = vperm.xlu1 %6115, %v9738_v59   ;;  %3515 = vperm.xlu0 %6114, %v9738_v59   ;;  %v9744_v53 = vpop.eup %6608  ;;  %v3534_v33 = vrot.slane %v9738_v59, %v10446_v37  ;;  %v3562_v50 = vrot.slane %v9738_v59, %v10447_v30  ;;  %v3590_v55 = vrot.slane %v9738_v59, %v10448_v7 }
 0x5c9   :  { %v3618_v28 = vrot.slane %v9738_v59, %v10449_v32  ;;  %v3646_v10 = vrot.slane %v9738_v59, %v3645_v22  ;;  %v3674_v4 = vrot.slane %v9738_v59, %v3673_v3  ;;  %v3702_v26 = vrot.slane %v9738_v59, %v3701_v63 }
 0x5ca   :  { %vm3535_vm0 = vcmp.gt.f32.partialorder %v3534_v33, %v9738_v59  ;;  %vm3563_vm1 = vcmp.gt.f32.partialorder %v3562_v50, %v9738_v59  ;;  %vm3591_vm2 = vcmp.gt.f32.partialorder %v3590_v55, %v9738_v59  ;;  %vm3536_vm8 = vcmp.gt.f32.partialorder %v3534_v33, %v9744_v53 }
 0x5cb   :  { %v5901_v56 = vsel %vm3535_vm0, 1.0, %v6622_v34  ;;  %v5905_v57 = vsel %vm3563_vm1, 1.0, %v6622_v34  ;;  %vm3564_vm9 = vcmp.gt.f32.partialorder %v3562_v50, %v9744_v53  ;;  %v5909_v36 = vsel %vm3591_vm2, 1.0, %v6622_v34 }
 0x5cc   :  { %6116 = vset.pattern.permute.xlu1 %v6625_v14  ;;  %6123 = vset.pattern.permute.xlu0 %v6626_v44  ;;  %v3569_v13 = vadd.f32 %v5905_v57, %v5901_v56  ;;  %v5902_v54 = vsel %vm3536_vm8, 1.0, %v6622_v34  ;;  %v5906_v8 = vsel %vm3564_vm9, 1.0, %v6622_v34  ;;  %vm3619_vm3 = vcmp.gt.f32.partialorder %v3618_v28, %v9738_v59 }
 0x5cd   :  { %3572 = vperm.xlu1 %6116, %v9738_v59   ;;  %3656 = vperm.xlu0 %6123, %v9738_v59   ;;  %vm3592_vm10 = vcmp.gt.f32.partialorder %v3590_v55, %v9744_v53  ;;  %vm3647_vm4 = vcmp.gt.f32.partialorder %v3646_v10, %v9738_v59  ;;  %vm3620_vm5 = vcmp.gt.f32.partialorder %v3618_v28, %v9744_v53 }
 0x5ce   :  { %v3597_v21 = vadd.f32 %v5909_v36, %v3569_v13  ;;  %v5910_v60 = vsel %vm3592_vm10, 1.0, %v6622_v34  ;;  %v5917_v20 = vsel %vm3647_vm4, 1.0, %v6622_v34  ;;  %vm3675_vm6 = vcmp.gt.f32.partialorder %v3674_v4, %v9738_v59 }
 0x5cf   :  { %v5914_v41 = vsel %vm3620_vm5, 1.0, %v6622_v34  ;;  %v9821_v11 = vrot.slane %v9738_v59, %v3729_v25  ;;  %vm3648_vm7 = vcmp.gt.f32.partialorder %v3646_v10, %v9744_v53  ;;  %v5921_v52 = vsel %vm3675_vm6, 1.0, %v6622_v34 }
 0x5d0   :  { %vm3703_vm14 = vcmp.gt.f32.partialorder %v3702_v26, %v9738_v59  ;;  %v5918_v16 = vsel %vm3648_vm7, 1.0, %v6622_v34  ;;  %vm3676_vm8 = vcmp.gt.f32.partialorder %v3674_v4, %v9744_v53  ;;  %vm3704_vm4 = vcmp.gt.f32.partialorder %v3702_v26, %v9744_v53 }
 0x5d1   :  { %6117 = vset.pattern.permute.xlu1 %v6624_v46  ;;  %3660 = vperm.xlu0 %6123, %v9744_v53   ;;  %v5913_v46 = vsel %vm3619_vm3, 1.0, %v6622_v34  ;;  %v5925_v31 = vsel %vm3703_vm14, 1.0, %v6622_v34  ;;  %vm3731_vm2 = vcmp.gt.f32.partialorder %v9821_v11, %v9738_v59  ;;  %v3786_v55 = vrot.slane %v9744_v53, %v10447_v30 }
 0x5d2   :  { %3520 = vperm.xlu1 %6117, %v9744_v53   ;;  %v3625_v9 = vadd.f32 %v5913_v46, %v3597_v21  ;;  %v5929_v28 = vsel %vm3731_vm2, 1.0, %v6622_v34  ;;  %v5926_v36 = vsel %vm3704_vm4, 1.0, %v6622_v34  ;;  %v3814_v63 = vrot.slane %v9744_v53, %v10448_v7 }
 0x5d3   :  { %vm3787_vm2 = vcmp.gt.f32.partialorder %v3786_v55, %v9738_v59 }
 0x5d4   :  { %v3653_v40 = vadd.f32 %v5917_v20, %v3625_v9  ;;  %v3842_v9 = vrot.slane %v9744_v53, %v10449_v32 }
 0x5d5   :  { %6127 = vset.pattern.permute.xlu0 %v6627_v1 }
 0x5d6   :  { %6118 = vset.pattern.permute.xlu1 %v6623_v61  ;;  %3688 = vperm.xlu0 %6127, %v9744_v53   ;;  %v3570_v61 = vadd.f32 %v5906_v8, %v5902_v54  ;;  %v3681_v62 = vadd.f32 %v5921_v52, %v3653_v40 }
 0x5d7   :  { %3548 = vperm.xlu1 %6118, %v9744_v53  }
 0x5d8   :  { %v3598_v17 = vadd.f32 %v5910_v60, %v3570_v61 }
 0x5da   :  { %6130 = vset.pattern.permute.xlu0 %v6628_v24  ;;  %v3626_v12 = vadd.f32 %v5914_v41, %v3598_v17 }
 0x5db   :  { %6119 = vset.pattern.permute.xlu1 %v6629_v43  ;;  %3768 = vperm.xlu0 %6130, %v9738_v59  }
 0x5dc   :  { %3600 = vperm.xlu1 %6119, %v9738_v59  }
 0x5df   :  { %3772 = vperm.xlu0 %6130, %v9744_v53  }
 0x5e0   :  { %6120 = vset.pattern.permute.xlu1 %v6625_v14  ;;  %v3654_v14 = vadd.f32 %v5918_v16, %v3626_v12 }
 0x5e1   :  { %3576 = vperm.xlu1 %6120, %v9744_v53  }
 0x5e3   :  { %6134 = vset.pattern.permute.xlu0 %v6630_v58 }
 0x5e4   :  { %3800 = vperm.xlu0 %6134, %v9744_v53  }
 0x5e5   :  { %6121 = vset.pattern.permute.xlu1 %v6631_v18 }
 0x5e6   :  { %3628 = vperm.xlu1 %6121, %v9738_v59  }
 0x5e8   :  { %6135 = vset.pattern.permute.xlu0 %v6632_v35 }
 0x5ea   :  { %6122 = vset.pattern.permute.xlu1 %v6629_v43 }
 0x5eb   :  { %3604 = vperm.xlu1 %6122, %v9744_v53  }
 0x5ef   :  { %6124 = vset.pattern.permute.xlu1 %v6631_v18  ;;  %v3709_v18 = vadd.f32 %v5925_v31, %v3681_v62 }
 0x5f0   :  { %3632 = vperm.xlu1 %6124, %v9744_v53  }
 0x5f1   :  { %v3737_v13 = vadd.f32 %v5929_v28, %v3709_v18 }
 0x5f4   :  { %6125 = vset.pattern.permute.xlu1 %v6627_v1  ;;  %v9844_v1 = vrot.slane %v9744_v53, %v10446_v37 }
 0x5f5   :  { %3684 = vperm.xlu1 %6125, %v9738_v59  }
 0x5f9   :  { %6126 = vset.pattern.permute.xlu1 %v6633_v45 }
 0x5fa   :  { %3712 = vperm.xlu1 %6126, %v9738_v59  }
 0x5fe   :  { %6128 = vset.pattern.permute.xlu1 %v6634_v27 }
 0x5ff   :  { %3740 = vperm.xlu1 %6128, %v9738_v59  }
 0x603   :  { %6129 = vset.pattern.permute.xlu1 %v6633_v45 }
 0x604   :  { %3716 = vperm.xlu1 %6129, %v9744_v53  }
 0x608   :  { %6131 = vset.pattern.permute.xlu1 %v6634_v27 }
 0x609   :  { %3744 = vperm.xlu1 %6131, %v9744_v53  }
 0x60d   :  { %6132 = vset.pattern.permute.xlu1 %v6630_v58 }
 0x60e   :  { %3796 = vperm.xlu1 %6132, %v9738_v59  }
 0x612   :  { %6133 = vset.pattern.permute.xlu1 %v6632_v35  ;;  %v5922_v35 = vsel %vm3676_vm8, 1.0, %v6622_v34 }
 0x613   :  { %3824 = vperm.xlu1 %6133, %v9738_v59  }
 0x617   :  { %3828 = vperm.xlu1 %6133, %v9744_v53  }
 0x643   :  { %v9766_v0 = vpop.permute.xlu1 %3544  ;;  %v3516_v38 = vpop.permute.xlu0 %3515 }
 0x644   :  { %vm3551_vm15 = vcmp.gt.f32.partialorder %v9766_v0, %v9738_v59  ;;  %vm3523_vm0 = vcmp.gt.f32.partialorder %v3516_v38, %v9738_v59 }
 0x645   :  { %v5903_v24 = vsel %vm3551_vm15, 1.0, %v6622_v34  ;;  %v5899_v43 = vsel %vm3523_vm0, 1.0, %v6622_v34  ;;  %vm3759_vm15 = vcmp.gt.f32.partialorder %v9844_v1, %v9738_v59  ;;  %vm3732_vm0 = vcmp.gt.f32.partialorder %v9821_v11, %v9744_v53 }
 0x646   :  { %v5933_v21 = vsel %vm3759_vm15, 1.0, %v6622_v34  ;;  %v5930_v4 = vsel %vm3732_vm0, 1.0, %v6622_v34  ;;  %vm3788_vm15 = vcmp.gt.f32.partialorder %v3786_v55, %v9744_v53  ;;  %vm3843_vm0 = vcmp.gt.f32.partialorder %v3842_v9, %v9738_v59 }
 0x647   :  { %v3765_v46 = vadd.f32 %v5933_v21, %v3737_v13 }
 0x648   :  { %v9768_v19 = vpop.permute.xlu1 %3572  ;;  %v9814_v47 = vpop.permute.xlu0 %3656 }
 0x649   :  { %vm3579_vm9 = vcmp.gt.f32.partialorder %v9768_v19, %v9738_v59  ;;  %v3682_v19 = vadd.f32 %v5922_v35, %v3654_v14 }
 0x64a   :  { %v5907_v45 = vsel %vm3579_vm9, 1.0, %v6622_v34 }
 0x64c   :  { %v3661_v51 = vpop.permute.xlu0 %3660 }
 0x64d   :  { %v9770_v6 = vpop.permute.xlu1 %3520  ;;  %vm3664_vm8 = vcmp.gt.f32.partialorder %v3661_v51, %v9744_v53 }
 0x64e   :  { %vm3524_vm3 = vcmp.gt.f32.partialorder %v9770_v6, %v9744_v53  ;;  %v3557_v6 = vadd.f32 %v5903_v24, %v5899_v43  ;;  %v5920_v17 = vsel %vm3664_vm8, 1.0, %v6622_v34 }
 0x64f   :  { %v5900_v27 = vsel %vm3524_vm3, 1.0, %v6622_v34 }
 0x650   :  { %v3585_v56 = vadd.f32 %v5907_v45, %v3557_v6 }
 0x652   :  { %v9772_v42 = vpop.permute.xlu1 %3548 }
 0x653   :  { %vm3552_vm1 = vcmp.gt.f32.partialorder %v9772_v42, %v9744_v53 }
 0x654   :  { %v5904_v58 = vsel %vm3552_vm1, 1.0, %v6622_v34  ;;  %vm3663_vm1 = vcmp.gt.f32.partialorder %v9814_v47, %v9738_v59 }
 0x655   :  { %v3558_v42 = vadd.f32 %v5904_v58, %v5900_v27  ;;  %v5919_v25 = vsel %vm3663_vm1, 1.0, %v6622_v34  ;;  %v5938_v58 = vsel %vm3788_vm15, 1.0, %v6622_v34  ;;  %vm3816_vm1 = vcmp.gt.f32.partialorder %v3814_v63, %v9744_v53 }
 0x657   :  { %v9774_v23 = vpop.permute.xlu1 %3600 }
 0x658   :  { %vm3607_vm5 = vcmp.gt.f32.partialorder %v9774_v23, %v9738_v59  ;;  %v3689_v23 = vpop.permute.xlu0 %3688 }
 0x659   :  { %v5911_v33 = vsel %vm3607_vm5, 1.0, %v6622_v34  ;;  %vm3692_vm4 = vcmp.gt.f32.partialorder %v3689_v23, %v9744_v53  ;;  %v5945_v23 = vsel %vm3843_vm0, 1.0, %v6622_v34 }
 0x65a   :  { %v3613_v54 = vadd.f32 %v5911_v33, %v3585_v56  ;;  %v5924_v62 = vsel %vm3692_vm4, 1.0, %v6622_v34  ;;  %v5942_v33 = vsel %vm3816_vm1, 1.0, %v6622_v34 }
 0x65c   :  { %v9780_v39 = vpop.permute.xlu1 %3576  ;;  %v3769_v61 = vpop.permute.xlu0 %3768 }
 0x65d   :  { %vm3580_vm10 = vcmp.gt.f32.partialorder %v9780_v39, %v9744_v53 }
 0x65e   :  { %v5908_v0 = vsel %vm3580_vm10, 1.0, %v6622_v34  ;;  %vm3760_vm10 = vcmp.gt.f32.partialorder %v9844_v1, %v9744_v53 }
 0x65f   :  { %v3586_v57 = vadd.f32 %v5908_v0, %v3558_v42  ;;  %v5934_v47 = vsel %vm3760_vm10, 1.0, %v6622_v34 }
 0x660   :  { %v3773_v16 = vpop.permute.xlu0 %3772 }
 0x661   :  { %v9788_v15 = vpop.permute.xlu1 %3628 }
 0x662   :  { %vm3635_vm7 = vcmp.gt.f32.partialorder %v9788_v15, %v9738_v59 }
 0x663   :  { %v5915_v15 = vsel %vm3635_vm7, 1.0, %v6622_v34  ;;  %vm3815_vm7 = vcmp.gt.f32.partialorder %v3814_v63, %v9738_v59 }
 0x664   :  { %v3641_v10 = vadd.f32 %v5915_v15, %v3613_v54  ;;  %v5941_v1 = vsel %vm3815_vm7, 1.0, %v6622_v34  ;;  %v3801_v6 = vpop.permute.xlu0 %3800 }
 0x665   :  { %vm3804_vm10 = vcmp.gt.f32.partialorder %v3801_v6, %v9744_v53 }
 0x666   :  { %v9799_v2 = vpop.permute.xlu1 %3604  ;;  %v3669_v40 = vadd.f32 %v5919_v25, %v3641_v10 }
 0x667   :  { %vm3608_vm6 = vcmp.gt.f32.partialorder %v9799_v2, %v9744_v53  ;;  %v3710_v2 = vadd.f32 %v5926_v36, %v3682_v19 }
 0x668   :  { %v5912_v50 = vsel %vm3608_vm6, 1.0, %v6622_v34 }
 0x669   :  { %v3614_v8 = vadd.f32 %v5912_v50, %v3586_v57  ;;  %v3738_v60 = vadd.f32 %v5930_v4, %v3710_v2 }
 0x66b   :  { %v3633_v49 = vpop.permute.xlu1 %3632  ;;  %v3766_v52 = vadd.f32 %v5934_v47, %v3738_v60 }
 0x66c   :  { %vm3636_vm14 = vcmp.gt.f32.partialorder %v3633_v49, %v9744_v53  ;;  %v5937_v49 = vsel %vm3787_vm2, 1.0, %v6622_v34  ;;  %vm3775_vm2 = vcmp.gt.f32.partialorder %v3769_v61, %v9738_v59 }
 0x66d   :  { %v5916_v22 = vsel %vm3636_vm14, 1.0, %v6622_v34  ;;  %v3793_v11 = vadd.f32 %v5937_v49, %v3765_v46  ;;  %v3794_v27 = vadd.f32 %v5938_v58, %v3766_v52  ;;  %v5935_v19 = vsel %vm3775_vm2, 1.0, %v6622_v34 }
 0x66e   :  { %v3642_v3 = vadd.f32 %v5916_v22, %v3614_v8  ;;  %v5940_v8 = vsel %vm3804_vm10, 1.0, %v6622_v34 }
 0x66f   :  { %v3821_v43 = vadd.f32 %v5941_v1, %v3793_v11  ;;  %v3822_v55 = vadd.f32 %v5942_v33, %v3794_v27  ;;  %v5222_v27 = vmul.u32 2, %v10445_v5 }
 0x670   :  { %v9818_v29 = vpop.permute.xlu1 %3684  ;;  %v3670_v26 = vadd.f32 %v5920_v17, %v3642_v3 }
 0x671   :  { %vm3691_vm9 = vcmp.gt.f32.partialorder %v9818_v29, %v9738_v59 }
 0x672   :  { %v5923_v20 = vsel %vm3691_vm9, 1.0, %v6622_v34  ;;  %vm3776_vm9 = vcmp.gt.f32.partialorder %v3773_v16, %v9744_v53 }
 0x673   :  { %v3697_v12 = vadd.f32 %v5923_v20, %v3669_v40  ;;  %v5936_v56 = vsel %vm3776_vm9, 1.0, %v6622_v34 }
 0x675   :  { %v3713_v44 = vpop.permute.xlu1 %3712 }
 0x676   :  { %vm3719_vm3 = vcmp.gt.f32.partialorder %v3713_v44, %v9738_v59  ;;  %v3698_v44 = vadd.f32 %v5924_v62, %v3670_v26 }
 0x677   :  { %v5927_v41 = vsel %vm3719_vm3, 1.0, %v6622_v34  ;;  %vm3844_vm3 = vcmp.gt.f32.partialorder %v3842_v9, %v9744_v53 }
 0x678   :  { %v3725_v14 = vadd.f32 %v5927_v41, %v3697_v12  ;;  %v5946_v13 = vsel %vm3844_vm3, 1.0, %v6622_v34  ;;  %vm5553_vm3 = vcmask 1041408  }
 0x679   :  { %v3850_v54 = vadd.f32 %v5946_v13, %v3822_v55 }
 0x67a   :  { %v3741_v39 = vpop.permute.xlu1 %3740 }
 0x67b   :  { %vm3747_vm5 = vcmp.gt.f32.partialorder %v3741_v39, %v9738_v59  ;;  %v3849_v39 = vadd.f32 %v5945_v23, %v3821_v43 }
 0x67c   :  { %v5931_v51 = vsel %vm3747_vm5, 1.0, %v6622_v34 }
 0x67d   :  { %v3753_v18 = vadd.f32 %v5931_v51, %v3725_v14  ;;  %vm3857_vm5 = vcmp.lt.f32.partialorder %v3849_v39, 10.0 }
 0x67f   :  { %v3717_v38 = vpop.permute.xlu1 %3716  ;;  %v3781_v50 = vadd.f32 %v5935_v19, %v3753_v18  ;;  %v5224_v18 = vadd.s32 1, %v10445_v5 }
 0x680   :  { %vm3720_vm6 = vcmp.gt.f32.partialorder %v3717_v38, %v9744_v53  ;;  %v5949_v38 = vsel %vm3857_vm5, 1.0, %v6622_v34 }
 0x681   :  { %v5928_v31 = vsel %vm3720_vm6, 1.0, %v6622_v34 }
 0x682   :  { %v3726_v35 = vadd.f32 %v5928_v31, %v3698_v44 }
 0x684   :  { %v3745_v29 = vpop.permute.xlu1 %3744 }
 0x685   :  { %vm3748_vm14 = vcmp.gt.f32.partialorder %v3745_v29, %v9744_v53 }
 0x686   :  { %v5932_v24 = vsel %vm3748_vm14, 1.0, %v6622_v34  ;;  %vm3858_vm14 = vcmp.lt.f32.partialorder %v3850_v54, 10.0 }
 0x687   :  { %v3754_v0 = vadd.f32 %v5932_v24, %v3726_v35  ;;  %v5950_v4 = vsel %vm3858_vm14, 1.0, %v6622_v34 }
 0x689   :  { %v3797_v45 = vpop.permute.xlu1 %3796  ;;  %v3782_v28 = vadd.f32 %v5936_v56, %v3754_v0  ;;  %v5225_v0 = vmul.u32 2, %v5224_v18 }
 0x68a   :  { %vm3803_vm8 = vcmp.gt.f32.partialorder %v3797_v45, %v9738_v59 }
 0x68b   :  { %v5939_v42 = vsel %vm3803_vm8, 1.0, %v6622_v34  ;;  %v3810_v21 = vadd.f32 %v5940_v8, %v3782_v28  ;;  %vm9963_vm2 = vcmp.lt.s32.totalorder %v9684_v48, %v5225_v0 }
 0x68c   :  { %v3809_v15 = vadd.f32 %v5939_v42, %v3781_v50  ;;  %v5028_v42 = vld [vmem:[%s10008_s6] sm:$0xf] }
 0x68d   :  { %v5037_v55 = vrot.slane %v5028_v42, %v10447_v30  ;;  %v5045_v56 = vrot.slane %v5028_v42, %v10449_v32  ;;  %v5041_v28 = vrot.slane %v5028_v42, %v10448_v7 }
 0x68e   :  { %v3825_v57 = vpop.permute.xlu1 %3824 }
 0x68f   :  { %vm3831_vm4 = vcmp.gt.f32.partialorder %v3825_v57, %v9738_v59  ;;  %v5033_v57 = vrot.slane %v5028_v42, %v10446_v37  ;;  %v5710_v42 = vstv %s10009_s0 }
 0x690   :  { %v5943_v22 = vsel %vm3831_vm4, 1.0, %v6622_v34 }
 0x691   :  { %v3837_v36 = vadd.f32 %v5943_v22, %v3809_v15 }
 0x692   :  { %v3829_v2 = vpop.permute.xlu1 %3828 }
 0x693   :  { %vm3851_vm6 = vcmp.lt.f32.partialorder %v3837_v36, 10.0  ;;  %vm3832_vm7 = vcmp.gt.f32.partialorder %v3829_v2, %v9744_v53  ;;  %v5386_v2 = vadd.s32 4, %v10445_v5 }
 0x694   :  { %v5947_v10 = vsel %vm3851_vm6, 1.0, %v6622_v34  ;;  %v5944_v3 = vsel %vm3832_vm7, 1.0, %v6622_v34 }
 0x695   :  { %v3838_v61 = vadd.f32 %v5944_v3, %v3810_v21  ;;  %v3863_v46 = vadd.f32 %v5949_v38, %v5947_v10  ;;  %vm5387_vm9 = vcmp.eq.s32.totalorder %v9684_v48, %v5386_v2 }
 0x696   :  { %v5388_v5 = vsel %vm5387_vm9, 1.0, %v6622_v34 }
 0x697   :  { %vm3852_vm15 = vcmp.lt.f32.partialorder %v3838_v61, 10.0  ;;  %vm3865_vm0 = vcmp.gt.f32.partialorder %v3863_v46, 0.0 }
 0x698   :  { %v5948_v63 = vsel %vm3852_vm15, 1.0, %v6622_v34  ;;  %v5951_v9 = vsel %vm3865_vm0, 1.0, %v6622_v34 }
 0x699   :  { %v3871_v49 = vmul.f32 %v9738_v59, %v5951_v9  ;;  %v3864_v60 = vadd.f32 %v5950_v4, %v5948_v63 }
 0x69b   :  { %v3873_v25 = vsel %vm3419_vm12, %v3871_v49, 0.0  ;;  %vm3866_vm1 = vcmp.gt.f32.partialorder %v3864_v60, 0.0 }
 0x69c   :  { %3874 = vadd.xlane.f32.xlu1 %v3873_v25  ;;  %v5952_v17 = vsel %vm3866_vm1, 1.0, %v6622_v34 }
 0x69d   :  { %v3872_v20 = vmul.f32 %v9744_v53, %v5952_v17 }
 0x69f   :  { %v3876_v26 = vsel %vm3423_vm11, %v3872_v20, 0.0  ;;  %vm9958_vm11 = vcmp.ge.s32.totalorder %v9684_v48, %v5222_v27 }
 0x6a0   :  { %3877 = vadd.xlane.f32.xlu0 %v3876_v26  ;;  %v3883_v40 = vadd.f32 %v3876_v26, %v3873_v25  ;;  %vm5227_vm8 = vmand %vm9958_vm11, %vm9963_vm2 }
 0x6a1   :  { %v5228_v32 = vsel %vm5227_vm8, 0.5, %v6622_v34 }
 0x6a2   :  { %v3884_v41 = vrot.slane %v3883_v40, 4 }
 0x6a4   :  { %v3885_v29 = vadd.f32 %v3884_v41, %v3883_v40 }
 0x6a6   :  { %v3886_v11 = vrot.slane %v3885_v29, 2 }
 0x6a8   :  { %v3887_v47 = vadd.f32 %v3886_v11, %v3885_v29 }
 0x6aa   :  { %v3888_v12 = vrot.slane %v3887_v47, 1 }
 0x6ac   :  { %v3889_v52 = vadd.f32 %v3888_v12, %v3887_v47 }
 0x6ae   :  { %v3890_v62 = vadd.f32 2.220446e-16, %v3889_v52 }
 0x725   :  { %v3875_v59 = vpop.xlane.xlu1 %3874 }
 0x726   :  { %v3879_v16 = vadd.f32 2.220446e-16, %v3875_v59 }
 0x728   :  { %6610 = vrsqrt.f32 %v3879_v16 }
 0x729   :  { %v3878_v51 = vpop.xlane.xlu0 %3877  ;;  %6612 = vrsqrt.f32 %v3890_v62 }
 0x72a   :  { %v3880_v31 = vadd.f32 2.220446e-16, %v3878_v51 }
 0x72c   :  { %6614 = vrsqrt.f32 %v3880_v31 }
 0x735   :  { %v6611_v14 = vpop.eup %6610 }
 0x736   :  { %v3892_v53 = vmul.f32 %v6611_v14, %v3871_v49  ;;  %v6613_v44 = vpop.eup %6612 }
 0x738   :  { %v3894_v1 = vmul.f32 %v6613_v44, %v3892_v53 }
 0x739   :  { %v6615_v24 = vpop.eup %6614 }
 0x73a   :  { %6083 = vmatmul.mubr.msk.f32.vlgmr.msra.gmra.mxu0 %vm3419_vm12, %v3894_v1  ;;  %6087 = vmatmul.mubr.msk.f32.vlgmr.msra.gmra.mxu1 %vm3419_vm12, %v3894_v1  ;;  %v3893_v43 = vmul.f32 %v6615_v24, %v3872_v20 }
 0x73b   :  { %5138 = vmatprep.mubr.f32.mxu0 %v6622_v34  ;;  %5215 = vmatprep.mubr.f32.mxu1 %v6622_v34 }
 0x73c   :  { %v3895_v58 = vmul.f32 %v6613_v44, %v3893_v43 }
 0x73e   :  { %6084 = vmatmul.mubr.msk.f32.gmra.mxu0 %vm3419_vm12, %v3895_v58  ;;  %6088 = vmatmul.mubr.msk.f32.gmra.mxu1 %vm3419_vm12, %v3895_v58 }
 0x73f   :  { %5308 = vmatprep.mubr.f32.mxu0 %v6622_v34  ;;  %5379 = vmatprep.mubr.f32.mxu1 %v6622_v34 }
 0x7fa   :  { %v5134_v35 = vpop.f32.mrf.mxu0  ;;  %v5211_v45 = vpop.f32.mrf.mxu1 }
 0x7fb   :  { %v5135_v37 = vadd.f32 %v5134_v35, %v5033_v57  ;;  %v5212_v7 = vadd.f32 %v5211_v45, %v5041_v28 }
 0x7fc   :  { %v5136_v19 = vpop.f32.mrf.mxu0  ;;  %v5213_v6 = vpop.f32.mrf.mxu1 }
 0x7fd   :  { %v5137_v30 = vadd.f32 %v5136_v19, %v5037_v55  ;;  %v5214_v21 = vadd.f32 %v5213_v6, %v5045_v56 }
 0x7fe   :  { %v5140_v23 = vpop.f32.mrf.mxu0  ;;  %v5217_v33 = vpop.f32.mrf.mxu1 }
 0x7ff   :  { %v5141_v54 = vadd.f32 %v5140_v23, %v5033_v57  ;;  %v5218_v8 = vadd.f32 %v5217_v33, %v5041_v28 }
 0x800   :  { %v5142_v15 = vpop.f32.mrf.mxu0  ;;  %v5219_v22 = vpop.f32.mrf.mxu1 }
 0x801   :  { %v5143_v13 = vadd.f32 %v5142_v15, %v5037_v55  ;;  %v5220_v36 = vadd.f32 %v5219_v22, %v5045_v56 }
 0x803   :  { %6089 = vmatprep.subr.msk.mxu0 %vm3456_vm13, %v5143_v13  ;;  %6092 = vmatprep.subr.msk.mxu1 %vm3456_vm13, %v5220_v36 }
 0x804   :  { %6090 = vmatpush1.msk.msra.mxu0 %vm3456_vm13, %v5141_v54  ;;  %6093 = vmatpush1.msk.msra.mxu1 %vm3456_vm13, %v5218_v8 }
 0x805   :  { %5274 = vmatprep.subr.mxu0 %v5137_v30  ;;  %5345 = vmatprep.subr.mxu1 %v5214_v21 }
 0x806   :  { %5275 = vmatpush1.msra.mxu0 %v5135_v37  ;;  %5346 = vmatpush1.msra.mxu1 %v5212_v7 }
 0x807   :  { %6091 = vmatmul.mubr.msk.f32.vlgmr.msra.gmra.mxu0 %vm3419_vm12, %v5228_v32  ;;  %6095 = vmatprep.subr.msk.mxu0 %vm3456_vm13, %v5143_v13 }
 0x808   :  { %6098 = vmatprep.subr.msk.mxu1 %vm3456_vm13, %v5220_v36  ;;  %6094 = vmatmul.mubr.msk.f32.vlgmr.msra.gmra.mxu1 %vm3419_vm12, %v5228_v32 }
 0x809   :  { %6096 = vmatpush1.msk.msra.mxu0 %vm3456_vm13, %v5141_v54  ;;  %6099 = vmatpush1.msk.msra.mxu1 %vm3456_vm13, %v5218_v8 }
 0x80a   :  { %5422 = vmatprep.subr.mxu0 %v5137_v30  ;;  %5493 = vmatprep.subr.mxu1 %v5214_v21 }
 0x80b   :  { %5423 = vmatpush1.msra.mxu0 %v5135_v37  ;;  %5456 = vmatprep.mubr.f32.mxu0 %v6622_v34 }
 0x80c   :  { %5494 = vmatpush1.msra.mxu1 %v5212_v7  ;;  %6097 = vmatmul.mubr.msk.f32.vlgmr.msra.gmra.mxu0 %vm3419_vm12, %v5388_v5 }
 0x80d   :  { %5527 = vmatprep.mubr.f32.mxu1 %v6622_v34 }
 0x80e   :  { %6100 = vmatmul.mubr.msk.f32.vlgmr.msra.gmra.mxu1 %vm3419_vm12, %v5388_v5  ;;  %vm5712_vm12 = vcmask 15360  }
 0x8c7   :  { %v5310_v48 = vpop.f32.mrf.mxu0 }
 0x8c8   :  { %v5549_v10 = vmul.f32 %v5310_v48, %v5310_v48  ;;  %v5381_v3 = vpop.f32.mrf.mxu1 }
 0x8c9   :  { %v5312_v38 = vpop.f32.mrf.mxu0  ;;  %v5551_v61 = vmul.f32 %v5381_v3, %v5381_v3 }
 0x8ca   :  { %v5550_v46 = vmul.f32 %v5312_v38, %v5312_v38  ;;  %v5383_v63 = vpop.f32.mrf.mxu1  ;;  %v5554_v9 = vsel %vm5553_vm3, %v5549_v10, 0.0 }
 0x8cb   :  { %v5557_v49 = vsel %vm5553_vm3, %v5551_v61, 0.0  ;;  %v5552_v25 = vmul.f32 %v5383_v63, %v5383_v63 }
 0x8cc   :  { %v5555_v4 = vsel %vm5553_vm3, %v5550_v46, 0.0  ;;  %v5458_v60 = vpop.f32.mrf.mxu0 }
 0x8cd   :  { %v5556_v17 = vadd.f32 %v5555_v4, %v5554_v9  ;;  %v5534_v26 = vmul.f32 %v5458_v60, %v5458_v60  ;;  %v5559_v47 = vsel %vm5553_vm3, %v5552_v25, 0.0 }
 0x8ce   :  { %v5460_v34 = vpop.f32.mrf.mxu0  ;;  %v5529_v20 = vpop.f32.mrf.mxu1 }
 0x8cf   :  { %v5535_v40 = vmul.f32 %v5460_v34, %v5460_v34  ;;  %v5536_v41 = vmul.f32 %v5529_v20, %v5529_v20  ;;  %v5558_v29 = vadd.f32 %v5557_v49, %v5556_v17 }
 0x8d0   :  { %v5531_v11 = vpop.f32.mrf.mxu1 }
 0x8d1   :  { %v5538_v12 = vadd.f32 %v5535_v40, %v5534_v26  ;;  %v5560_v52 = vadd.f32 %v5559_v47, %v5558_v29  ;;  %v5537_v59 = vmul.f32 %v5531_v11, %v5531_v11 }
 0x8d3   :  { %5561 = vadd.xlane.f32.xlu0 %v5560_v52  ;;  %v5539_v62 = vadd.f32 %v5538_v12, %v5536_v41 }
 0x8d5   :  { %v5540_v16 = vadd.f32 %v5539_v62, %v5537_v59 }
 0x8d7   :  { %5541 = vadd.xlane.f32.xlu1 %v5540_v16 }
 0x95c   :  { %v5562_v51 = vpop.xlane.xlu0 %5561 }
 0x95d   :  { %v5563_v31 = vmax.f32 %v5562_v51, 1e-24 }
 0x95f   :  { %6616 = vrsqrt.f32 %v5563_v31 }
 0x960   :  { %v5542_v14 = vpop.xlane.xlu1 %5541 }
 0x961   :  { %v5543_v53 = vmax.f32 %v5542_v14, 1e-24 }
 0x963   :  { %6618 = vrsqrt.f32 %v5543_v53 }
 0x96c   :  { %v6617_v44 = vpop.eup %6616 }
 0x96d   :  { %v5566_v1 = vmul.f32 %v6617_v44, %v5312_v38  ;;  %v5568_v24 = vmul.f32 %v6617_v44, %v5383_v63  ;;  %v5565_v43 = vmul.f32 %v6617_v44, %v5310_v48  ;;  %v5567_v58 = vmul.f32 %v6617_v44, %v5381_v3 }
 0x96f   :  { %5599 = vmatprep.subr.mxu0 %v5566_v1  ;;  %5669 = vmatprep.subr.mxu1 %v5568_v24 }
 0x970   :  { %v6619_v18 = vpop.eup %6618  ;;  %5600 = vmatpush1.xpose.msra.mxu0 %v5565_v43  ;;  %5670 = vmatpush1.xpose.msra.mxu1 %v5567_v58 }
 0x971   :  { %v5546_v35 = vmul.f32 %v6619_v18, %v5460_v34  ;;  %v5548_v45 = vmul.f32 %v6619_v18, %v5531_v11  ;;  %v5545_v27 = vmul.f32 %v6619_v18, %v5458_v60  ;;  %v5547_v0 = vmul.f32 %v6619_v18, %v5529_v20 }
 0x973   :  { %5633 = vmatprep.mubr.f32.mxu0 %v5546_v35  ;;  %5703 = vmatprep.mubr.f32.mxu1 %v5548_v45 }
 0x974   :  { %5634 = vmatmul.mubr.f32.vlgmr.msra.gmra.mxu0 %v5545_v27  ;;  %5704 = vmatmul.mubr.f32.vlgmr.msra.gmra.mxu1 %v5547_v0 }
 0xa34   :  { %v5635_v19 = vpop.f32.mrf.mxu0  ;;  %v5705_v6 = vpop.f32.mrf.mxu1 }
 0xa35   :  { %v5706_v23 = vadd.f32 %v5705_v6, %v5635_v19 }
 0xa36   :  { %v5637_v33 = vpop.f32.mrf.mxu0  ;;  %v5707_v50 = vpop.f32.mrf.mxu1 }
 0xa37   :  { %v5711_v39 = vmul.f32 %v5710_v42, %v5706_v23 }
 0xa39   :  { %5713 = vst.msk [vmem:[%s10010_s7] sm:$0xff] %vm5712_vm12, %v5711_v39 }

</bundles_post_ra>
